<compile_context>
chip_gen: v7x
topology: tpu7x:2x2x1
jax: 0.10.0
libtpu: 0.0.40
codegen_flags: <defaults>
</compile_context>

<pallas_src>
import jax
import jax.numpy as jnp
from jax import lax
from jax.experimental import pallas as pl
from jax.experimental.pallas import tpu as pltpu

# ----------------------------- configuration -------------------------------
B, CIN, H, W = 2, 8, 16, 16
COUT = 8
K = 3
STRIDE = 1
EXPAND = 4
SE_RATIO = 0.25
BN_EPS = 1e-5


def round_channels(channels, width_multiplier, divisor=8, min_value=None):
    if not width_multiplier:
        return int(channels)
    channels *= width_multiplier
    min_value = min_value or divisor
    new_channels = max(min_value, int(channels + divisor / 2) // divisor * divisor)
    if new_channels < 0.9 * channels:
        new_channels += divisor
    return new_channels


def calculate_same_padding(kernel_size, dilation, stride):
    return (stride - 1 + dilation * (kernel_size - 1)) // 2


MID = round_channels(CIN, EXPAND)            # 32
LATENT = max(1, int(CIN * SE_RATIO))         # 2
PAD = calculate_same_padding(K, 1, STRIDE)   # 1

assert CIN == COUT and STRIDE == 1           # has_residual; packed layouts line up
assert (W & (W - 1)) == 0                    # power-of-two W for fold/tile loops

# packed lane widths (all multiples of 128 -> lane-dense vregs, unmasked vst)
XL = W * CIN     # 128
ML = W * MID     # 512
OL = W * COUT    # 128

# padded depthwise scratch geometry: center write is tile-aligned, the 9 tap
# reads are statically shifted slices into the zeroed halo.
SUB_OFF = 8                       # sublane offset of center rows (multiple of 8)
SUB_TOT = SUB_OFF + H + SUB_OFF   # 32 rows
LANE_OFF = 128                    # lane offset of center block (multiple of 128)
LANE_TOT = LANE_OFF + ML + 128    # 768 lanes

# packed per-channel constants: one (NROW, ML) f32 array
#   row 0            : bias1 tiled over W                (ML,)
#   row 1            : bias2 tiled over W                (ML,)
#   row 2            : bias3 tiled over W                (OL used)
#   row 3            : SE expand bias b_see              (MID used)
#   rows 4..4+L-1    : SE reduce weight column j         (MID used)
#   rows 4+L..4+2L-1 : SE expand weight row j            (MID used)
#   rows 4+2L..4+3L-1: SE reduce bias b_ser[j] broadcast (lane 0 used)
NROW = 4 + 3 * LATENT


# ------------------------------- kernel ------------------------------------
def mbconv_kernel(x_ref, wexp_ref, wdw_ref, wcon_ref, cvec_ref, out_ref, hpad_ref):
    # x_ref    : (B, H, XL)        f32   lane-packed NHWC input
    # wexp_ref : (XL, ML)          bf16  block-diag expand weights (BN1 scale folded)
    # wdw_ref  : (K*K, ML)         f32   depthwise taps tiled over W (BN2 scale folded)
    # wcon_ref : (ML, OL)          bf16  block-diag contract weights (BN3 scale folded)
    # cvec_ref : (NROW, ML)        f32   packed per-channel constants
    # out_ref  : (B, H, OL)        f32
    # hpad_ref : (B, SUB_TOT, LANE_TOT) f32  zero-padded depthwise scratch

    x = x_ref[...]                                    # (B, H, 128) f32
    xm = x.reshape(B * H, XL)                         # (32, 128)

    # --- 1x1 expand (BN1 scale folded into weights) + bias + ReLU -----------
    h = jnp.dot(xm.astype(jnp.bfloat16), wexp_ref[...],
                preferred_element_type=jnp.float32)   # (32, 512)
    h = jnp.maximum(h + cvec_ref[0, :], 0.0)
    h = h.reshape(B, H, ML)                           # (B, H, 512)

    # --- depthwise 3x3, stride 1, SAME: padded scratch + 9 static-slice FMAs
    hpad_ref[...] = jnp.zeros_like(hpad_ref)
    hpad_ref[:, SUB_OFF:SUB_OFF + H, LANE_OFF:LANE_OFF + ML] = h

    acc = None
    for kh in range(K):
        for kw in range(K):
            r0 = SUB_OFF + kh - PAD
            c0 = LANE_OFF + (kw - PAD) * MID
            tap = hpad_ref[:, r0:r0 + H, c0:c0 + ML]          # (B, H, 512)
            term = tap * wdw_ref[kh * K + kw, :]
            acc = term if acc is None else acc + term
    h2 = jnp.maximum(acc + cvec_ref[1, :], 0.0)               # (B, H, 512)

    # --- squeeze-excite (VPU/XLU only; no MXU on the serial path) ------------
    s = jnp.sum(h2, axis=1)                                   # (B, 512)
    width = ML
    while width > MID:                                        # fold W replicas -> (B, MID)
        half = width // 2
        s = s[:, :half] + s[:, half:width]
        width = half
    pooled = s * (1.0 / (H * W))                              # (B, MID)

    gate_logit = cvec_ref[3, :MID]                            # b_see, broadcasts to (B, MID)
    for j in range(LATENT):
        red = jnp.sum(pooled * cvec_ref[4 + j, :MID], axis=1, keepdims=True)
        red = jnp.maximum(red + cvec_ref[4 + 2 * LATENT + j, :1], 0.0)   # (B, 1)
        gate_logit = gate_logit + red * cvec_ref[4 + LATENT + j, :MID]
    gate = jax.nn.sigmoid(gate_logit)                         # (B, MID)

    gate_t = gate
    while gate_t.shape[-1] < ML:                              # replicate back to (B, 512)
        gate_t = jnp.concatenate([gate_t, gate_t], axis=-1)
    h2 = h2 * gate_t[:, None, :]

    # --- 1x1 contract (BN3 scale folded) + bias + identity residual ---------
    y = jnp.dot(h2.reshape(B * H, ML).astype(jnp.bfloat16), wcon_ref[...],
                preferred_element_type=jnp.float32)           # (32, 128)
    y = y + cvec_ref[2, :OL] + xm     # drop_connect is identity in eval mode
    out_ref[...] = y.reshape(B, H, OL)


# ------------------------------- wrapper ------------------------------------
def mbconv_pallas(x_packed, w_exp_big, w_dw_tiled, w_con_big, cvec):
    vmem = pltpu.MemorySpace.VMEM
    return pl.pallas_call(
        mbconv_kernel,
        out_shape=jax.ShapeDtypeStruct((B, H, OL), jnp.float32),
        in_specs=[pl.BlockSpec(memory_space=vmem)] * 5,
        out_specs=pl.BlockSpec(memory_space=vmem),
        scratch_shapes=[pltpu.VMEM((B, SUB_TOT, LANE_TOT), jnp.float32)],
    )(x_packed, w_exp_big, w_dw_tiled, w_con_big, cvec)


def fold_bn(gamma, beta, mean, var):
    scale = gamma / jnp.sqrt(var + BN_EPS)
    return scale, beta - mean * scale


def prepare_kernel_params(p):
    """One-time host-side folding/packing of module parameters."""
    s1, b1 = fold_bn(p['g1'], p['beta1'], p['m1'], p['v1'])        # (MID,)
    s2, b2 = fold_bn(p['g2'], p['beta2'], p['m2'], p['v2'])        # (MID,)
    s3, b3 = fold_bn(p['g3'], p['beta3'], p['m3'], p['v3'])        # (COUT,)

    w_exp_f = p['w_exp'] * s1[None, :]                             # (CIN, MID)
    w_dw_f = p['w_dw'] * s2[None, :]                               # (K*K, MID)
    w_con_f = p['w_con'] * s3[None, :]                             # (MID, COUT)

    eye = jnp.eye(W, dtype=jnp.float32)
    w_exp_big = jnp.kron(eye, w_exp_f).astype(jnp.bfloat16)        # (128, 512)
    w_con_big = jnp.kron(eye, w_con_f).astype(jnp.bfloat16)        # (512, 128)
    w_dw_tiled = jnp.tile(w_dw_f, (1, W))                          # (9, 512)

    cvec = jnp.zeros((NROW, ML), jnp.float32)
    cvec = cvec.at[0, :].set(jnp.tile(b1, W))
    cvec = cvec.at[1, :].set(jnp.tile(b2, W))
    cvec = cvec.at[2, :OL].set(jnp.tile(b3, W))
    cvec = cvec.at[3, :MID].set(p['b_see'])
    for j in range(LATENT):
        cvec = cvec.at[4 + j, :MID].set(p['w_ser'][:, j])
        cvec = cvec.at[4 + LATENT + j, :MID].set(p['w_see'][j, :])
        cvec = cvec.at[4 + 2 * LATENT + j, :].set(p['b_ser'][j])
    return w_exp_big, w_dw_tiled, w_con_big, cvec


@jax.jit
def mbconv_forward(x_nchw, w_exp_big, w_dw_tiled, w_con_big, cvec):
    # NCHW (PyTorch) -> lane-packed (B, H, W*CIN); pure layout plumbing.
    x_packed = jnp.transpose(x_nchw, (0, 2, 3, 1)).reshape(B, H, XL)
    y_packed = mbconv_pallas(x_packed, w_exp_big, w_dw_tiled, w_con_big, cvec)
    return jnp.transpose(y_packed.reshape(B, H, W, COUT), (0, 3, 1, 2))


# ------------------------- pure-JAX reference -------------------------------
def mbconv_reference(x_nchw, p):
    x = jnp.transpose(x_nchw, (0, 2, 3, 1)).astype(jnp.float32)    # NHWC
    s1, b1 = fold_bn(p['g1'], p['beta1'], p['m1'], p['v1'])
    s2, b2 = fold_bn(p['g2'], p['beta2'], p['m2'], p['v2'])
    s3, b3 = fold_bn(p['g3'], p['beta3'], p['m3'], p['v3'])
    hp = lax.Precision.HIGHEST

    h = jnp.einsum('bhwc,cm->bhwm', x, p['w_exp'], precision=hp)
    h = jnp.maximum(h * s1 + b1, 0.0)
    h = lax.conv_general_dilated(
        h, p['w_dw'].reshape(K, K, 1, MID), window_strides=(1, 1),
        padding=((PAD, PAD), (PAD, PAD)),
        dimension_numbers=('NHWC', 'HWIO', 'NHWC'),
        feature_group_count=MID, precision=hp)
    h = jnp.maximum(h * s2 + b2, 0.0)
    pooled = jnp.mean(h, axis=(1, 2))                              # (B, MID)
    r = jnp.maximum(pooled @ p['w_ser'] + p['b_ser'], 0.0)         # (B, LATENT)
    gate = jax.nn.sigmoid(r @ p['w_see'] + p['b_see'])             # (B, MID)
    h = h * gate[:, None, None, :]
    y = jnp.einsum('bhwm,mo->bhwo', h, p['w_con'], precision=hp)
    y = y * s3 + b3
    y = y + x                      # has_residual; eval-mode drop_connect = identity
    return jnp.transpose(y, (0, 3, 1, 2))


# --------------------------------- main --------------------------------------
if __name__ == "__main__":
    key = jax.random.PRNGKey(0)
    ks = jax.random.split(key, 12)

    x_nchw = jax.random.normal(ks[0], (B, CIN, H, W), jnp.float32)

    def bn_params(k, c):
        kg, kb, km, kv = jax.random.split(k, 4)
        return (1.0 + 0.1 * jax.random.normal(kg, (c,), jnp.float32),
                0.1 * jax.random.normal(kb, (c,), jnp.float32),
                0.1 * jax.random.normal(km, (c,), jnp.float32),
                jax.random.uniform(kv, (c,), jnp.float32, minval=0.5, maxval=1.5))

    g1, beta1, m1, v1 = bn_params(ks[1], MID)
    g2, beta2, m2, v2 = bn_params(ks[2], MID)
    g3, beta3, m3, v3 = bn_params(ks[3], COUT)

    p = dict(
        w_exp=0.2 * jax.random.normal(ks[4], (CIN, MID), jnp.float32),
        w_dw=0.2 * jax.random.normal(ks[5], (K * K, MID), jnp.float32),
        w_ser=0.2 * jax.random.normal(ks[6], (MID, LATENT), jnp.float32),
        b_ser=0.1 * jax.random.normal(ks[7], (LATENT,), jnp.float32),
        w_see=0.2 * jax.random.normal(ks[8], (LATENT, MID), jnp.float32),
        b_see=0.1 * jax.random.normal(ks[9], (MID,), jnp.float32),
        w_con=0.2 * jax.random.normal(ks[10], (MID, COUT), jnp.float32),
        g1=g1, beta1=beta1, m1=m1, v1=v1,
        g2=g2, beta2=beta2, m2=m2, v2=v2,
        g3=g3, beta3=beta3, m3=m3, v3=v3,
    )

    kernel_params = prepare_kernel_params(p)
    out = jax.block_until_ready(mbconv_forward(x_nchw, *kernel_params))
    assert out.shape == (B, COUT, H, W)

    ref = mbconv_reference(x_nchw, p)
    err = float(jnp.max(jnp.abs(out - ref)))
    # bf16 MXU operands (single pass) vs f32 reference -> allow small slack.
    assert err < 3e-2, f"max abs error too large: {err}"
    print("KERNEL_OK")
</pallas_src>

<mosaic_0001>
module attributes {stable_mosaic.version = 11 : i64} {
  func.func @mbconv_kernel(%arg0: memref<2x16x128xf32, #tpu.memory_space<vmem>>, %arg1: memref<128x512xbf16, #tpu.memory_space<vmem>>, %arg2: memref<9x512xf32, #tpu.memory_space<vmem>>, %arg3: memref<512x128xbf16, #tpu.memory_space<vmem>>, %arg4: memref<10x512xf32, #tpu.memory_space<vmem>>, %arg5: memref<2x16x128xf32, #tpu.memory_space<vmem>>, %arg6: memref<2x32x768xf32, #tpu.memory_space<vmem>>) attributes {dimension_semantics = [], scalar_prefetch = 0 : i64, scratch_operands = 1 : i64, tpu.core_type = #tpu.core_type<tc>} {
    %c0 = arith.constant 0 : index
    %c0_0 = arith.constant 0 : index
    %c0_1 = arith.constant 0 : index
    %0 = vector.load %arg0[%c0, %c0_0, %c0_1] : memref<2x16x128xf32, #tpu.memory_space<vmem>>, vector<2x16x128xf32>
    %1 = vector.shape_cast %0 : vector<2x16x128xf32> to vector<32x128xf32>
    %2 = arith.truncf %1 : vector<32x128xf32> to vector<32x128xbf16>
    %c0_2 = arith.constant 0 : index
    %c0_3 = arith.constant 0 : index
    %3 = vector.load %arg1[%c0_2, %c0_3] : memref<128x512xbf16, #tpu.memory_space<vmem>>, vector<128x512xbf16>
    %cst = arith.constant dense<0.000000e+00> : vector<32x512xf32>
    %4 = tpu.matmul %2, %3, %cst {dimension_numbers = #tpu.dot_dimension_numbers<[1], [0], [0], [1], [0, 0, 1, 1], [], []>} : vector<32x128xbf16>, vector<128x512xbf16>, vector<32x512xf32> -> vector<32x512xf32>
    %c0_4 = arith.constant 0 : index
    %c0_5 = arith.constant 0 : index
    %5 = vector.load %arg4[%c0_4, %c0_5] : memref<10x512xf32, #tpu.memory_space<vmem>>, vector<1x512xf32>
    %6 = vector.shape_cast %5 : vector<1x512xf32> to vector<512xf32>
    %7 = vector.shape_cast %6 : vector<512xf32> to vector<1x512xf32>
    %8 = vector.broadcast %7 : vector<1x512xf32> to vector<32x512xf32>
    %9 = arith.addf %4, %8 : vector<32x512xf32>
    %cst_6 = arith.constant 0.000000e+00 : f32
    %10 = vector.broadcast %cst_6 : f32 to vector<32x512xf32>
    %11 = arith.maximumf %9, %10 : vector<32x512xf32>
    %12 = vector.shape_cast %11 : vector<32x512xf32> to vector<2x16x512xf32>
    %cst_7 = arith.constant 0.000000e+00 : f32
    %13 = vector.broadcast %cst_7 : f32 to vector<2x32x768xf32>
    %c0_8 = arith.constant 0 : index
    %c0_9 = arith.constant 0 : index
    %c0_10 = arith.constant 0 : index
    %14 = vector.load %arg6[%c0_8, %c0_9, %c0_10] : memref<2x32x768xf32, #tpu.memory_space<vmem>>, vector<2x32x768xf32>
    tpu.vector_store %arg6[%c0_8, %c0_9, %c0_10], %13 {strides = array<i32>} : memref<2x32x768xf32, #tpu.memory_space<vmem>>, vector<2x32x768xf32>,
    %c0_11 = arith.constant 0 : index
    %c8 = arith.constant 8 : index
    %c128 = arith.constant 128 : index
    %15 = vector.load %arg6[%c0_11, %c8, %c128] : memref<2x32x768xf32, #tpu.memory_space<vmem>>, vector<2x16x512xf32>
    tpu.vector_store %arg6[%c0_11, %c8, %c128], %12 {strides = array<i32>} : memref<2x32x768xf32, #tpu.memory_space<vmem>>, vector<2x16x512xf32>,
    %c0_12 = arith.constant 0 : index
    %c7 = arith.constant 7 : index
    %c96 = arith.constant 96 : index
    %16 = vector.load %arg6[%c0_12, %c7, %c96] : memref<2x32x768xf32, #tpu.memory_space<vmem>>, vector<2x16x512xf32>
    %c0_13 = arith.constant 0 : index
    %c0_14 = arith.constant 0 : index
    %17 = vector.load %arg2[%c0_13, %c0_14] : memref<9x512xf32, #tpu.memory_space<vmem>>, vector<1x512xf32>
    %18 = vector.shape_cast %17 : vector<1x512xf32> to vector<512xf32>
    %19 = vector.shape_cast %18 : vector<512xf32> to vector<1x1x512xf32>
    %20 = vector.broadcast %19 : vector<1x1x512xf32> to vector<2x16x512xf32>
    %21 = arith.mulf %16, %20 : vector<2x16x512xf32>
    %c0_15 = arith.constant 0 : index
    %c7_16 = arith.constant 7 : index
    %c128_17 = arith.constant 128 : index
    %22 = vector.load %arg6[%c0_15, %c7_16, %c128_17] : memref<2x32x768xf32, #tpu.memory_space<vmem>>, vector<2x16x512xf32>
    %c1 = arith.constant 1 : index
    %c0_18 = arith.constant 0 : index
    %23 = vector.load %arg2[%c1, %c0_18] : memref<9x512xf32, #tpu.memory_space<vmem>>, vector<1x512xf32>
    %24 = vector.shape_cast %23 : vector<1x512xf32> to vector<512xf32>
    %25 = vector.shape_cast %24 : vector<512xf32> to vector<1x1x512xf32>
    %26 = vector.broadcast %25 : vector<1x1x512xf32> to vector<2x16x512xf32>
    %27 = arith.mulf %22, %26 : vector<2x16x512xf32>
    %28 = arith.addf %21, %27 : vector<2x16x512xf32>
    %c0_19 = arith.constant 0 : index
    %c7_20 = arith.constant 7 : index
    %c160 = arith.constant 160 : index
    %29 = vector.load %arg6[%c0_19, %c7_20, %c160] : memref<2x32x768xf32, #tpu.memory_space<vmem>>, vector<2x16x512xf32>
    %c2 = arith.constant 2 : index
    %c0_21 = arith.constant 0 : index
    %30 = vector.load %arg2[%c2, %c0_21] : memref<9x512xf32, #tpu.memory_space<vmem>>, vector<1x512xf32>
    %31 = vector.shape_cast %30 : vector<1x512xf32> to vector<512xf32>
    %32 = vector.shape_cast %31 : vector<512xf32> to vector<1x1x512xf32>
    %33 = vector.broadcast %32 : vector<1x1x512xf32> to vector<2x16x512xf32>
    %34 = arith.mulf %29, %33 : vector<2x16x512xf32>
    %35 = arith.addf %28, %34 : vector<2x16x512xf32>
    %c0_22 = arith.constant 0 : index
    %c8_23 = arith.constant 8 : index
    %c96_24 = arith.constant 96 : index
    %36 = vector.load %arg6[%c0_22, %c8_23, %c96_24] : memref<2x32x768xf32, #tpu.memory_space<vmem>>, vector<2x16x512xf32>
    %c3 = arith.constant 3 : index
    %c0_25 = arith.constant 0 : index
    %37 = vector.load %arg2[%c3, %c0_25] : memref<9x512xf32, #tpu.memory_space<vmem>>, vector<1x512xf32>
    %38 = vector.shape_cast %37 : vector<1x512xf32> to vector<512xf32>
    %39 = vector.shape_cast %38 : vector<512xf32> to vector<1x1x512xf32>
    %40 = vector.broadcast %39 : vector<1x1x512xf32> to vector<2x16x512xf32>
    %41 = arith.mulf %36, %40 : vector<2x16x512xf32>
    %42 = arith.addf %35, %41 : vector<2x16x512xf32>
    %c0_26 = arith.constant 0 : index
    %c8_27 = arith.constant 8 : index
    %c128_28 = arith.constant 128 : index
    %43 = vector.load %arg6[%c0_26, %c8_27, %c128_28] : memref<2x32x768xf32, #tpu.memory_space<vmem>>, vector<2x16x512xf32>
    %c4 = arith.constant 4 : index
    %c0_29 = arith.constant 0 : index
    %44 = vector.load %arg2[%c4, %c0_29] : memref<9x512xf32, #tpu.memory_space<vmem>>, vector<1x512xf32>
    %45 = vector.shape_cast %44 : vector<1x512xf32> to vector<512xf32>
    %46 = vector.shape_cast %45 : vector<512xf32> to vector<1x1x512xf32>
    %47 = vector.broadcast %46 : vector<1x1x512xf32> to vector<2x16x512xf32>
    %48 = arith.mulf %43, %47 : vector<2x16x512xf32>
    %49 = arith.addf %42, %48 : vector<2x16x512xf32>
    %c0_30 = arith.constant 0 : index
    %c8_31 = arith.constant 8 : index
    %c160_32 = arith.constant 160 : index
    %50 = vector.load %arg6[%c0_30, %c8_31, %c160_32] : memref<2x32x768xf32, #tpu.memory_space<vmem>>, vector<2x16x512xf32>
    %c5 = arith.constant 5 : index
    %c0_33 = arith.constant 0 : index
    %51 = vector.load %arg2[%c5, %c0_33] : memref<9x512xf32, #tpu.memory_space<vmem>>, vector<1x512xf32>
    %52 = vector.shape_cast %51 : vector<1x512xf32> to vector<512xf32>
    %53 = vector.shape_cast %52 : vector<512xf32> to vector<1x1x512xf32>
    %54 = vector.broadcast %53 : vector<1x1x512xf32> to vector<2x16x512xf32>
    %55 = arith.mulf %50, %54 : vector<2x16x512xf32>
    %56 = arith.addf %49, %55 : vector<2x16x512xf32>
    %c0_34 = arith.constant 0 : index
    %c9 = arith.constant 9 : index
    %c96_35 = arith.constant 96 : index
    %57 = vector.load %arg6[%c0_34, %c9, %c96_35] : memref<2x32x768xf32, #tpu.memory_space<vmem>>, vector<2x16x512xf32>
    %c6 = arith.constant 6 : index
    %c0_36 = arith.constant 0 : index
    %58 = vector.load %arg2[%c6, %c0_36] : memref<9x512xf32, #tpu.memory_space<vmem>>, vector<1x512xf32>
    %59 = vector.shape_cast %58 : vector<1x512xf32> to vector<512xf32>
    %60 = vector.shape_cast %59 : vector<512xf32> to vector<1x1x512xf32>
    %61 = vector.broadcast %60 : vector<1x1x512xf32> to vector<2x16x512xf32>
    %62 = arith.mulf %57, %61 : vector<2x16x512xf32>
    %63 = arith.addf %56, %62 : vector<2x16x512xf32>
    %c0_37 = arith.constant 0 : index
    %c9_38 = arith.constant 9 : index
    %c128_39 = arith.constant 128 : index
    %64 = vector.load %arg6[%c0_37, %c9_38, %c128_39] : memref<2x32x768xf32, #tpu.memory_space<vmem>>, vector<2x16x512xf32>
    %c7_40 = arith.constant 7 : index
    %c0_41 = arith.constant 0 : index
    %65 = vector.load %arg2[%c7_40, %c0_41] : memref<9x512xf32, #tpu.memory_space<vmem>>, vector<1x512xf32>
    %66 = vector.shape_cast %65 : vector<1x512xf32> to vector<512xf32>
    %67 = vector.shape_cast %66 : vector<512xf32> to vector<1x1x512xf32>
    %68 = vector.broadcast %67 : vector<1x1x512xf32> to vector<2x16x512xf32>
    %69 = arith.mulf %64, %68 : vector<2x16x512xf32>
    %70 = arith.addf %63, %69 : vector<2x16x512xf32>
    %c0_42 = arith.constant 0 : index
    %c9_43 = arith.constant 9 : index
    %c160_44 = arith.constant 160 : index
    %71 = vector.load %arg6[%c0_42, %c9_43, %c160_44] : memref<2x32x768xf32, #tpu.memory_space<vmem>>, vector<2x16x512xf32>
    %c8_45 = arith.constant 8 : index
    %c0_46 = arith.constant 0 : index
    %72 = vector.load %arg2[%c8_45, %c0_46] : memref<9x512xf32, #tpu.memory_space<vmem>>, vector<1x512xf32>
    %73 = vector.shape_cast %72 : vector<1x512xf32> to vector<512xf32>
    %74 = vector.shape_cast %73 : vector<512xf32> to vector<1x1x512xf32>
    %75 = vector.broadcast %74 : vector<1x1x512xf32> to vector<2x16x512xf32>
    %76 = arith.mulf %71, %75 : vector<2x16x512xf32>
    %77 = arith.addf %70, %76 : vector<2x16x512xf32>
    %c1_47 = arith.constant 1 : index
    %c0_48 = arith.constant 0 : index
    %78 = vector.load %arg4[%c1_47, %c0_48] : memref<10x512xf32, #tpu.memory_space<vmem>>, vector<1x512xf32>
    %79 = vector.shape_cast %78 : vector<1x512xf32> to vector<512xf32>
    %80 = vector.shape_cast %79 : vector<512xf32> to vector<1x1x512xf32>
    %81 = vector.broadcast %80 : vector<1x1x512xf32> to vector<2x16x512xf32>
    %82 = arith.addf %77, %81 : vector<2x16x512xf32>
    %cst_49 = arith.constant 0.000000e+00 : f32
    %83 = vector.broadcast %cst_49 : f32 to vector<2x16x512xf32>
    %84 = arith.maximumf %82, %83 : vector<2x16x512xf32>
    %cst_50 = arith.constant dense<0.000000e+00> : vector<2x512xf32>
    %85 = vector.multi_reduction <add>, %84, %cst_50 [1] : vector<2x16x512xf32> to vector<2x512xf32>
    %86 = vector.extract_strided_slice %85 {offsets = [0, 0], sizes = [2, 256], strides = [1, 1]} : vector<2x512xf32> to vector<2x256xf32>
    %87 = vector.extract_strided_slice %85 {offsets = [0, 256], sizes = [2, 256], strides = [1, 1]} : vector<2x512xf32> to vector<2x256xf32>
    %88 = arith.addf %86, %87 : vector<2x256xf32>
    %89 = vector.extract_strided_slice %88 {offsets = [0, 0], sizes = [2, 128], strides = [1, 1]} : vector<2x256xf32> to vector<2x128xf32>
    %90 = vector.extract_strided_slice %88 {offsets = [0, 128], sizes = [2, 128], strides = [1, 1]} : vector<2x256xf32> to vector<2x128xf32>
    %91 = arith.addf %89, %90 : vector<2x128xf32>
    %92 = vector.extract_strided_slice %91 {offsets = [0, 0], sizes = [2, 64], strides = [1, 1]} : vector<2x128xf32> to vector<2x64xf32>
    %93 = vector.extract_strided_slice %91 {offsets = [0, 64], sizes = [2, 64], strides = [1, 1]} : vector<2x128xf32> to vector<2x64xf32>
    %94 = arith.addf %92, %93 : vector<2x64xf32>
    %95 = vector.extract_strided_slice %94 {offsets = [0, 0], sizes = [2, 32], strides = [1, 1]} : vector<2x64xf32> to vector<2x32xf32>
    %96 = vector.extract_strided_slice %94 {offsets = [0, 32], sizes = [2, 32], strides = [1, 1]} : vector<2x64xf32> to vector<2x32xf32>
    %97 = arith.addf %95, %96 : vector<2x32xf32>
    %cst_51 = arith.constant 3.906250e-03 : f32
    %98 = vector.broadcast %cst_51 : f32 to vector<2x32xf32>
    %99 = arith.mulf %97, %98 : vector<2x32xf32>
    %c3_52 = arith.constant 3 : index
    %c0_53 = arith.constant 0 : index
    %100 = vector.load %arg4[%c3_52, %c0_53] : memref<10x512xf32, #tpu.memory_space<vmem>>, vector<1x32xf32>
    %101 = vector.shape_cast %100 : vector<1x32xf32> to vector<32xf32>
    %c4_54 = arith.constant 4 : index
    %c0_55 = arith.constant 0 : index
    %102 = vector.load %arg4[%c4_54, %c0_55] : memref<10x512xf32, #tpu.memory_space<vmem>>, vector<1x32xf32>
    %103 = vector.shape_cast %102 : vector<1x32xf32> to vector<32xf32>
    %104 = vector.shape_cast %103 : vector<32xf32> to vector<1x32xf32>
    %105 = vector.broadcast %104 : vector<1x32xf32> to vector<2x32xf32>
    %106 = arith.mulf %99, %105 : vector<2x32xf32>
    %cst_56 = arith.constant dense<0.000000e+00> : vector<2xf32>
    %107 = vector.multi_reduction <add>, %106, %cst_56 [1] : vector<2x32xf32> to vector<2xf32>
    %108 = vector.shape_cast %107 : vector<2xf32> to vector<2x1xf32>
    %c8_57 = arith.constant 8 : index
    %c0_58 = arith.constant 0 : index
    %109 = vector.load %arg4[%c8_57, %c0_58] : memref<10x512xf32, #tpu.memory_space<vmem>>, vector<1x1xf32>
    %110 = vector.shape_cast %109 : vector<1x1xf32> to vector<1xf32>
    %111 = vector.shape_cast %110 : vector<1xf32> to vector<1x1xf32>
    %112 = vector.broadcast %111 : vector<1x1xf32> to vector<2x1xf32>
    %113 = arith.addf %108, %112 : vector<2x1xf32>
    %cst_59 = arith.constant 0.000000e+00 : f32
    %114 = vector.broadcast %cst_59 : f32 to vector<2x1xf32>
    %115 = arith.maximumf %113, %114 : vector<2x1xf32>
    %c6_60 = arith.constant 6 : index
    %c0_61 = arith.constant 0 : index
    %116 = vector.load %arg4[%c6_60, %c0_61] : memref<10x512xf32, #tpu.memory_space<vmem>>, vector<1x32xf32>
    %117 = vector.shape_cast %116 : vector<1x32xf32> to vector<32xf32>
    %118 = vector.shape_cast %117 : vector<32xf32> to vector<1x32xf32>
    %119 = vector.broadcast %115 : vector<2x1xf32> to vector<2x32xf32>
    %120 = vector.broadcast %118 : vector<1x32xf32> to vector<2x32xf32>
    %121 = arith.mulf %119, %120 : vector<2x32xf32>
    %122 = vector.shape_cast %101 : vector<32xf32> to vector<1x32xf32>
    %123 = vector.broadcast %122 : vector<1x32xf32> to vector<2x32xf32>
    %124 = arith.addf %123, %121 : vector<2x32xf32>
    %c5_62 = arith.constant 5 : index
    %c0_63 = arith.constant 0 : index
    %125 = vector.load %arg4[%c5_62, %c0_63] : memref<10x512xf32, #tpu.memory_space<vmem>>, vector<1x32xf32>
    %126 = vector.shape_cast %125 : vector<1x32xf32> to vector<32xf32>
    %127 = vector.shape_cast %126 : vector<32xf32> to vector<1x32xf32>
    %128 = vector.broadcast %127 : vector<1x32xf32> to vector<2x32xf32>
    %129 = arith.mulf %99, %128 : vector<2x32xf32>
    %cst_64 = arith.constant dense<0.000000e+00> : vector<2xf32>
    %130 = vector.multi_reduction <add>, %129, %cst_64 [1] : vector<2x32xf32> to vector<2xf32>
    %131 = vector.shape_cast %130 : vector<2xf32> to vector<2x1xf32>
    %c9_65 = arith.constant 9 : index
    %c0_66 = arith.constant 0 : index
    %132 = vector.load %arg4[%c9_65, %c0_66] : memref<10x512xf32, #tpu.memory_space<vmem>>, vector<1x1xf32>
    %133 = vector.shape_cast %132 : vector<1x1xf32> to vector<1xf32>
    %134 = vector.shape_cast %133 : vector<1xf32> to vector<1x1xf32>
    %135 = vector.broadcast %134 : vector<1x1xf32> to vector<2x1xf32>
    %136 = arith.addf %131, %135 : vector<2x1xf32>
    %cst_67 = arith.constant 0.000000e+00 : f32
    %137 = vector.broadcast %cst_67 : f32 to vector<2x1xf32>
    %138 = arith.maximumf %136, %137 : vector<2x1xf32>
    %c7_68 = arith.constant 7 : index
    %c0_69 = arith.constant 0 : index
    %139 = vector.load %arg4[%c7_68, %c0_69] : memref<10x512xf32, #tpu.memory_space<vmem>>, vector<1x32xf32>
    %140 = vector.shape_cast %139 : vector<1x32xf32> to vector<32xf32>
    %141 = vector.shape_cast %140 : vector<32xf32> to vector<1x32xf32>
    %142 = vector.broadcast %138 : vector<2x1xf32> to vector<2x32xf32>
    %143 = vector.broadcast %141 : vector<1x32xf32> to vector<2x32xf32>
    %144 = arith.mulf %142, %143 : vector<2x32xf32>
    %145 = arith.addf %124, %144 : vector<2x32xf32>
    %146 = arith.negf %145 : vector<2x32xf32>
    %147 = math.exp %146 : vector<2x32xf32>
    %cst_70 = arith.constant 1.000000e+00 : f32
    %148 = vector.broadcast %cst_70 : f32 to vector<2x32xf32>
    %149 = arith.addf %148, %147 : vector<2x32xf32>
    %150 = arith.divf %148, %149 : vector<2x32xf32>
    %151 = tpu.concatenate %150, %150 in 1 : vector<2x32xf32>, vector<2x32xf32> -> vector<2x64xf32>
    %152 = tpu.concatenate %151, %151 in 1 : vector<2x64xf32>, vector<2x64xf32> -> vector<2x128xf32>
    %153 = tpu.concatenate %152, %152 in 1 : vector<2x128xf32>, vector<2x128xf32> -> vector<2x256xf32>
    %154 = tpu.concatenate %153, %153 in 1 : vector<2x256xf32>, vector<2x256xf32> -> vector<2x512xf32>
    %155 = vector.shape_cast %154 : vector<2x512xf32> to vector<2x1x512xf32>
    %156 = vector.broadcast %155 : vector<2x1x512xf32> to vector<2x16x512xf32>
    %157 = arith.mulf %84, %156 : vector<2x16x512xf32>
    %158 = vector.shape_cast %157 : vector<2x16x512xf32> to vector<32x512xf32>
    %159 = arith.truncf %158 : vector<32x512xf32> to vector<32x512xbf16>
    %c0_71 = arith.constant 0 : index
    %c0_72 = arith.constant 0 : index
    %160 = vector.load %arg3[%c0_71, %c0_72] : memref<512x128xbf16, #tpu.memory_space<vmem>>, vector<512x128xbf16>
    %cst_73 = arith.constant dense<0.000000e+00> : vector<32x128xf32>
    %161 = tpu.matmul %159, %160, %cst_73 {dimension_numbers = #tpu.dot_dimension_numbers<[1], [0], [0], [1], [0, 0, 1, 1], [], []>} : vector<32x512xbf16>, vector<512x128xbf16>, vector<32x128xf32> -> vector<32x128xf32>
    %c2_74 = arith.constant 2 : index
    %c0_75 = arith.constant 0 : index
    %162 = vector.load %arg4[%c2_74, %c0_75] : memref<10x512xf32, #tpu.memory_space<vmem>>, vector<1x128xf32>
    %163 = vector.shape_cast %162 : vector<1x128xf32> to vector<128xf32>
    %164 = vector.shape_cast %163 : vector<128xf32> to vector<1x128xf32>
    %165 = vector.broadcast %164 : vector<1x128xf32> to vector<32x128xf32>
    %166 = arith.addf %161, %165 : vector<32x128xf32>
    %167 = arith.addf %166, %1 : vector<32x128xf32>
    %168 = vector.shape_cast %167 : vector<32x128xf32> to vector<2x16x128xf32>
    %c0_76 = arith.constant 0 : index
    %c0_77 = arith.constant 0 : index
    %c0_78 = arith.constant 0 : index
    %169 = vector.load %arg5[%c0_76, %c0_77, %c0_78] : memref<2x16x128xf32, #tpu.memory_space<vmem>>, vector<2x16x128xf32>
    tpu.vector_store %arg5[%c0_76, %c0_77, %c0_78], %168 {strides = array<i32>} : memref<2x16x128xf32, #tpu.memory_space<vmem>>, vector<2x16x128xf32>,
    return
  }
}

</mosaic_0001>

<bundles_post_ra>
// kernel: mbconv_forward.1
= control target key start
LH: loop header
LB: loop body
LE: loop exit
PB: predicated region body
PF: predicated region fallthrough
CT: control target
= control target key end

     0   :  { %v61_v0 = vlaneseq  ;;  %v3662_v2 = vmov 0   ;;  %v3663_v3 = vmov 0.0   ;;  %s3664_s13 = smov 32   ;;  %s3665_s25 = smov 96   ;;  %vm752_vm0 = vcmask 261120   ;;  %s6592_s1 = inlined_call_operand.vmem [shape: bf16[128,512], index: 1, kind: input, shape index: {}]   ;;  %s6593_s2 = inlined_call_operand.vmem [shape: f32[9,512], index: 2, kind: input, shape index: {}]   ;;  %s6594_s0 = inlined_call_operand.vmem [shape: f32[2,16,128], index: 0, kind: input, shape index: {}]   ;;  %s6595_s4 = inlined_call_operand.vmem [shape: f32[10,512], index: 4, kind: input, shape index: {}]   ;;  %s6596_s3 = inlined_call_operand.vmem [shape: bf16[512,128], index: 3, kind: input, shape index: {}]   ;;  %s6597_s5 = inlined_call_operand.vmem [shape: f32[2,16,128], index: 5, kind: output, shape index: {}]  }
   0x1   :  { %v3545_v1 = vld [vmem:[%s6592_s1 + $0x4] ss:$16 sps:$4 sm:$0xff]   ;;  %273 = vmatprep.mubr.bf16.mxu0 %v3662_v2  ;;  %326 = vmatprep.mubr.bf16.mxu1 %v3662_v2  ;;  %388 = vst [vmem:[#allocation2 + $0xc8] sm:$0xff] %v3663_v3  ;;  %363 = vst [vmem:[#allocation2] sm:$0xff] %v3663_v3  ;;  %v3547_v4 = vld [vmem:[%s6592_s1 + $0xc] ss:$16 sps:$4 sm:$0xff]  }
   0x2   :  { %364 = vst [vmem:[#allocation2 + $0x8] sm:$0xff] %v3663_v3  ;;  %365 = vst [vmem:[#allocation2 + $0x10] sm:$0xff] %v3663_v3  ;;  %v3706_v5 = vshrl.u32 %v61_v0, 7  ;;  %3544 = vset.pattern.permute.xlu1 %v3662_v2  ;;  %3543 = vset.pattern.permute.xlu0 %v3662_v2  ;;  %v3549_v6 = vld [vmem:[%s6592_s1] ss:$16 sps:$4 sm:$0xff]   ;;  %v22_v51 = vld [vmem:[%s6594_s0 + $0x8] sm:$0xff] }
   0x3   :  { %366 = vst [vmem:[#allocation2 + $0x18] sm:$0xff] %v3663_v3  ;;  %367 = vst [vmem:[#allocation2 + $0x20] sm:$0xff] %v3663_v3  ;;  %241 = vmatprep.subr.bf16.mxu0 %v3545_v1  ;;  %v3550_v7 = vld [vmem:[%s6592_s1 + $0x8] ss:$16 sps:$4 sm:$0xff]   ;;  %294 = vmatprep.subr.bf16.mxu1 %v3547_v4  ;;  %v3551_v11 = vld [vmem:[%s6592_s1 + $0x24] ss:$16 sps:$4 sm:$0xff]  }
   0x4   :  { %368 = vst [vmem:[#allocation2 + $0x28] sm:$0xff] %v3663_v3  ;;  %369 = vst [vmem:[#allocation2 + $0x30] sm:$0xff] %v3663_v3  ;;  %v3717_v8 = vsub.s32 2, %v3706_v5  ;;  %v3440_v9 = vld [vmem:[%s6593_s2 + $0x2] ss:$8 sm:$0xf]  ;;  %242 = vmatpush1.bf16.msra.mxu0 %v3549_v6  ;;  %295 = vmatpush1.bf16.msra.mxu1 %v3550_v7 }
   0x5   :  { %374 = vst [vmem:[#allocation2 + $0x58] sm:$0xff] %v3663_v3  ;;  %375 = vst [vmem:[#allocation2 + $0x60] sm:$0xff] %v3663_v3  ;;  %v3723_v10 = vsub.s32 0, %v3706_v5  ;;  %v3729_v12 = vsub.s32 3, %v3706_v5  ;;  %v3732_v13 = vsub.s32 1, %v3706_v5  ;;  %243 = vmatprep.subr.bf16.mxu0 %v3551_v11  ;;  %v21_v50 = vld [vmem:[%s6594_s0] sm:$0xff] }
   0x6   :  { %380 = vst [vmem:[#allocation2 + $0x88] sm:$0xff] %v3663_v3  ;;  %381 = vst [vmem:[#allocation2 + $0x90] sm:$0xff] %v3663_v3  ;;  %v739_v14 = vrot.slane %v3440_v9, %v3717_v8  ;;  %v3553_v16 = vld [vmem:[%s6592_s1 + $0x2c] ss:$16 sps:$4 sm:$0xff]   ;;  %v3555_v17 = vld [vmem:[%s6592_s1 + $0x20] ss:$16 sps:$4 sm:$0xff]   ;;  %v25_v54 = vpack.c.bf16 %v22_v51, %v21_v50 }
   0x7   :  { %382 = vst [vmem:[#allocation2 + $0x98] sm:$0xff] %v3663_v3  ;;  %383 = vst [vmem:[#allocation2 + $0xa0] sm:$0xff] %v3663_v3  ;;  %v731_v15 = vrot.slane %v3440_v9, %v3723_v10  ;;  %v3556_v18 = vld [vmem:[%s6592_s1 + $0x28] ss:$16 sps:$4 sm:$0xff]   ;;  %v3557_v19 = vld [vmem:[%s6592_s1 + $0x44] ss:$16 sps:$4 sm:$0xff]   ;;  %v743_v20 = vrot.slane %v3440_v9, %v3729_v12  ;;  %296 = vmatprep.subr.bf16.mxu1 %v3553_v16  ;;  %v735_v24 = vrot.slane %v3440_v9, %v3732_v13 }
   0x8   :  { %384 = vst [vmem:[#allocation2 + $0xa8] sm:$0xff] %v3663_v3  ;;  %385 = vst [vmem:[#allocation2 + $0xb0] sm:$0xff] %v3663_v3  ;;  %748 = vrot.lane.b32.xlu0 %v739_v14, %s3664_s13  ;;  %244 = vmatpush1.bf16.msra.mxu0 %v3555_v17  ;;  %v3559_v21 = vld [vmem:[%s6592_s1 + $0x4c] ss:$16 sps:$4 sm:$0xff]   ;;  %v3561_v22 = vld [vmem:[%s6592_s1 + $0x40] ss:$16 sps:$4 sm:$0xff]  }
   0x9   :  { %386 = vst [vmem:[#allocation2 + $0xb8] sm:$0xff] %v3663_v3  ;;  %387 = vst [vmem:[#allocation2 + $0xc0] sm:$0xff] %v3663_v3  ;;  %744 = vrot.lane.b32.xlu1 %v731_v15, %s3664_s13  ;;  %v3562_v23 = vld [vmem:[%s6592_s1 + $0x48] ss:$16 sps:$4 sm:$0xff]   ;;  %297 = vmatpush1.bf16.msra.mxu1 %v3556_v18  ;;  %v3563_v25 = vld [vmem:[%s6592_s1 + $0x64] ss:$16 sps:$4 sm:$0xff]  }
   0xa   :  { %389 = vst [vmem:[#allocation2 + $0xd0] sm:$0xff] %v3663_v3  ;;  %390 = vst [vmem:[#allocation2 + $0xd8] sm:$0xff] %v3663_v3  ;;  %245 = vmatprep.subr.bf16.mxu0 %v3557_v19  ;;  %298 = vmatprep.subr.bf16.mxu1 %v3559_v21  ;;  %v3565_v26 = vld [vmem:[%s6592_s1 + $0x6c] ss:$16 sps:$4 sm:$0xff]   ;;  %v3567_v27 = vld [vmem:[%s6592_s1 + $0x60] ss:$16 sps:$4 sm:$0xff]  }
   0xb   :  { %391 = vst [vmem:[#allocation2 + $0xe0] sm:$0xff] %v3663_v3  ;;  %392 = vst [vmem:[#allocation2 + $0xe8] sm:$0xff] %v3663_v3  ;;  %v3568_v28 = vld [vmem:[%s6592_s1 + $0x68] ss:$16 sps:$4 sm:$0xff]   ;;  %v3569_v29 = vld [vmem:[%s6592_s1 + $0x84] ss:$16 sps:$4 sm:$0xff]  }
   0xc   :  { %393 = vst [vmem:[#allocation2 + $0xf0] sm:$0xff] %v3663_v3  ;;  %398 = vst [vmem:[#allocation2 + $0x118] sm:$0xff] %v3663_v3  ;;  %750 = vrot.lane.b32.xlu0 %v743_v20, %s3664_s13  ;;  %246 = vmatpush1.bf16.msra.mxu0 %v3561_v22  ;;  %v3571_v30 = vld [vmem:[%s6592_s1 + $0x8c] ss:$16 sps:$4 sm:$0xff]   ;;  %v3573_v31 = vld [vmem:[%s6592_s1 + $0x80] ss:$16 sps:$4 sm:$0xff]  }
   0xd   :  { %399 = vst [vmem:[#allocation2 + $0x120] sm:$0xff] %v3663_v3  ;;  %404 = vst [vmem:[#allocation2 + $0x148] sm:$0xff] %v3663_v3  ;;  %746 = vrot.lane.b32.xlu1 %v735_v24, %s3664_s13  ;;  %299 = vmatpush1.bf16.msra.mxu1 %v3562_v23  ;;  %v3574_v32 = vld [vmem:[%s6592_s1 + $0x88] ss:$16 sps:$4 sm:$0xff]   ;;  %v3575_v33 = vld [vmem:[%s6592_s1 + $0xa4] ss:$16 sps:$4 sm:$0xff]  }
   0xe   :  { %405 = vst [vmem:[#allocation2 + $0x150] sm:$0xff] %v3663_v3  ;;  %406 = vst [vmem:[#allocation2 + $0x158] sm:$0xff] %v3663_v3  ;;  %247 = vmatprep.subr.bf16.mxu0 %v3563_v25  ;;  %300 = vmatprep.subr.bf16.mxu1 %v3565_v26  ;;  %v3577_v34 = vld [vmem:[%s6592_s1 + $0xac] ss:$16 sps:$4 sm:$0xff]   ;;  %v3579_v35 = vld [vmem:[%s6592_s1 + $0xa0] ss:$16 sps:$4 sm:$0xff]  }
   0xf   :  { %407 = vst [vmem:[#allocation2 + $0x160] sm:$0xff] %v3663_v3  ;;  %408 = vst [vmem:[#allocation2 + $0x168] sm:$0xff] %v3663_v3  ;;  %v3580_v36 = vld [vmem:[%s6592_s1 + $0xa8] ss:$16 sps:$4 sm:$0xff]   ;;  %v3581_v37 = vld [vmem:[%s6592_s1 + $0xc4] ss:$16 sps:$4 sm:$0xff]  }
  0x10   :  { %409 = vst [vmem:[#allocation2 + $0x170] sm:$0xff] %v3663_v3  ;;  %410 = vst [vmem:[#allocation2 + $0x178] sm:$0xff] %v3663_v3  ;;  %248 = vmatpush1.bf16.msra.mxu0 %v3567_v27  ;;  %v3583_v38 = vld [vmem:[%s6592_s1 + $0xcc] ss:$16 sps:$4 sm:$0xff]   ;;  %v3585_v40 = vld [vmem:[%s6592_s1 + $0xc0] ss:$16 sps:$4 sm:$0xff]  }
  0x11   :  { %6790 = vst [vmem:[#allocation3_spill] sm:$0xff] %v3706_v5  ;;  %6791 = vst [vmem:[#allocation4_spill] sm:$0xff] %v3717_v8  ;;  %301 = vmatpush1.bf16.msra.mxu1 %v3568_v28  ;;  %249 = vmatprep.subr.bf16.mxu0 %v3569_v29  ;;  %v3443_v39 = vld [vmem:[%s6593_s2 + $0x5] ss:$8 sm:$0xf]  ;;  %s3666_s7 = smov 64  }
  0x12   :  { %6792 = vst [vmem:[#allocation5_spill] sm:$0xff] %v3723_v10  ;;  %6793 = vst [vmem:[#allocation6_spill] sm:$0xff] %v3729_v12  ;;  %302 = vmatprep.subr.bf16.mxu1 %v3571_v30  ;;  %v1363_v41 = vrot.slane %v3443_v39, %v3717_v8  ;;  %v1367_v42 = vrot.slane %v3443_v39, %v3729_v12  ;;  %v3586_v43 = vld [vmem:[%s6592_s1 + $0xc8] ss:$16 sps:$4 sm:$0xff]   ;;  %v3587_v44 = vld [vmem:[%s6592_s1 + $0xe4] ss:$16 sps:$4 sm:$0xff]   ;;  %v1355_v46 = vrot.slane %v3443_v39, %v3723_v10 }
  0x13   :  { %6794 = vst [vmem:[#allocation7_spill] sm:$0xff] %v3732_v13  ;;  %v3589_v45 = vld [vmem:[%s6592_s1 + $0xec] ss:$16 sps:$4 sm:$0xff]   ;;  %v3446_v47 = vld [vmem:[%s6593_s2 + $0x20] ss:$8 sm:$0xf]  ;;  %v1359_v48 = vrot.slane %v3443_v39, %v3732_v13 }
  0x14   :  { %250 = vmatpush1.bf16.msra.mxu0 %v3573_v31  ;;  %1372 = vrot.lane.b32.xlu0 %v1363_v41, %s3664_s13  ;;  %v3591_v49 = vld [vmem:[%s6592_s1 + $0xe0] ss:$16 sps:$4 sm:$0xff]   ;;  %v3592_v52 = vld [vmem:[%s6592_s1 + $0xe8] ss:$16 sps:$4 sm:$0xff]   ;;  %v2105_v53 = vrot.slane %v3446_v47, %v3717_v8  ;;  %v2109_v55 = vrot.slane %v3446_v47, %v3729_v12  ;;  %v2097_v56 = vrot.slane %v3446_v47, %v3723_v10  ;;  %v443_v14 = vld [vmem:[#allocation2 + $0xc8] sm:$0x80] }
  0x15   :  { %303 = vmatpush1.bf16.msra.mxu1 %v3574_v32  ;;  %251 = vmatprep.subr.bf16.mxu0 %v3575_v33  ;;  %v2101_v57 = vrot.slane %v3446_v47, %v3732_v13  ;;  %v457_v58 = vld [vmem:[%s6593_s2] ss:$8 sm:$0xf]  ;;  %v3439_v6 = vld [vmem:[%s6593_s2 + $0x1] ss:$8 sm:$0xf] }
  0x16   :  { %304 = vmatprep.subr.bf16.mxu1 %v3577_v34  ;;  %1374 = vrot.lane.b32.xlu1 %v1367_v42, %s3664_s13  ;;  %v23_v59 = vld [vmem:[%s6594_s0 + $0x10] sm:$0xff]  ;;  %v24_v60 = vld [vmem:[%s6594_s0 + $0x18] sm:$0xff]  ;;  %v462_v61 = vrot.slane %v457_v58, %v3723_v10  ;;  %v466_v63 = vrot.slane %v457_v58, %v3732_v13  ;;  %v470_v0 = vrot.slane %v457_v58, %v3717_v8  ;;  %v446_v22 = vld [vmem:[#allocation2 + $0xe0] sm:$0x80]  ;;  %vm1051_vm1 = vcmask 1046528  }
  0x17   :  { %v26_v62 = vpack.c.bf16 %v24_v60, %v23_v59  ;;  %v474_v1 = vrot.slane %v457_v58, %v3729_v12  ;;  %v3881_v9 = vrot.slane %v3439_v6, %v3723_v10  ;;  %v3886_v15 = vrot.slane %v3439_v6, %v3732_v13  ;;  %v3888_v16 = vld [vmem:[#allocation2 + $0xd0] sm:$0x80]  ;;  %v445_v20 = vld [vmem:[#allocation2 + $0xd8] sm:$0x80]  ;;  %v3905_v25 = vld [vmem:[#allocation2 + $0x8] sm:$0x80] }
  0x18   :  { %252 = vmatpush1.bf16.msra.mxu0 %v3579_v35  ;;  %1368 = vrot.lane.b32.xlu0 %v1355_v46, %s3664_s13  ;;  %v3893_v18 = vrot.slane %v3439_v6, %v3717_v8  ;;  %v3899_v21 = vrot.slane %v3439_v6, %v3729_v12  ;;  %6795 = vst [vmem:[#allocation8_spill] sm:$0xff] %v3905_v25  ;;  %v3907_v26 = vld [vmem:[#allocation2 + $0x10] sm:$0x80]  ;;  %v3915_v29 = vld [vmem:[#allocation2 + $0x18] sm:$0x80]  ;;  %vm483_vm2 = vcmask 785408  }
  0x19   :  { %305 = vmatpush1.bf16.msra.mxu1 %v3580_v36  ;;  %253 = vmatprep.subr.bf16.mxu0 %v3581_v37  ;;  %v557_v17 = vmul.f32 %v3881_v9, %v443_v14  ;;  %v558_v19 = vmul.f32 %v3886_v15, %v3888_v16  ;;  %6796 = vst [vmem:[#allocation9_spill] sm:$0xff] %v3907_v26  ;;  %6797 = vst [vmem:[#allocation10_spill] sm:$0xff] %v3915_v29  ;;  %v3917_v30 = vld [vmem:[#allocation2 + $0x20] sm:$0x80]  ;;  %v722_v41 = vld [vmem:[#allocation2 + $0xe8] sm:$0x80] }
  0x1a   :  { %306 = vmatprep.subr.bf16.mxu1 %v3583_v38  ;;  %1370 = vrot.lane.b32.xlu1 %v1359_v48, %s3664_s13  ;;  %v559_v23 = vmul.f32 %v3893_v18, %v445_v20  ;;  %v560_v24 = vmul.f32 %v3899_v21, %v446_v22  ;;  %v545_v27 = vmul.f32 %v3881_v9, %v3905_v25  ;;  %v3444_v33 = vld [vmem:[%s6593_s2 + $0x6] ss:$8 sm:$0xf]  ;;  %v719_v42 = vld [vmem:[#allocation2 + $0x28] sm:$0x80]  ;;  %vm881_vm3 = vcmask 523264  }
  0x1b   :  { %v546_v28 = vmul.f32 %v3886_v15, %v3907_v26  ;;  %6798 = vst [vmem:[#allocation11_spill] sm:$0xff] %v3917_v30  ;;  %v547_v31 = vmul.f32 %v3893_v18, %v3915_v29  ;;  %v548_v32 = vmul.f32 %v3899_v21, %v3917_v30  ;;  %v1624_v34 = vrot.slane %v3444_v33, %v3723_v10  ;;  %v724_v47 = vld [vmem:[#allocation2 + $0x148] sm:$0x7f] }
  0x1c   :  { %254 = vmatpush1.bf16.msra.mxu0 %v3585_v40  ;;  %2114 = vrot.lane.b32.xlu0 %v2105_v53, %s3664_s13  ;;  %v1628_v35 = vrot.slane %v3444_v33, %v3732_v13  ;;  %v1632_v36 = vrot.slane %v3444_v33, %v3717_v8  ;;  %v1636_v37 = vrot.slane %v3444_v33, %v3729_v12  ;;  %v721_v48 = vld [vmem:[#allocation2 + $0x88] sm:$0x7f]  ;;  %vm1713_vm4 = vcmask 1045504  }
  0x1d   :  { %307 = vmatpush1.bf16.msra.mxu1 %v3586_v43  ;;  %255 = vmatprep.subr.bf16.mxu0 %v3587_v44  ;;  %vm2505_vm5 = vcmask 1040384   ;;  %vm2576_vm6 = vcmask 1048320   ;;  %vm2700_vm7 = vcmask 1041409   ;;  %vm2705_vm8 = vcmask 254976  }
  0x1e   :  { %308 = vmatprep.subr.bf16.mxu1 %v3589_v45  ;;  %2116 = vrot.lane.b32.xlu1 %v2109_v55, %s3664_s13 }
  0x20   :  { %256 = vmatpush1.bf16.msra.mxu0 %v3591_v49  ;;  %2110 = vrot.lane.b32.xlu0 %v2097_v56, %s3664_s13 }
  0x21   :  { %309 = vmatpush1.bf16.msra.mxu1 %v3592_v52 }
  0x22   :  { %2112 = vrot.lane.b32.xlu1 %v2101_v57, %s3664_s13 }
  0x23   :  { %274 = vmatmul.mubr.bf16.vlgmr.msra.gmra.mrb[0].mxu0 %v25_v54 }
  0x24   :  { %327 = vmatmul.mubr.bf16.vlgmr.msra.gmra.mrb[0].mxu1 %v25_v54  ;;  %283 = vmatprep.mubr.bf16.mxu0 %v3662_v2 }
  0x25   :  { %336 = vmatprep.mubr.bf16.mxu1 %v3662_v2  ;;  %475 = vrot.lane.b32.xlu0 %v462_v61, %s3665_s25  ;;  %v3441_v2 = vld [vmem:[%s6593_s2 + $0x3] ss:$8 sm:$0xf] }
  0x26   :  { %477 = vrot.lane.b32.xlu1 %v466_v63, %s3665_s25  ;;  %v982_v3 = vrot.slane %v3441_v2, %v3723_v10  ;;  %v986_v4 = vrot.slane %v3441_v2, %v3732_v13  ;;  %v990_v7 = vrot.slane %v3441_v2, %v3717_v8  ;;  %v994_v11 = vrot.slane %v3441_v2, %v3729_v12 }
  0x29   :  { %479 = vrot.lane.b32.xlu0 %v470_v0, %s3665_s25 }
  0x2a   :  { %481 = vrot.lane.b32.xlu1 %v474_v1, %s3665_s25 }
  0x2b   :  { %284 = vmatmul.mubr.bf16.gmra.mrb[4].mxu0 %v26_v62 }
  0x2c   :  { %337 = vmatmul.mubr.bf16.gmra.mrb[4].mxu1 %v26_v62 }
  0x2d   :  { %995 = vrot.lane.b32.xlu0 %v982_v3, %s3665_s25 }
  0x2e   :  { %997 = vrot.lane.b32.xlu1 %v986_v4, %s3665_s25 }
  0x31   :  { %999 = vrot.lane.b32.xlu0 %v990_v7, %s3665_s25 }
  0x32   :  { %1001 = vrot.lane.b32.xlu1 %v994_v11, %s3665_s25  ;;  %v59_v11 = vld [vmem:[%s6595_s4] ss:$8 sm:$0xf] }
  0x35   :  { %617 = vrot.lane.b32.xlu0 %v557_v17, %s3665_s25  ;;  %v4006_v17 = vrot.slane %v59_v11, %v3732_v13 }
  0x36   :  { %619 = vrot.lane.b32.xlu1 %v558_v19, %s3665_s25  ;;  %v4009_v19 = vrot.slane %v59_v11, %v3729_v12 }
  0x39   :  { %621 = vrot.lane.b32.xlu0 %v559_v23, %s3665_s25 }
  0x3a   :  { %623 = vrot.lane.b32.xlu1 %v560_v24, %s3665_s25 }
  0x3d   :  { %593 = vrot.lane.b32.xlu0 %v545_v27, %s3665_s25 }
  0x3e   :  { %595 = vrot.lane.b32.xlu1 %v546_v28, %s3665_s25 }
  0x41   :  { %597 = vrot.lane.b32.xlu0 %v547_v31, %s3665_s25 }
  0x42   :  { %599 = vrot.lane.b32.xlu1 %v548_v32, %s3665_s25 }
  0x45   :  { %1637 = vrot.lane.b32.xlu0 %v1624_v34, %s3665_s25 }
  0x46   :  { %1639 = vrot.lane.b32.xlu1 %v1628_v35, %s3665_s25 }
  0x49   :  { %1641 = vrot.lane.b32.xlu0 %v1632_v36, %s3665_s25 }
  0x4a   :  { %1643 = vrot.lane.b32.xlu1 %v1636_v37, %s3665_s25 }
  0x7a   :  { %v749_v38 = vpop.permute.xlu0 %748 }
  0x7b   :  { %v3938_v39 = vpop.permute.xlu1 %744 }
  0x7c   :  { %v776_v40 = vmul.f32 %v3938_v39, %v443_v14  ;;  %v761_v53 = vmul.f32 %v3938_v39, %v3905_v25  ;;  %v64_v14 = vrot.slane %v59_v11, %v3723_v10 }
  0x7e   :  { %851 = vrot.lane.b32.xlu0 %v776_v40, %s3666_s7  ;;  %v751_v43 = vpop.permute.xlu0 %750 }
  0x7f   :  { %v780_v44 = vmul.f32 %v751_v43, %v722_v41  ;;  %v765_v45 = vmul.f32 %v751_v43, %v719_v42  ;;  %v785_v46 = vmul.f32 0.0, %v751_v43  ;;  %v790_v49 = vmul.f32 %v751_v43, %v724_v47  ;;  %v747_v52 = vpop.permute.xlu1 %746 }
  0x80   :  { %v775_v50 = vmul.f32 %v751_v43, %v721_v48  ;;  %v3947_v51 = vsel %vm752_vm0, %v749_v38, %v751_v43  ;;  %v3956_v55 = vsel %vm752_vm0, %v3938_v39, %v747_v52  ;;  %v3959_v56 = vsel %vm752_vm0, %v747_v52, %v749_v38 }
  0x81   :  { %859 = vrot.lane.b32.xlu1 %v780_v44, %s3666_s7  ;;  %v779_v54 = vmul.f32 %v3947_v51, %v446_v22  ;;  %v777_v57 = vmul.f32 %v3956_v55, %v3888_v16  ;;  %v778_v58 = vmul.f32 %v3959_v56, %v445_v20  ;;  %v764_v60 = vmul.f32 %v3947_v51, %v3917_v30 }
  0x82   :  { %829 = vrot.lane.b32.xlu0 %v765_v45, %s3666_s7  ;;  %v762_v61 = vmul.f32 %v3956_v55, %v3907_v26  ;;  %v763_v63 = vmul.f32 %v3959_v56, %v3915_v29  ;;  %v4003_v16 = vrot.slane %v59_v11, %v3717_v8 }
  0x85   :  { %869 = vrot.lane.b32.xlu1 %v785_v46, %s3666_s7 }
  0x86   :  { %839 = vrot.lane.b32.xlu0 %v785_v46, %s3666_s7  ;;  %v3986_v1 = vpop.permute.xlu0 %1372 }
  0x88   :  { %v3966_v59 = vpop.permute.xlu1 %1374 }
  0x89   :  { %879 = vrot.lane.b32.xlu1 %v790_v49, %s3666_s7  ;;  %v1398_v62 = vmul.f32 0.0, %v3966_v59 }
  0x8a   :  { %849 = vrot.lane.b32.xlu0 %v775_v50, %s3666_s7  ;;  %v3988_v2 = vpop.permute.xlu0 %1368 }
  0x8b   :  { %v1443_v0 = vrot.slane %v1398_v62, 1 }
  0x8c   :  { %v3992_v4 = vpop.permute.xlu1 %1370 }
  0x8d   :  { %821 = vrot.lane.b32.xlu1 %v761_v53, %s3666_s7 }
  0x8e   :  { %857 = vrot.lane.b32.xlu0 %v779_v54, %s3666_s7  ;;  %v3990_v3 = vpop.permute.xlu0 %2114 }
  0x8f   :  { %6799 = vst [vmem:[#allocation12_spill] sm:$0xff] %v3990_v3 }
  0x90   :  { %v3996_v7 = vpop.permute.xlu1 %2116 }
  0x91   :  { %853 = vrot.lane.b32.xlu1 %v777_v57, %s3666_s7  ;;  %6801 = vst [vmem:[#allocation14_spill] sm:$0xff] %v3996_v7 }
  0x92   :  { %855 = vrot.lane.b32.xlu0 %v778_v58, %s3666_s7  ;;  %v3994_v6 = vpop.permute.xlu0 %2110 }
  0x93   :  { %6800 = vst [vmem:[#allocation13_spill] sm:$0xff] %v3994_v6 }
  0x94   :  { %v4011_v20 = vpop.permute.xlu1 %2112 }
  0x95   :  { %827 = vrot.lane.b32.xlu1 %v764_v60, %s3666_s7  ;;  %6802 = vst [vmem:[#allocation15_spill] sm:$0xff] %v4011_v20 }
  0x96   :  { %823 = vrot.lane.b32.xlu0 %v762_v61, %s3666_s7 }
  0x97   :  { %v4013_v22 = vpop.permute.xlu0 %475 }
  0x98   :  { %6803 = vst [vmem:[#allocation16_spill] sm:$0xff] %v4013_v22  ;;  %v4037_v52 = vpop.permute.xlu1 %477 }
  0x99   :  { %825 = vrot.lane.b32.xlu1 %v763_v63, %s3666_s7 }
  0x9a   :  { %1462 = vrot.lane.b32.xlu0 %v1443_v0, %s3666_s7 }
  0x9b   :  { %v4052_v61 = vpop.permute.xlu0 %479 }
  0x9d   :  { %1492 = vrot.lane.b32.xlu1 %v1443_v0, %s3666_s7 }
  0x9e   :  { %1482 = vrot.lane.b32.xlu0 %v1443_v0, %s3666_s7 }
  0xa1   :  { %1512 = vrot.lane.b32.xlu1 %v1443_v0, %s3666_s7 }
  0xa2   :  { %1472 = vrot.lane.b32.xlu0 %v1443_v0, %s3666_s7 }
  0xa5   :  { %1502 = vrot.lane.b32.xlu1 %v1443_v0, %s3666_s7 }
  0xf6   :  { %v275_v23 = vpop.f32.mrb[0].mxu0 }
  0xf7   :  { %v328_v24 = vpop.f32.mrb[0].mxu1  ;;  %v276_v27 = vadd.f32 %v275_v23, %v64_v14  ;;  %v277_v31 = vpop.f32.mrb[1].mxu0 }
  0xf8   :  { %v329_v28 = vadd.f32 %v328_v24, %v4003_v16  ;;  %v330_v32 = vpop.f32.mrb[1].mxu1  ;;  %v278_v33 = vadd.f32 %v277_v31, %v4006_v17  ;;  %v279_v35 = vpop.f32.mrb[2].mxu0 }
  0xf9   :  { %v331_v34 = vadd.f32 %v330_v32, %v4009_v19  ;;  %v332_v36 = vpop.f32.mrb[2].mxu1  ;;  %v4018_v37 = vmax.f32 %v276_v27, 0.0  ;;  %v280_v40 = vadd.f32 %v279_v35, %v64_v14  ;;  %v281_v42 = vpop.f32.mrb[3].mxu0 }
  0xfa   :  { %v4020_v38 = vmax.f32 %v329_v28, 0.0  ;;  %v333_v41 = vadd.f32 %v332_v36, %v4003_v16  ;;  %v334_v43 = vpop.f32.mrb[3].mxu1  ;;  %v4023_v44 = vmax.f32 %v278_v33, 0.0  ;;  %v282_v46 = vadd.f32 %v281_v42, %v4006_v17  ;;  %v4065_v36 = vpop.permute.xlu1 %481 }
  0xfb   :  { %6804 = vst [vmem:[#allocation17_spill] sm:$0xff] %v4018_v37  ;;  %v4025_v45 = vmax.f32 %v331_v34, 0.0  ;;  %v335_v47 = vadd.f32 %v334_v43, %v4009_v19  ;;  %411 = vst [vmem:[#allocation2 + $0x38] sm:$0xff] %v4018_v37  ;;  %v4031_v48 = vmax.f32 %v280_v40, 0.0  ;;  %v549_v50 = vmul.f32 %v3881_v9, %v4018_v37 }
  0xfc   :  { %6805 = vst [vmem:[#allocation18_spill] sm:$0xff] %v4020_v38  ;;  %6806 = vst [vmem:[#allocation19_spill] sm:$0xff] %v4023_v44  ;;  %v4033_v49 = vmax.f32 %v333_v41, 0.0  ;;  %v4041_v53 = vmax.f32 %v282_v46, 0.0  ;;  %v550_v57 = vmul.f32 %v3886_v15, %v4023_v44  ;;  %v551_v60 = vmul.f32 %v3893_v18, %v4020_v38 }
  0xfd   :  { %413 = vst [vmem:[#allocation2 + $0x48] sm:$0xff] %v4020_v38  ;;  %412 = vst [vmem:[#allocation2 + $0x40] sm:$0xff] %v4023_v44  ;;  %v4043_v54 = vmax.f32 %v335_v47, 0.0  ;;  %601 = vrot.lane.b32.xlu0 %v549_v50, %s3665_s25  ;;  %v552_v63 = vmul.f32 %v3899_v21, %v4025_v45 }
  0xfe   :  { %6807 = vst [vmem:[#allocation20_spill] sm:$0xff] %v4033_v49  ;;  %414 = vst [vmem:[#allocation2 + $0x50] sm:$0xff] %v4025_v45  ;;  %v285_v58 = vpop.f32.mrb[4].mxu0  ;;  %603 = vrot.lane.b32.xlu1 %v550_v57, %s3665_s25  ;;  %v766_v57 = vmul.f32 %v3938_v39, %v4018_v37 }
  0xff   :  { %6808 = vst [vmem:[#allocation21_spill] sm:$0xff] %v4043_v54  ;;  %415 = vst [vmem:[#allocation2 + $0x68] sm:$0xff] %v4031_v48  ;;  %v286_v62 = vadd.f32 %v285_v58, %v64_v14  ;;  %v338_v0 = vpop.f32.mrb[4].mxu1  ;;  %v287_v11 = vpop.f32.mrb[5].mxu0 }
 0x100   :  { %417 = vst [vmem:[#allocation2 + $0x78] sm:$0xff] %v4033_v49  ;;  %416 = vst [vmem:[#allocation2 + $0x70] sm:$0xff] %v4041_v53  ;;  %v339_v24 = vadd.f32 %v338_v0, %v4003_v16  ;;  %v288_v27 = vadd.f32 %v287_v11, %v4006_v17  ;;  %v340_v28 = vpop.f32.mrb[5].mxu1  ;;  %v289_v31 = vpop.f32.mrb[6].mxu0  ;;  %v767_v0 = vmul.f32 %v3956_v55, %v4023_v44 }
 0x101   :  { %418 = vst [vmem:[#allocation2 + $0x80] sm:$0xff] %v4043_v54  ;;  %v4059_v23 = vmax.f32 %v286_v62, 0.0  ;;  %v341_v32 = vadd.f32 %v340_v28, %v4009_v19  ;;  %v290_v33 = vadd.f32 %v289_v31, %v64_v14  ;;  %v342_v34 = vpop.f32.mrb[6].mxu1  ;;  %v291_v35 = vpop.f32.mrb[7].mxu0  ;;  %605 = vrot.lane.b32.xlu0 %v551_v60, %s3665_s25  ;;  %6809 = vst [vmem:[#allocation22_spill] sm:$0xff] %v4065_v36 }
 0x102   :  { %v4068_v40 = vmax.f32 %v339_v24, 0.0  ;;  %v4070_v41 = vmax.f32 %v288_v27, 0.0  ;;  %v343_v42 = vadd.f32 %v342_v34, %v4003_v16  ;;  %v292_v43 = vadd.f32 %v291_v35, %v4006_v17  ;;  %v344_v46 = vpop.f32.mrb[7].mxu1  ;;  %607 = vrot.lane.b32.xlu1 %v552_v63, %s3665_s25  ;;  %v4103_v63 = vpop.permute.xlu1 %997  ;;  %v3442_v24 = vld [vmem:[%s6593_s2 + $0x4] ss:$8 sm:$0xf] }
 0x103   :  { %419 = vst [vmem:[#allocation2 + $0xf8] sm:$0xff] %v4059_v23  ;;  %v4075_v14 = vmax.f32 %v341_v32, 0.0  ;;  %v4077_v47 = vmax.f32 %v290_v33, 0.0  ;;  %v345_v50 = vadd.f32 %v344_v46, %v4009_v19  ;;  %v769_v17 = vmul.f32 %v3947_v51, %v4025_v45  ;;  %v4098_v19 = vpop.permute.xlu0 %995  ;;  %6814 = vst [vmem:[#allocation27_spill] sm:$0xff] %v4103_v63 }
 0x104   :  { %421 = vst [vmem:[#allocation2 + $0x108] sm:$0xff] %v4068_v40  ;;  %420 = vst [vmem:[#allocation2 + $0x100] sm:$0xff] %v4070_v41  ;;  %v4084_v58 = vmax.f32 %v343_v42, 0.0  ;;  %v4086_v16 = vmax.f32 %v292_v43, 0.0  ;;  %v768_v62 = vmul.f32 %v3959_v56, %v4020_v38  ;;  %v1148_v28 = vrot.slane %v3442_v24, %v3723_v10 }
 0x105   :  { %422 = vst [vmem:[#allocation2 + $0x110] sm:$0xff] %v4075_v14  ;;  %423 = vst [vmem:[#allocation2 + $0x128] sm:$0xff] %v4077_v47  ;;  %v4092_v60 = vmax.f32 %v345_v50, 0.0  ;;  %831 = vrot.lane.b32.xlu0 %v766_v57, %s3666_s7  ;;  %v4133_v43 = vrot.slane %v3442_v24, %v3717_v8  ;;  %v4139_v50 = vmul.f32 %v3988_v2, %v4018_v37 }
 0x106   :  { %6810 = vst [vmem:[#allocation23_spill] sm:$0xff] %v4084_v58  ;;  %6811 = vst [vmem:[#allocation24_spill] sm:$0xff] %v4086_v16  ;;  %837 = vrot.lane.b32.xlu1 %v769_v17, %s3666_s7  ;;  %v4107_v11 = vld [vmem:[#allocation2 + $0x68] sm:$0x7f]  ;;  %v4124_v34 = vpop.permute.xlu1 %1001  ;;  %v4130_v42 = vmul.f32 %v1148_v28, %v4018_v37  ;;  %v4144_v57 = vsel %vm752_vm0, %v3992_v4, %v3986_v1  ;;  %v4181_v6 = vrot.slane %v3442_v24, %v3732_v13 }
 0x107   :  { %6812 = vst [vmem:[#allocation25_spill] sm:$0xff] %v4092_v60  ;;  %425 = vst [vmem:[#allocation2 + $0x138] sm:$0xff] %v4084_v58  ;;  %v553_v27 = vmul.f32 %v3881_v9, %v4107_v11  ;;  %v771_v31 = vmul.f32 %v3938_v39, %v4107_v11  ;;  %v4119_v32 = vpop.permute.xlu0 %999  ;;  %v4122_v33 = vld [vmem:[#allocation2 + $0x78] sm:$0x7f]  ;;  %v4160_v5 = vmul.f32 %v4144_v57, %v4020_v38 }
 0x108   :  { %424 = vst [vmem:[#allocation2 + $0x130] sm:$0xff] %v4086_v16  ;;  %6813 = vst [vmem:[#allocation26_spill] sm:$0xff] %v4098_v19  ;;  %v555_v35 = vmul.f32 %v3893_v18, %v4122_v33  ;;  %v773_v46 = vmul.f32 %v3959_v56, %v4122_v33  ;;  %v4242_v29 = vld [vmem:[#allocation2 + $0x80] sm:$0x7f]  ;;  %v4251_v3 = vmul.f32 %v4181_v6, %v4086_v16 }
 0x109   :  { %426 = vst [vmem:[#allocation2 + $0x140] sm:$0xff] %v4092_v60  ;;  %6815 = vst [vmem:[#allocation28_spill] sm:$0xff] %v4107_v11  ;;  %835 = vrot.lane.b32.xlu0 %v768_v62, %s3666_s7  ;;  %v6602_v62 = vrot.slane %v4130_v42, 1  ;;  %v4255_v7 = vmul.f32 %v4144_v57, %v4084_v58  ;;  %v1169_v19 = vmul.f32 %v1148_v28, %v4031_v48 }
 0x10a   :  { %833 = vrot.lane.b32.xlu1 %v767_v0, %s3666_s7  ;;  %6816 = vst [vmem:[#allocation29_spill] sm:$0xff] %v4119_v32  ;;  %6817 = vst [vmem:[#allocation30_spill] sm:$0xff] %v4122_v33  ;;  %v4153_v0 = vmul.f32 %v4133_v43, %v4020_v38  ;;  %v4189_v33 = vld [vmem:[#allocation2 + $0x70] sm:$0x7f]  ;;  %v4202_v38 = vsel %vm752_vm0, %v3986_v1, %v3966_v59  ;;  %v556_v30 = vmul.f32 %v3899_v21, %v4242_v29 }
 0x10b   :  { %6818 = vst [vmem:[#allocation31_spill] sm:$0xff] %v4124_v34  ;;  %v4148_v17 = vpop.permute.xlu0 %617  ;;  %6821 = vst [vmem:[#allocation34_spill] sm:$0xff] %v4189_v33  ;;  %v772_v1 = vmul.f32 %v3956_v55, %v4189_v33  ;;  %v554_v37 = vmul.f32 %v3886_v15, %v4189_v33  ;;  %v4239_v34 = vmul.f32 %v4133_v43, %v4084_v58 }
 0x10c   :  { %6819 = vst [vmem:[#allocation32_spill] sm:$0xff] %v4148_v17  ;;  %v4177_v17 = vmul.f32 %v4144_v57, %v4068_v40  ;;  %6825 = vst [vmem:[#allocation37_spill] sm:$0xff] %v4242_v29  ;;  %v4303_v25 = vmul.f32 %v4202_v38, %v4092_v60 }
 0x10d   :  { %609 = vrot.lane.b32.xlu0 %v553_v27, %s3665_s25  ;;  %v4155_v27 = vpop.permute.xlu1 %619  ;;  %v6832_v58 = vrot.slane %v4239_v34, 1 }
 0x10e   :  { %841 = vrot.lane.b32.xlu1 %v771_v31, %s3666_s7  ;;  %6820 = vst [vmem:[#allocation33_spill] sm:$0xff] %v4155_v27  ;;  %v6605_v31 = vrot.slane %v4139_v50, 1  ;;  %v6609_v27 = vrot.slane %v4153_v0, 1 }
 0x10f   :  { %v4194_v11 = vpop.permute.xlu0 %621 }
 0x110   :  { %6822 = vst [vmem:[#allocation35_spill] sm:$0xff] %v4194_v11 }
 0x111   :  { %613 = vrot.lane.b32.xlu0 %v555_v35, %s3665_s25  ;;  %v4163_v35 = vmul.f32 %v1148_v28, %v4059_v23  ;;  %v4208_v20 = vpop.permute.xlu1 %623 }
 0x112   :  { %845 = vrot.lane.b32.xlu1 %v773_v46, %s3666_s7  ;;  %v4170_v46 = vmul.f32 %v4133_v43, %v4068_v40  ;;  %6823 = vst [vmem:[#allocation36_spill] sm:$0xff] %v4208_v20 }
 0x113   :  { %v6829_v32 = vrot.slane %v4163_v35, 1 }
 0x114   :  { %v6833_v26 = vrot.slane %v4170_v46, 1 }
 0x115   :  { %1221 = vrot.lane.b32.xlu0 %v6602_v62, %s3665_s25  ;;  %v4186_v62 = vsel %vm752_vm0, %v3988_v2, %v3992_v4  ;;  %v4206_v4 = vmul.f32 %v4181_v6, %v4070_v41  ;;  %v4266_v33 = vpop.permute.xlu1 %595 }
 0x116   :  { %1454 = vrot.lane.b32.xlu1 %v6605_v31, %s3666_s7  ;;  %v4192_v31 = vrot.slane %v3442_v24, %v3729_v12  ;;  %v6824_v24 = vrot.slane %v4160_v5, 1  ;;  %v4223_v59 = vmul.f32 %v4186_v62, %v4070_v41  ;;  %v4229_v20 = vmul.f32 %v4186_v62, %v4023_v44  ;;  %6827 = vst [vmem:[#allocation39_spill] sm:$0xff] %v4266_v33 }
 0x117   :  { %v774_v33 = vmul.f32 %v3947_v51, %v4242_v29  ;;  %v4290_v36 = vsel %vm1051_vm1, %v6833_v26, %v6832_v58  ;;  %v4307_v29 = vmul.f32 %v4186_v62, %v4086_v16  ;;  %v1201_v26 = vrot.slane %v1169_v19, 1 }
 0x118   :  { %v4215_v11 = vmul.f32 %v4192_v31, %v4075_v14  ;;  %v4264_v63 = vmul.f32 %v4192_v31, %v4092_v60  ;;  %6834 = vst [vmem:[#allocation41_spill] sm:$0xff] %v4290_v36  ;;  %v4313_v58 = vmul.f32 %v4181_v6, %v4023_v44  ;;  %v6634_v19 = vrot.slane %v4303_v25, 1 }
 0x119   :  { %1225 = vrot.lane.b32.xlu0 %v6609_v27, %s3665_s25  ;;  %v4219_v27 = vmul.f32 %v4202_v38, %v4075_v14  ;;  %6838 = vst [vmem:[#allocation43_spill] sm:$0xff] %v4307_v29  ;;  %v4329_v44 = vpop.permute.xlu1 %599 }
 0x11a   :  { %1458 = vrot.lane.b32.xlu1 %v6824_v24, %s3666_s7  ;;  %v4232_v24 = vmul.f32 %v1148_v28, %v4077_v47  ;;  %6843 = vst [vmem:[#allocation46_spill] sm:$0xff] %v4329_v44  ;;  %v6844_v36 = vrot.slane %v4264_v63, 1  ;;  %v6848_v44 = vrot.slane %v4307_v29, 1 }
 0x11b   :  { %v6635_v60 = vrot.slane %v4219_v27, 1 }
 0x11d   :  { %843 = vrot.lane.b32.xlu0 %v772_v1, %s3666_s7  ;;  %v4257_v1 = vpop.permute.xlu0 %593  ;;  %v4344_v16 = vsel %vm1051_vm1, %v6635_v60, %v6634_v19  ;;  %v4360_v19 = vpop.permute.xlu1 %1639 }
 0x11e   :  { %611 = vrot.lane.b32.xlu1 %v554_v37, %s3665_s25  ;;  %6826 = vst [vmem:[#allocation38_spill] sm:$0xff] %v4257_v1  ;;  %v6828_v1 = vrot.slane %v4232_v24, 1  ;;  %v6831_v37 = vrot.slane %v4229_v20, 1  ;;  %6847 = vst [vmem:[#allocation48_spill] sm:$0xff] %v4344_v16  ;;  %v1387_v16 = vmul.f32 %v4202_v38, %v4025_v45 }
 0x120   :  { %v4277_v28 = vsel %vm1051_vm1, %v6829_v32, %v6828_v1  ;;  %v6835_v1 = vrot.slane %v4255_v7, 1  ;;  %v6839_v32 = vrot.slane %v4251_v3, 1 }
 0x121   :  { %6830 = vst [vmem:[#allocation40_spill] sm:$0xff] %v4277_v28  ;;  %1456 = vrot.lane.b32.xlu0 %v6831_v37, %s3666_s7  ;;  %v6836_v37 = vrot.slane %v4177_v17, 1 }
 0x122   :  { %615 = vrot.lane.b32.xlu1 %v556_v30, %s3665_s25  ;;  %v1171_v30 = vmul.f32 %v4133_v43, %v4033_v49  ;;  %v4326_v43 = vpop.permute.xlu0 %597 }
 0x123   :  { %v4299_v28 = vsel %vm1051_vm1, %v6836_v37, %v6835_v1  ;;  %v6840_v1 = vrot.slane %v4206_v4, 1  ;;  %6842 = vst [vmem:[#allocation45_spill] sm:$0xff] %v4326_v43  ;;  %v6849_v43 = vrot.slane %v4223_v59, 1 }
 0x124   :  { %6837 = vst [vmem:[#allocation42_spill] sm:$0xff] %v4299_v28  ;;  %v1205_v28 = vrot.slane %v1171_v30, 1  ;;  %v6852_v30 = vrot.slane %v4130_v42, 1  ;;  %v1391_v42 = vmul.f32 %v4144_v57, %v4033_v49  ;;  %v1390_v57 = vmul.f32 %v4186_v62, %v4041_v53 }
 0x125   :  { %v4320_v37 = vsel %vm1051_vm1, %v6840_v1, %v6839_v32  ;;  %1237 = vrot.lane.b32.xlu0 %v1201_v26, %s3665_s25  ;;  %v6845_v32 = vrot.slane %v4215_v11, 1 }
 0x126   :  { %6841 = vst [vmem:[#allocation44_spill] sm:$0xff] %v4320_v37  ;;  %847 = vrot.lane.b32.xlu1 %v774_v33, %s3666_s7  ;;  %v1198_v37 = vrot.slane %v4313_v58, 1  ;;  %v1168_v33 = vmul.f32 %v4192_v31, %v4025_v45  ;;  %v1202_v58 = vsel %vm1051_vm1, %v6852_v30, %v1201_v26  ;;  %v6855_v30 = vrot.slane %v4139_v50, 1 }
 0x127   :  { %v4337_v1 = vsel %vm1051_vm1, %v6845_v32, %v6844_v36  ;;  %v4354_v36 = vsel %vm1051_vm1, %v6849_v43, %v6848_v44  ;;  %v4358_v32 = vpop.permute.xlu0 %1637  ;;  %v1389_v44 = vmul.f32 %v3988_v2, %v4031_v48  ;;  %v6853_v43 = vrot.slane %v4153_v0, 1 }
 0x128   :  { %6846 = vst [vmem:[#allocation47_spill] sm:$0xff] %v4337_v1  ;;  %6850 = vst [vmem:[#allocation49_spill] sm:$0xff] %v4354_v36  ;;  %v1200_v60 = vrot.slane %v1168_v33, 1  ;;  %v1427_v1 = vrot.slane %v1387_v16, 1  ;;  %v4379_v33 = vpop.permute.xlu1 %1643  ;;  %v1433_v0 = vrot.slane %v1391_v42, 1  ;;  %v1170_v50 = vmul.f32 %v4181_v6, %v4041_v53 }
 0x129   :  { %1241 = vrot.lane.b32.xlu0 %v1205_v28, %s3665_s25  ;;  %6851 = vst [vmem:[#allocation50_spill] sm:$0xff] %v4358_v32  ;;  %v1206_v36 = vsel %vm1051_vm1, %v6853_v43, %v1205_v28  ;;  %v1429_v29 = vrot.slane %v1389_v44, 1  ;;  %6854 = vst [vmem:[#allocation51_spill] sm:$0xff] %v4379_v33  ;;  %v1431_v43 = vrot.slane %v1390_v57, 1  ;;  %v1172_v42 = vmul.f32 %v4192_v31, %v4043_v54 }
 0x12a   :  { %1223 = vrot.lane.b32.xlu1 %v1198_v37, %s3665_s25  ;;  %v563_v31 = vmul.f32 %v3893_v18, %v4068_v40 }
 0x12b   :  { %v4376_v26 = vpop.permute.xlu0 %1641  ;;  %v1207_v6 = vrot.slane %v1172_v42, 1 }
 0x12c   :  { %v4391_v28 = vpop.permute.xlu1 %859 }
 0x12d   :  { %1229 = vrot.lane.b32.xlu0 %v1202_v58, %s3665_s25  ;;  %v1430_v58 = vsel %vm1051_vm1, %v6855_v30, %v1429_v29  ;;  %6857 = vst [vmem:[#allocation53_spill] sm:$0xff] %v4391_v28  ;;  %v6904_v28 = vrot.slane %v4264_v63, 1 }
 0x12e   :  { %1227 = vrot.lane.b32.xlu1 %v1200_v60, %s3665_s25 }
 0x12f   :  { %v4387_v16 = vpop.permute.xlu0 %851 }
 0x130   :  { %6856 = vst [vmem:[#allocation52_spill] sm:$0xff] %v4387_v16  ;;  %v4407_v62 = vpop.permute.xlu1 %869  ;;  %v6902_v16 = vld [vmem:[#allocation9_spill] sm:$0xff] }
 0x131   :  { %1233 = vrot.lane.b32.xlu0 %v1206_v36, %s3665_s25  ;;  %v6858_v36 = vrot.slane %v4160_v5, 1  ;;  %v561_v5 = vmul.f32 %v3881_v9, %v4059_v23  ;;  %6859 = vst [vmem:[#allocation54_spill] sm:$0xff] %v4407_v62 }
 0x132   :  { %1460 = vrot.lane.b32.xlu1 %v1427_v1, %s3666_s7 }
 0x133   :  { %v1434_v44 = vsel %vm1051_vm1, %v6858_v36, %v1433_v0  ;;  %v4402_v30 = vpop.permute.xlu0 %829 }
 0x134   :  { %v4418_v57 = vpop.permute.xlu1 %879 }
 0x135   :  { %1464 = vrot.lane.b32.xlu0 %v1430_v58, %s3666_s7  ;;  %v1392_v58 = vmul.f32 %v4202_v38, %v4043_v54  ;;  %6861 = vst [vmem:[#allocation56_spill] sm:$0xff] %v4418_v57 }
 0x136   :  { %1474 = vrot.lane.b32.xlu1 %v1429_v29, %s3666_s7  ;;  %v1203_v29 = vrot.slane %v1170_v50, 1 }
 0x137   :  { %v1435_v36 = vrot.slane %v1392_v58, 1  ;;  %v1208_v58 = vsel %vm1051_vm1, %v1200_v60, %v1207_v6  ;;  %v6867_v60 = vrot.slane %v4229_v20, 1 }
 0x138   :  { %v1204_v50 = vsel %vm1051_vm1, %v1198_v37, %v1203_v29  ;;  %v4428_v42 = vpop.permute.xlu1 %821 }
 0x139   :  { %1468 = vrot.lane.b32.xlu0 %v1434_v44, %s3666_s7  ;;  %v784_v44 = vmul.f32 %v3947_v51, %v4075_v14  ;;  %6863 = vst [vmem:[#allocation58_spill] sm:$0xff] %v4428_v42  ;;  %v1436_v37 = vsel %vm1051_vm1, %v1427_v1, %v1435_v36  ;;  %v781_v1 = vmul.f32 %v3938_v39, %v4059_v23 }
 0x13a   :  { %1478 = vrot.lane.b32.xlu1 %v1433_v0, %s3666_s7  ;;  %v4416_v0 = vpop.permute.xlu0 %839 }
 0x13b   :  { %6860 = vst [vmem:[#allocation55_spill] sm:$0xff] %v4416_v0 }
 0x13c   :  { %v4439_v57 = vpop.permute.xlu1 %853 }
 0x13d   :  { %1476 = vrot.lane.b32.xlu0 %v1431_v43, %s3666_s7  ;;  %6865 = vst [vmem:[#allocation60_spill] sm:$0xff] %v4439_v57 }
 0x13e   :  { %1239 = vrot.lane.b32.xlu1 %v1203_v29, %s3665_s25  ;;  %v4424_v38 = vpop.permute.xlu0 %849  ;;  %v455_v29 = vld [vmem:[#allocation2 + $0x138] sm:$0x7f] }
 0x13f   :  { %6862 = vst [vmem:[#allocation57_spill] sm:$0xff] %v4424_v38 }
 0x141   :  { %625 = vrot.lane.b32.xlu0 %v561_v5, %s3665_s25  ;;  %v782_v5 = vmul.f32 %v3956_v55, %v4070_v41 }
 0x142   :  { %1243 = vrot.lane.b32.xlu1 %v1207_v6, %s3665_s25  ;;  %v4436_v62 = vpop.permute.xlu0 %857  ;;  %v1432_v6 = vsel %vm1051_vm1, %v6867_v60, %v1431_v43  ;;  %v783_v43 = vmul.f32 %v3959_v56, %v4068_v40  ;;  %v564_v40 = vmul.f32 %v3899_v21, %v4075_v14  ;;  %v454_v60 = vld [vmem:[#allocation2 + $0x130] sm:$0x7f]  ;;  %v1609_v14 = vld [vmem:[#allocation2 + $0xf8] sm:$0xfe] }
 0x143   :  { %6864 = vst [vmem:[#allocation59_spill] sm:$0xff] %v4436_v62  ;;  %v6903_v62 = vld [vmem:[#allocation11_spill] sm:$0xff] }
 0x145   :  { %629 = vrot.lane.b32.xlu0 %v563_v31, %s3665_s25  ;;  %v453_v31 = vld [vmem:[#allocation2 + $0x128] sm:$0x7f] }
 0x146   :  { %1480 = vrot.lane.b32.xlu1 %v1435_v36, %s3666_s7  ;;  %v788_v36 = vmul.f32 %v3959_v56, %v455_v29  ;;  %v4480_v56 = vmul.f32 %v3988_v2, %v4059_v23 }
 0x148   :  { %v6637_v23 = vrot.slane %v4480_v56, 1 }
 0x149   :  { %867 = vrot.lane.b32.xlu0 %v784_v44, %s3666_s7  ;;  %v565_v44 = vmul.f32 %v3881_v9, %v453_v31  ;;  %v4451_v9 = vpop.permute.xlu1 %827 }
 0x14a   :  { %1231 = vrot.lane.b32.xlu1 %v1204_v50, %s3665_s25  ;;  %v567_v50 = vmul.f32 %v3893_v18, %v455_v29 }
 0x14d   :  { %863 = vrot.lane.b32.xlu0 %v782_v5, %s3666_s7  ;;  %v4445_v5 = vpop.permute.xlu0 %855  ;;  %v4462_v20 = vpop.permute.xlu1 %825 }
 0x14e   :  { %1235 = vrot.lane.b32.xlu1 %v1208_v58, %s3665_s25  ;;  %6866 = vst [vmem:[#allocation61_spill] sm:$0xff] %v4445_v5  ;;  %v786_v58 = vmul.f32 %v3938_v39, %v453_v31 }
 0x151   :  { %633 = vrot.lane.b32.xlu0 %v565_v44, %s3665_s25  ;;  %v4459_v18 = vpop.permute.xlu0 %823  ;;  %v4470_v39 = vpop.permute.xlu1 %1492  ;;  %v562_v44 = vmul.f32 %v3886_v15, %v4070_v41 }
 0x152   :  { %1470 = vrot.lane.b32.xlu1 %v1436_v37, %s3666_s7  ;;  %6868 = vst [vmem:[#allocation62_spill] sm:$0xff] %v4470_v39  ;;  %v6869_v37 = vrot.slane %v4163_v35, 1  ;;  %v3445_v35 = vld [vmem:[%s6593_s2 + $0x7] ss:$8 sm:$0xf] }
 0x155   :  { %637 = vrot.lane.b32.xlu0 %v567_v50, %s3665_s25  ;;  %v4468_v31 = vpop.permute.xlu0 %1462  ;;  %v6871_v50 = vrot.slane %v4170_v46, 1  ;;  %v4489_v41 = vpop.permute.xlu1 %1512  ;;  %v4501_v46 = vrot.slane %v3445_v35, %v3723_v10 }
 0x156   :  { %1466 = vrot.lane.b32.xlu1 %v1432_v6, %s3666_s7  ;;  %6872 = vst [vmem:[#allocation64_spill] sm:$0xff] %v4489_v41  ;;  %v566_v6 = vmul.f32 %v3886_v15, %v454_v60 }
 0x157   :  { %6873 = vst [vmem:[#allocation65_spill] sm:$0xff] %v4501_v46 }
 0x159   :  { %871 = vrot.lane.b32.xlu0 %v786_v58, %s3666_s7  ;;  %v4484_v29 = vpop.permute.xlu0 %1482 }
 0x15a   :  { %861 = vrot.lane.b32.xlu1 %v781_v1, %s3666_s7  ;;  %6870 = vst [vmem:[#allocation63_spill] sm:$0xff] %v4484_v29  ;;  %v456_v1 = vld [vmem:[#allocation2 + $0x140] sm:$0x7f] }
 0x15b   :  { %v568_v15 = vmul.f32 %v3899_v21, %v456_v1  ;;  %v787_v21 = vmul.f32 %v3956_v55, %v454_v60  ;;  %v789_v60 = vmul.f32 %v3947_v51, %v456_v1  ;;  %v6888_v1 = vrot.slane %v4219_v27, 1  ;;  %v6917_v29 = vld [vmem:[#allocation31_spill] sm:$0xff] }
 0x15c   :  { %v6893_v27 = vrot.slane %v4232_v24, 1 }
 0x15d   :  { %875 = vrot.lane.b32.xlu0 %v788_v36, %s3666_s7  ;;  %v4504_v58 = vpop.permute.xlu0 %1472  ;;  %v4507_v36 = vmul.f32 %v4501_v46, %v1609_v14 }
 0x15e   :  { %865 = vrot.lane.b32.xlu1 %v783_v43, %s3666_s7  ;;  %6874 = vst [vmem:[#allocation66_spill] sm:$0xff] %v4504_v58  ;;  %v4509_v43 = vpop.permute.xlu1 %1502  ;;  %v6906_v58 = vld [vmem:[#allocation38_spill] sm:$0xff] }
 0x15f   :  { %6875 = vst [vmem:[#allocation67_spill] sm:$0xff] %v4509_v43  ;;  %v6885_v43 = vrot.slane %v4215_v11, 1  ;;  %v6890_v11 = vrot.slane %v4223_v59, 1 }
 0x161   :  { %1245 = vrot.lane.b32.xlu0 %v6869_v37, %s3665_s25  ;;  %v6876_v37 = vrot.slane %v4177_v17, 1 }
 0x162   :  { %627 = vrot.lane.b32.xlu1 %v562_v44, %s3665_s25  ;;  %v1611_v44 = vld [vmem:[#allocation2 + $0x108] sm:$0xfe] }
 0x165   :  { %1249 = vrot.lane.b32.xlu0 %v6871_v50, %s3665_s25 }
 0x166   :  { %631 = vrot.lane.b32.xlu1 %v564_v40, %s3665_s25  ;;  %v4516_v40 = vrot.slane %v3445_v35, %v3717_v8 }
 0x168   :  { %v4523_v14 = vmul.f32 %v4516_v40, %v1611_v44  ;;  %v6881_v44 = vrot.slane %v4206_v4, 1 }
 0x169   :  { %1484 = vrot.lane.b32.xlu0 %v6637_v23, %s3666_s7 }
 0x16a   :  { %635 = vrot.lane.b32.xlu1 %v566_v6, %s3665_s25  ;;  %v6638_v6 = vrot.slane %v4507_v36, 2 }
 0x16d   :  { %1488 = vrot.lane.b32.xlu0 %v6876_v37, %s3666_s7 }
 0x16e   :  { %639 = vrot.lane.b32.xlu1 %v568_v15, %s3665_s25  ;;  %v6639_v15 = vrot.slane %v4523_v14, 2 }
 0x16f   :  { %v4519_v50 = vpop.permute.xlu0 %601 }
 0x170   :  { %6877 = vst [vmem:[#allocation68_spill] sm:$0xff] %v4519_v50  ;;  %v4525_v23 = vpop.permute.xlu1 %603 }
 0x171   :  { %6878 = vst [vmem:[#allocation69_spill] sm:$0xff] %v4525_v23  ;;  %1959 = vrot.lane.b32.xlu0 %v6638_v6, %s3665_s25  ;;  %v6912_v23 = vld [vmem:[#allocation26_spill] sm:$0xff] }
 0x172   :  { %873 = vrot.lane.b32.xlu1 %v787_v21, %s3666_s7  ;;  %v4549_v21 = vld [vmem:[#allocation2 + $0x100] sm:$0xfe] }
 0x173   :  { %v4532_v17 = vpop.permute.xlu0 %605  ;;  %6884 = vst [vmem:[#allocation74_spill] sm:$0xff] %v4549_v21 }
 0x174   :  { %6879 = vst [vmem:[#allocation70_spill] sm:$0xff] %v4532_v17  ;;  %v4535_v37 = vpop.permute.xlu1 %607  ;;  %v6919_v17 = vld [vmem:[#allocation40_spill] sm:$0xff] }
 0x175   :  { %6880 = vst [vmem:[#allocation71_spill] sm:$0xff] %v4535_v37  ;;  %1963 = vrot.lane.b32.xlu0 %v6639_v15, %s3665_s25  ;;  %v4555_v15 = vrot.slane %v3445_v35, %v3732_v13 }
 0x176   :  { %1247 = vrot.lane.b32.xlu1 %v6881_v44, %s3665_s25  ;;  %v4568_v44 = vld [vmem:[#allocation2 + $0x110] sm:$0xfe] }
 0x177   :  { %v4543_v55 = vpop.permute.xlu0 %831  ;;  %v4563_v51 = vmul.f32 %v4555_v15, %v4549_v21  ;;  %6889 = vst [vmem:[#allocation77_spill] sm:$0xff] %v4568_v44  ;;  %v6901_v21 = vld [vmem:[#allocation8_spill] sm:$0xff] }
 0x178   :  { %6882 = vst [vmem:[#allocation72_spill] sm:$0xff] %v4543_v55  ;;  %v4546_v6 = vpop.permute.xlu1 %837  ;;  %v6907_v55 = vld [vmem:[#allocation45_spill] sm:$0xff] }
 0x179   :  { %6883 = vst [vmem:[#allocation73_spill] sm:$0xff] %v4546_v6  ;;  %877 = vrot.lane.b32.xlu0 %v789_v60, %s3666_s7  ;;  %v6648_v13 = vrot.slane %v4563_v51, 2 }
 0x17a   :  { %1251 = vrot.lane.b32.xlu1 %v6885_v43, %s3665_s25  ;;  %v4574_v43 = vrot.slane %v3445_v35, %v3729_v12  ;;  %v1399_v35 = vmul.f32 %v3988_v2, %v4077_v47  ;;  %v6895_v12 = vrot.slane %v4239_v34, 1  ;;  %v6898_v2 = vrot.slane %v4251_v3, 1 }
 0x17b   :  { %v4557_v41 = vpop.permute.xlu0 %835  ;;  %v6899_v3 = vrot.slane %v4255_v7, 1  ;;  %v2090_v7 = vld [vmem:[#allocation2 + $0x178] sm:$0x1] }
 0x17c   :  { %6886 = vst [vmem:[#allocation75_spill] sm:$0xff] %v4557_v41  ;;  %v4559_v4 = vpop.permute.xlu1 %833  ;;  %v4583_v10 = vmul.f32 %v4574_v43, %v4568_v44 }
 0x17d   :  { %6887 = vst [vmem:[#allocation76_spill] sm:$0xff] %v4559_v4  ;;  %1490 = vrot.lane.b32.xlu0 %v6888_v1, %s3666_s7 }
 0x17e   :  { %1486 = vrot.lane.b32.xlu1 %v6890_v11, %s3666_s7  ;;  %v6649_v11 = vrot.slane %v4583_v10, 2 }
 0x17f   :  { %v4576_v60 = vpop.permute.xlu0 %609 }
 0x180   :  { %6891 = vst [vmem:[#allocation78_spill] sm:$0xff] %v4576_v60  ;;  %v4578_v8 = vpop.permute.xlu1 %841 }
 0x181   :  { %6892 = vst [vmem:[#allocation79_spill] sm:$0xff] %v4578_v8  ;;  %1261 = vrot.lane.b32.xlu0 %v6893_v27, %s3665_s25  ;;  %v1444_v27 = vrot.slane %v1399_v35, 1  ;;  %v4624_v35 = vsel %vm483_vm2, %v4037_v52, %v4052_v61  ;;  %v6935_v8 = vld [vmem:[#allocation42_spill] sm:$0xff] }
 0x182   :  { %1961 = vrot.lane.b32.xlu1 %v6648_v13, %s3665_s25  ;;  %v494_v57 = vmul.f32 %v4624_v35, %v6902_v16  ;;  %v6909_v16 = vld [vmem:[#allocation14_spill] sm:$0xff] }
 0x183   :  { %v4591_v59 = vpop.permute.xlu0 %613  ;;  %v2155_v38 = vmul.f32 %v6909_v16, %v2090_v7  ;;  %v4729_v7 = vld [vmem:[#allocation2 + $0xa8] sm:$0x1] }
 0x184   :  { %v4595_v1 = vpop.permute.xlu1 %845  ;;  %6931 = vst [vmem:[#allocation85_spill] sm:$0xff] %v4729_v7 }
 0x185   :  { %6894 = vst [vmem:[#allocation80_spill] sm:$0xff] %v4595_v1  ;;  %1265 = vrot.lane.b32.xlu0 %v6895_v12, %s3665_s25  ;;  %v2080_v12 = vld [vmem:[#allocation2 + $0x118] sm:$0xfe] }
 0x186   :  { %1965 = vrot.lane.b32.xlu1 %v6649_v11, %s3665_s25  ;;  %v4619_v11 = vsel %vm483_vm2, %v4013_v22, %v4037_v52  ;;  %v6905_v22 = vld [vmem:[#allocation39_spill] sm:$0xff]  ;;  %v4652_v50 = vmul.f32 %v6909_v16, %v2080_v12 }
 0x187   :  { %v4604_v24 = vpop.permute.xlu0 %1221  ;;  %v493_v5 = vmul.f32 %v4619_v11, %v6901_v21  ;;  %v642_v21 = vsel %vm483_vm2, %v6905_v22, %v6907_v55 }
 0x188   :  { %6896 = vst [vmem:[#allocation81_spill] sm:$0xff] %v4604_v24  ;;  %v4606_v13 = vpop.permute.xlu1 %1454  ;;  %v691_v1 = vadd.f32 %v642_v21, %v494_v57  ;;  %v4703_v57 = vsel %vm483_vm2, %v4360_v19, %v4376_v26 }
 0x189   :  { %6897 = vst [vmem:[#allocation82_spill] sm:$0xff] %v4606_v13  ;;  %1504 = vrot.lane.b32.xlu0 %v1444_v27, %s3666_s7 }
 0x18a   :  { %1263 = vrot.lane.b32.xlu1 %v6898_v2, %s3665_s25  ;;  %v6900_v2 = vld [vmem:[#allocation22_spill] sm:$0xff] }
 0x18b   :  { %v4612_v39 = vpop.permute.xlu0 %1225  ;;  %v4632_v44 = vsel %vm483_vm2, %v4052_v61, %v6900_v2  ;;  %v496_v52 = vmul.f32 %v6900_v2, %v6903_v62  ;;  %v641_v61 = vsel %vm483_vm2, %v6906_v58, %v6905_v22  ;;  %v4654_v62 = vld [vmem:[#allocation2 + $0xc8] sm:$0xff]  ;;  %v6914_v58 = vld [vmem:[#allocation29_spill] sm:$0xff]  ;;  %v6916_v22 = vld [vmem:[#allocation10_spill] sm:$0xff] }
 0x18c   :  { %v4614_v34 = vpop.permute.xlu1 %1458  ;;  %6910 = vst [vmem:[#allocation8_spill] sm:$0xff] %v4654_v62  ;;  %v2150_v63 = vmul.f32 %v4654_v62, %v6909_v16  ;;  %v495_v0 = vmul.f32 %v4632_v44, %v6916_v22  ;;  %v4675_v62 = vsel %vm483_vm2, %v6914_v58, %v6917_v29  ;;  %v690_v54 = vadd.f32 %v641_v61, %v493_v5 }
 0x18d   :  { %1508 = vrot.lane.b32.xlu0 %v6899_v3, %s3666_s7  ;;  %v1604_v3 = vld [vmem:[#allocation2 + $0x98] sm:$0x1]  ;;  %6918 = vst [vmem:[#allocation39_spill] sm:$0xff] %v4675_v62  ;;  %6926 = vst [vmem:[#allocation10_spill] sm:$0xff] %v4703_v57 }
 0x18e   :  { %1267 = vrot.lane.b32.xlu1 %v6904_v28, %s3665_s25  ;;  %v6911_v28 = vld [vmem:[#allocation27_spill] sm:$0xff]  ;;  %v4684_v22 = vmul.f32 %v4501_v46, %v1604_v3  ;;  %v4708_v61 = vrot.slane %v2150_v63, 2 }
 0x18f   :  { %v4649_v4 = vpop.permute.xlu0 %843  ;;  %v4661_v41 = vsel %vm483_vm2, %v6912_v23, %v6911_v28  ;;  %v4666_v6 = vsel %vm483_vm2, %v6911_v28, %v6914_v58  ;;  %v6920_v23 = vrot.slane %v4480_v56, 1  ;;  %v2089_v28 = vld [vmem:[#allocation2 + $0x170] sm:$0x1]  ;;  %v4689_v58 = vsel %vm483_vm2, %v4358_v32, %v4360_v19  ;;  %v4727_v63 = vld [vmem:[#allocation2 + $0xa0] sm:$0x1] }
 0x190   :  { %6908 = vst [vmem:[#allocation22_spill] sm:$0xff] %v4649_v4  ;;  %6913 = vst [vmem:[#allocation9_spill] sm:$0xff] %v4661_v41  ;;  %v4670_v12 = vpop.permute.xlu1 %611  ;;  %v4722_v19 = vsel %vm483_vm2, %v4376_v26, %v4379_v33  ;;  %v2234_v26 = vrot.slane %v2155_v38, 2  ;;  %v6936_v4 = vld [vmem:[#allocation17_spill] sm:$0xff]  ;;  %v6940_v38 = vrot.slane %v4652_v50, 2 }
 0x191   :  { %6915 = vst [vmem:[#allocation11_spill] sm:$0xff] %v4666_v6  ;;  %1253 = vrot.lane.b32.xlu0 %v6919_v17, %s3665_s25  ;;  %v1445_v37 = vsel %vm1051_vm1, %v6920_v23, %v1444_v27  ;;  %6921 = vst [vmem:[#allocation45_spill] sm:$0xff] %v4684_v22  ;;  %v6923_v17 = vld [vmem:[#allocation12_spill] sm:$0xff]  ;;  %v6925_v23 = vld [vmem:[#allocation46_spill] sm:$0xff] }
 0x192   :  { %6922 = vst [vmem:[#allocation27_spill] sm:$0xff] %v4689_v58  ;;  %1494 = vrot.lane.b32.xlu1 %v1445_v37, %s3666_s7  ;;  %v4695_v56 = vsel %vm752_vm0, %v6923_v17, %v6909_v16  ;;  %v643_v27 = vsel %vm483_vm2, %v6907_v55, %v6925_v23  ;;  %6927 = vst [vmem:[#allocation40_spill] sm:$0xff] %v4708_v61  ;;  %v883_v37 = vsel %vm881_vm3, %v4459_v18, %v4462_v20  ;;  %v6932_v17 = vld [vmem:[#allocation41_spill] sm:$0xff] }
 0x193   :  { %6924 = vst [vmem:[#allocation29_spill] sm:$0xff] %v4695_v56  ;;  %v4705_v5 = vpop.permute.xlu0 %1456  ;;  %v4717_v55 = vmul.f32 %v4501_v46, %v4077_v47  ;;  %v4725_v32 = vmul.f32 %v4695_v56, %v2089_v28  ;;  %6930 = vst [vmem:[#allocation84_spill] sm:$0xff] %v4727_v63  ;;  %v882_v16 = vsel %vm881_vm3, %v4428_v42, %v4459_v18  ;;  %v6933_v47 = vld [vmem:[#allocation19_spill] sm:$0xff] }
 0x194   :  { %v4713_v21 = vpop.permute.xlu1 %615  ;;  %v4738_v22 = vmul.f32 %v4666_v6, %v6933_v47  ;;  %v692_v28 = vadd.f32 %v643_v27, %v495_v0  ;;  %v693_v56 = vadd.f32 %v6925_v23, %v496_v52  ;;  %v4748_v18 = vmul.f32 %v4661_v41, %v6936_v4  ;;  %v6938_v42 = vld [vmem:[#allocation23_spill] sm:$0xff]  ;;  %v4776_v23 = vld [vmem:[#allocation2 + $0x158] sm:$0x1] }
 0x195   :  { %6928 = vst [vmem:[#allocation46_spill] sm:$0xff] %v4713_v21  ;;  %6929 = vst [vmem:[#allocation83_spill] sm:$0xff] %v4725_v32  ;;  %1257 = vrot.lane.b32.xlu0 %v6932_v17, %s3665_s25  ;;  %v4741_v21 = vmul.f32 %v4689_v58, %v1604_v3  ;;  %v4752_v17 = vmul.f32 %v4516_v40, %v6938_v42  ;;  %v938_v47 = vadd.f32 %v883_v37, %v691_v1 }
 0x196   :  { %6934 = vst [vmem:[#allocation41_spill] sm:$0xff] %v4738_v22  ;;  %1498 = vrot.lane.b32.xlu1 %v6935_v8, %s3666_s7  ;;  %6937 = vst [vmem:[#allocation19_spill] sm:$0xff] %v4748_v18  ;;  %v4760_v0 = vsel %vm1713_vm4, %v6940_v38, %v4708_v61  ;;  %v4764_v8 = vmul.f32 %v4703_v57, %v4727_v63  ;;  %v4768_v4 = vmul.f32 %v4722_v19, %v4729_v7  ;;  %v6944_v7 = vld [vmem:[#allocation18_spill] sm:$0xff] }
 0x197   :  { %v4754_v49 = vpop.permute.xlu0 %1237  ;;  %6941 = vst [vmem:[#allocation17_spill] sm:$0xff] %v4760_v0  ;;  %v885_v42 = vsel %vm881_vm3, %v4451_v9, %v4402_v30  ;;  %v937_v1 = vadd.f32 %v882_v16, %v690_v54  ;;  %6942 = vst [vmem:[#allocation23_spill] sm:$0xff] %v4776_v23  ;;  %v6943_v37 = vrot.slane %v4303_v25, 1  ;;  %v4785_v63 = vmul.f32 %v4675_v62, %v6944_v7  ;;  %v4791_v30 = vld [vmem:[#allocation2 + $0x38] sm:$0xfe]  ;;  %v6951_v0 = vld [vmem:[#allocation24_spill] sm:$0xff] }
 0x198   :  { %6939 = vst [vmem:[#allocation42_spill] sm:$0xff] %v4754_v49  ;;  %v4773_v52 = vpop.permute.xlu1 %847  ;;  %v4789_v54 = vsel %vm1713_vm4, %v4708_v61, %v2234_v26  ;;  %6946 = vst [vmem:[#allocation86_spill] sm:$0xff] %v4791_v30  ;;  %v4793_v16 = vld [vmem:[#allocation2 + $0x40] sm:$0xfe]  ;;  %v884_v25 = vsel %vm881_vm3, %v4462_v20, %v4451_v9  ;;  %v6686_v7 = vrot.slane %v4748_v18, 1  ;;  %v4805_v26 = vmul.f32 %v6917_v29, %v4025_v45 }
 0x199   :  { %1510 = vrot.lane.b32.xlu0 %v6943_v37, %s3666_s7  ;;  %6945 = vst [vmem:[#allocation18_spill] sm:$0xff] %v4789_v54  ;;  %6947 = vst [vmem:[#allocation87_spill] sm:$0xff] %v4793_v16  ;;  %v6948_v37 = vld [vmem:[#allocation43_spill] sm:$0xff]  ;;  %v940_v61 = vadd.f32 %v885_v42, %v693_v56  ;;  %v6950_v27 = vrot.slane %v4738_v22, 1  ;;  %v4814_v9 = vmul.f32 %v4555_v15, %v6951_v0  ;;  %v6953_v56 = vrot.slane %v4507_v36, 2 }
 0x19a   :  { %v6949_v3 = vrot.slane %v6948_v37, 1  ;;  %v4818_v20 = vmul.f32 %v4501_v46, %v4776_v23  ;;  %v1113_v45 = vadd.f32 %v6686_v7, %v937_v1  ;;  %v6952_v37 = vrot.slane %v4717_v55, 2  ;;  %v6956_v7 = vld [vmem:[#allocation44_spill] sm:$0xff] }
 0x19b   :  { %v4808_v54 = vpop.permute.xlu0 %1241  ;;  %v1114_v32 = vadd.f32 %v6950_v27, %v938_v47  ;;  %v4829_v47 = vmul.f32 %v4689_v58, %v4791_v30  ;;  %v4833_v0 = vmul.f32 %v4703_v57, %v4793_v16  ;;  %v939_v27 = vadd.f32 %v884_v25, %v692_v28  ;;  %v4868_v36 = vld [vmem:[#allocation2 + $0x168] sm:$0x1] }
 0x19c   :  { %1506 = vrot.lane.b32.xlu1 %v6949_v3, %s3666_s7  ;;  %v1224_v3 = vpop.permute.xlu1 %1223  ;;  %v1920_v42 = vsel %vm1713_vm4, %v6953_v56, %v6952_v37  ;;  %v6957_v18 = vrot.slane %v4752_v17, 2  ;;  %v6958_v28 = vrot.slane %v4523_v14, 2  ;;  %v4864_v14 = vld [vmem:[#allocation2 + $0x48] sm:$0xfe]  ;;  %v6964_v16 = vrot.slane %v4805_v26, 1 }
 0x19d   :  { %6954 = vst [vmem:[#allocation43_spill] sm:$0xff] %v4829_v47  ;;  %6955 = vst [vmem:[#allocation24_spill] sm:$0xff] %v4833_v0  ;;  %v1269_v38 = vsel %vm483_vm2, %v4604_v24, %v1224_v3  ;;  %v1270_v1 = vsel %vm483_vm2, %v1224_v3, %v4612_v39  ;;  %1967 = vrot.lane.b32.xlu0 %v1920_v42, %s3665_s25  ;;  %v4849_v24 = vld [vmem:[#allocation2 + $0x160] sm:$0x1]  ;;  %v1514_v3 = vsel %vm881_vm3, %v4606_v13, %v4705_v5  ;;  %v1617_v13 = vld [vmem:[#allocation2 + $0x170] sm:$0x1] }
 0x19e   :  { %v1318_v37 = vadd.f32 %v1269_v38, %v1113_v45  ;;  %v1319_v56 = vadd.f32 %v1270_v1, %v1114_v32  ;;  %v1924_v25 = vsel %vm1713_vm4, %v6958_v28, %v6957_v18  ;;  %6959 = vst [vmem:[#allocation44_spill] sm:$0xff] %v4849_v24  ;;  %v1515_v32 = vsel %vm881_vm3, %v4705_v5, %v4614_v34  ;;  %v6961_v45 = vld [vmem:[#allocation25_spill] sm:$0xff] }
 0x19f   :  { %v4857_v38 = vpop.permute.xlu0 %1229  ;;  %v4862_v42 = vmul.f32 %v4574_v43, %v6961_v45  ;;  %v4866_v18 = vld [vmem:[#allocation2 + $0x50] sm:$0xfe]  ;;  %6962 = vst [vmem:[#allocation25_spill] sm:$0xff] %v4868_v36  ;;  %v6698_v5 = vrot.slane %v4829_v47, 2  ;;  %v1116_v46 = vadd.f32 %v6964_v16, %v940_v61  ;;  %v4893_v61 = vmul.f32 %v4722_v19, %v4864_v14  ;;  %v6968_v16 = vld [vmem:[#allocation28_spill] sm:$0xff] }
 0x1a0   :  { %1255 = vrot.lane.b32.xlu1 %v6956_v7, %s3665_s25  ;;  %6960 = vst [vmem:[#allocation88_spill] sm:$0xff] %v4857_v38  ;;  %v1569_v1 = vadd.f32 %v1514_v3, %v1318_v37  ;;  %v1570_v28 = vadd.f32 %v1515_v32, %v1319_v56  ;;  %v1228_v23 = vpop.permute.xlu1 %1227  ;;  %v6697_v38 = vrot.slane %v4833_v0, 2  ;;  %v6963_v7 = vrot.slane %v4785_v63, 1  ;;  %v6965_v56 = vld [vmem:[#allocation47_spill] sm:$0xff]  ;;  %v6969_v32 = vld [vmem:[#allocation34_spill] sm:$0xff] }
 0x1a1   :  { %v1271_v30 = vsel %vm483_vm2, %v4612_v39, %v1228_v23  ;;  %1971 = vrot.lane.b32.xlu0 %v1924_v25, %s3665_s25  ;;  %v1868_v37 = vmul.f32 %v4555_v15, %v4849_v24  ;;  %v4897_v39 = vmul.f32 %v4379_v33, %v4866_v18  ;;  %v503_v25 = vmul.f32 %v4619_v11, %v6968_v16 }
 0x1a2   :  { %v1115_v22 = vadd.f32 %v6963_v7, %v939_v27  ;;  %v4885_v3 = vadd.f32 %v6698_v5, %v1569_v1  ;;  %v4889_v27 = vadd.f32 %v6697_v38, %v1570_v28  ;;  %v504_v7 = vmul.f32 %v4624_v35, %v6969_v32 }
 0x1a3   :  { %v4903_v1 = vpop.permute.xlu0 %1233  ;;  %v1869_v28 = vmul.f32 %v4516_v40, %v4868_v36  ;;  %v1321_v5 = vadd.f32 %v1228_v23, %v1116_v46  ;;  %v6971_v24 = vrot.slane %v4563_v51, 2  ;;  %v1925_v16 = vrot.slane %v4862_v42, 2  ;;  %v6972_v51 = vld [vmem:[#allocation48_spill] sm:$0xff]  ;;  %v4927_v23 = vld [vmem:[#allocation2 + $0xb0] sm:$0x1] }
 0x1a4   :  { %1259 = vrot.lane.b32.xlu1 %v6965_v56, %s3665_s25  ;;  %6966 = vst [vmem:[#allocation47_spill] sm:$0xff] %v4885_v3  ;;  %6967 = vst [vmem:[#allocation89_spill] sm:$0xff] %v4889_v27  ;;  %v1870_v56 = vmul.f32 %v4574_v43, %v1617_v13  ;;  %v1320_v38 = vadd.f32 %v1271_v30, %v1115_v22  ;;  %v1461_v27 = vpop.permute.xlu1 %1460  ;;  %v6970_v3 = vrot.slane %v4814_v9, 2  ;;  %v6703_v30 = vrot.slane %v4893_v61, 2 }
 0x1a5   :  { %v647_v32 = vsel %vm483_vm2, %v4576_v60, %v4670_v12  ;;  %v648_v36 = vsel %vm483_vm2, %v4670_v12, %v4591_v59  ;;  %v1516_v13 = vsel %vm881_vm3, %v4614_v34, %v1461_v27  ;;  %v1517_v46 = vsel %vm881_vm3, %v1461_v27, %v4468_v31  ;;  %1500 = vrot.lane.b32.xlu0 %v6972_v51, %s3666_s7  ;;  %v6985_v60 = vld [vmem:[#allocation80_spill] sm:$0xff] }
 0x1a6   :  { %v1922_v0 = vsel %vm1713_vm4, %v6971_v24, %v6970_v3  ;;  %v1571_v24 = vadd.f32 %v1516_v13, %v1320_v38  ;;  %v1572_v22 = vadd.f32 %v1517_v46, %v1321_v5  ;;  %6973 = vst [vmem:[#allocation28_spill] sm:$0xff] %v4927_v23  ;;  %v6702_v42 = vrot.slane %v4897_v39, 2  ;;  %v2079_v13 = vld [vmem:[#allocation2 + $0x110] sm:$0xfe] }
 0x1a7   :  { %v4931_v12 = vpop.permute.xlu0 %1464  ;;  %v1927_v34 = vrot.slane %v4818_v20, 2  ;;  %v4936_v31 = vmul.f32 %v4661_v41, %v4031_v48  ;;  %v1931_v3 = vrot.slane %v1869_v28, 2  ;;  %v700_v5 = vadd.f32 %v647_v32, %v503_v25  ;;  %v6978_v20 = vld [vmem:[#allocation49_spill] sm:$0xff]  ;;  %v6980_v32 = vld [vmem:[#allocation30_spill] sm:$0xff] }
 0x1a8   :  { %1969 = vrot.lane.b32.xlu1 %v1922_v0, %s3665_s25  ;;  %6974 = vst [vmem:[#allocation34_spill] sm:$0xff] %v4931_v12  ;;  %v701_v27 = vadd.f32 %v648_v36, %v504_v7  ;;  %v4939_v0 = vpop.permute.xlu1 %1474  ;;  %v4943_v46 = vadd.f32 %v6702_v42, %v1572_v22  ;;  %v4947_v51 = vadd.f32 %v6703_v30, %v1571_v24  ;;  %v6979_v28 = vrot.slane %v4583_v10, 2  ;;  %v6981_v42 = vld [vmem:[#allocation37_spill] sm:$0xff]  ;;  %v6982_v10 = vld [vmem:[#allocation20_spill] sm:$0xff] }
 0x1a9   :  { %6975 = vst [vmem:[#allocation48_spill] sm:$0xff] %v4939_v0  ;;  %1496 = vrot.lane.b32.xlu0 %v6978_v20, %s3666_s7  ;;  %v1929_v25 = vrot.slane %v1868_v37, 2  ;;  %v1933_v36 = vrot.slane %v1870_v56, 2  ;;  %v4956_v7 = vmul.f32 %v4379_v33, %v4927_v23  ;;  %v505_v22 = vmul.f32 %v4632_v44, %v6980_v32  ;;  %v6983_v56 = vld [vmem:[#allocation22_spill] sm:$0xff] }
 0x1aa   :  { %6976 = vst [vmem:[#allocation90_spill] sm:$0xff] %v4943_v46  ;;  %6977 = vst [vmem:[#allocation91_spill] sm:$0xff] %v4947_v51  ;;  %v1926_v38 = vsel %vm1713_vm4, %v6979_v28, %v1925_v16  ;;  %v506_v24 = vmul.f32 %v6900_v2, %v6981_v42  ;;  %v4965_v20 = vmul.f32 %v4666_v6, %v4041_v53  ;;  %v6984_v28 = vld [vmem:[#allocation79_spill] sm:$0xff]  ;;  %v6986_v42 = vrot.slane %v4717_v55, 2  ;;  %v6987_v46 = vld [vmem:[#allocation29_spill] sm:$0xff] }
 0x1ab   :  { %v4969_v37 = vmul.f32 %v4675_v62, %v6982_v10  ;;  %v890_v30 = vsel %vm881_vm3, %v6984_v28, %v6983_v56  ;;  %v891_v32 = vsel %vm881_vm3, %v6983_v56, %v6985_v60  ;;  %v4977_v51 = vpop.permute.xlu0 %1468  ;;  %v4983_v6 = vmul.f32 %v6987_v46, %v2079_v13  ;;  %v6989_v56 = vld [vmem:[#allocation46_spill] sm:$0xff]  ;;  %v6992_v13 = vld [vmem:[#allocation57_spill] sm:$0xff] }
 0x1ac   :  { %1973 = vrot.lane.b32.xlu1 %v1926_v38, %s3665_s25  ;;  %v1928_v38 = vsel %vm1713_vm4, %v6986_v42, %v1927_v34  ;;  %v947_v41 = vadd.f32 %v890_v30, %v700_v5  ;;  %v948_v10 = vadd.f32 %v891_v32, %v701_v27  ;;  %v4985_v62 = vpop.permute.xlu1 %1478  ;;  %v6716_v23 = vrot.slane %v4936_v31, 1 }
 0x1ad   :  { %v6988_v28 = vrot.slane %v4752_v17, 2  ;;  %v649_v12 = vsel %vm483_vm2, %v4591_v59, %v6989_v56  ;;  %1975 = vrot.lane.b32.xlu0 %v1928_v38, %s3665_s25  ;;  %v6990_v55 = vrot.slane %v4814_v9, 2  ;;  %v5000_v30 = vmul.f32 %v4689_v58, %v4031_v48 }
 0x1ae   :  { %v5004_v5 = vmul.f32 %v4703_v57, %v4041_v53  ;;  %v6719_v17 = vrot.slane %v4965_v20, 1  ;;  %v1934_v59 = vsel %vm1713_vm4, %v1925_v16, %v1933_v36  ;;  %v6718_v9 = vrot.slane %v4969_v37, 1 }
 0x1af   :  { %v1932_v47 = vsel %vm1713_vm4, %v6988_v28, %v1931_v3  ;;  %v1930_v34 = vsel %vm1713_vm4, %v6990_v55, %v1929_v25  ;;  %v6991_v3 = vld [vmem:[#allocation21_spill] sm:$0xff]  ;;  %v892_v48 = vsel %vm881_vm3, %v6985_v60, %v4773_v52  ;;  %v893_v53 = vsel %vm881_vm3, %v4773_v52, %v6992_v13  ;;  %v1477_v25 = vpop.permute.xlu0 %1476  ;;  %v5042_v13 = vld [vmem:[#allocation2 + $0x78] sm:$0xff] }
 0x1b0   :  { %1977 = vrot.lane.b32.xlu1 %v1930_v34, %s3665_s25  ;;  %v5011_v27 = vmul.f32 %v6917_v29, %v6991_v3  ;;  %v2214_v28 = vrot.slane %v4983_v6, 2  ;;  %v2149_v16 = vmul.f32 %v6987_v46, %v6961_v45  ;;  %v702_v36 = vadd.f32 %v649_v12, %v505_v22  ;;  %v1240_v42 = vpop.permute.xlu1 %1239 }
 0x1b1   :  { %v703_v32 = vadd.f32 %v6989_v56, %v506_v24  ;;  %v1123_v38 = vadd.f32 %v6716_v23, %v947_v41  ;;  %v1124_v60 = vadd.f32 %v6719_v17, %v948_v10  ;;  %v1275_v55 = vsel %vm483_vm2, %v4754_v49, %v1240_v42  ;;  %1979 = vrot.lane.b32.xlu0 %v1932_v47, %s3665_s25  ;;  %v7007_v17 = vld [vmem:[#allocation87_spill] sm:$0xff]  ;;  %v7015_v49 = vld [vmem:[#allocation68_spill] sm:$0xff] }
 0x1b2   :  { %v1276_v52 = vsel %vm483_vm2, %v1240_v42, %v4808_v54  ;;  %v6715_v6 = vrot.slane %v5000_v30, 2  ;;  %v6714_v45 = vrot.slane %v5004_v5, 2  ;;  %v949_v12 = vadd.f32 %v892_v48, %v702_v36 }
 0x1b3   :  { %v950_v22 = vadd.f32 %v893_v53, %v703_v32  ;;  %v1328_v24 = vadd.f32 %v1275_v55, %v1123_v38  ;;  %v1329_v56 = vadd.f32 %v1276_v52, %v1124_v60  ;;  %v1522_v41 = vsel %vm881_vm3, %v4939_v0, %v1477_v25  ;;  %v5040_v34 = vpop.permute.xlu0 %625  ;;  %v7014_v0 = vld [vmem:[#allocation69_spill] sm:$0xff] }
 0x1b4   :  { %1981 = vrot.lane.b32.xlu1 %v1934_v59, %s3665_s25  ;;  %v1523_v10 = vsel %vm881_vm3, %v1477_v25, %v4985_v62  ;;  %v5046_v47 = vmul.f32 %v5042_v13, %v4722_v19  ;;  %v5050_v48 = vmul.f32 %v4379_v33, %v6991_v3  ;;  %v6717_v36 = vrot.slane %v5011_v27, 1  ;;  %v1244_v32 = vpop.permute.xlu1 %1243 }
 0x1b5   :  { %v1579_v53 = vadd.f32 %v1522_v41, %v1328_v24  ;;  %v1580_v59 = vadd.f32 %v1523_v10, %v1329_v56  ;;  %v2222_v42 = vrot.slane %v2149_v16, 2  ;;  %v1277_v25 = vsel %vm483_vm2, %v4808_v54, %v1244_v32  ;;  %2272 = vrot.lane.b32.xlu0 %v2214_v28, %s3666_s7 }
 0x1b6   :  { %v6993_v38 = vrot.slane %v4741_v21, 2  ;;  %v6994_v3 = vrot.slane %v4764_v8, 2  ;;  %v1735_v52 = vrot.slane %v4768_v4, 2  ;;  %v1126_v16 = vadd.f32 %v6717_v36, %v950_v22  ;;  %v3631_v8 = vld [vmem:[#allocation2 + $0x48] sm:$0xff]  ;;  %v7003_v36 = vld [vmem:[#allocation65_spill] sm:$0xff] }
 0x1b7   :  { %v1125_v54 = vadd.f32 %v6718_v9, %v949_v12  ;;  %v6995_v21 = vrot.slane %v4652_v50, 2  ;;  %v500_v41 = vmul.f32 %v3631_v8, %v4632_v44  ;;  %v5079_v10 = vpop.permute.xlu0 %629  ;;  %v6722_v4 = vrot.slane %v5046_v47, 2  ;;  %v3632_v12 = vld [vmem:[#allocation2 + $0x50] sm:$0xff] }
 0x1b8   :  { %v1732_v60 = vsel %vm1713_vm4, %v6715_v6, %v6993_v38  ;;  %v1734_v55 = vsel %vm1713_vm4, %v6714_v45, %v6994_v3  ;;  %6998 = vst [vmem:[#allocation37_spill] sm:$0xff] %v5079_v10  ;;  %v6723_v22 = vrot.slane %v5050_v48, 2  ;;  %v1737_v38 = vrot.slane %v4956_v7, 2  ;;  %v7001_v6 = vld [vmem:[#allocation63_spill] sm:$0xff]  ;;  %v7002_v7 = vld [vmem:[#allocation86_spill] sm:$0xff] }
 0x1b9   :  { %2274 = vrot.lane.b32.xlu1 %v6995_v21, %s3666_s7  ;;  %v5074_v24 = vadd.f32 %v1732_v60, %v1579_v53  ;;  %v5076_v56 = vadd.f32 %v1734_v55, %v1580_v59  ;;  %v501_v3 = vmul.f32 %v3632_v12, %v6900_v2  ;;  %v1330_v50 = vadd.f32 %v1277_v25, %v1125_v54  ;;  %v1481_v53 = vpop.permute.xlu1 %1480  ;;  %v6999_v60 = vld [vmem:[#allocation71_spill] sm:$0xff]  ;;  %v7000_v55 = vld [vmem:[#allocation70_spill] sm:$0xff] }
 0x1ba   :  { %v1331_v21 = vadd.f32 %v1244_v32, %v1126_v16  ;;  %v2223_v59 = vsel %vm1713_vm4, %v2214_v28, %v2222_v42  ;;  %v646_v8 = vsel %vm483_vm2, %v7000_v55, %v6999_v60  ;;  %v1524_v45 = vsel %vm881_vm3, %v4985_v62, %v1481_v53  ;;  %v7004_v28 = vld [vmem:[#allocation17_spill] sm:$0xff]  ;;  %v7005_v16 = vld [vmem:[#allocation83_spill] sm:$0xff] }
 0x1bb   :  { %6996 = vst [vmem:[#allocation49_spill] sm:$0xff] %v5074_v24  ;;  %6997 = vst [vmem:[#allocation30_spill] sm:$0xff] %v5076_v56  ;;  %v1525_v23 = vsel %vm881_vm3, %v1481_v53, %v7001_v6  ;;  %2282 = vrot.lane.b32.xlu0 %v2223_v59, %s3666_s7  ;;  %v5096_v12 = vmul.f32 %v7003_v36, %v7002_v7  ;;  %v1581_v32 = vadd.f32 %v1524_v45, %v1330_v50  ;;  %v7008_v6 = vld [vmem:[#allocation55_spill] sm:$0xff]  ;;  %v7009_v53 = vld [vmem:[#allocation73_spill] sm:$0xff] }
 0x1bc   :  { %v1582_v25 = vadd.f32 %v1525_v23, %v1331_v21  ;;  %v7006_v54 = vrot.slane %v7005_v16, 2  ;;  %v5105_v62 = vmul.f32 %v4555_v15, %v7007_v17  ;;  %v889_v59 = vsel %vm881_vm3, %v7009_v53, %v7008_v6  ;;  %v7010_v7 = vld [vmem:[#allocation75_spill] sm:$0xff]  ;;  %v5113_v23 = vpop.permute.xlu0 %867  ;;  %v3633_v6 = vld [vmem:[#allocation2 + $0x38] sm:$0xff] }
 0x1bd   :  { %2284 = vrot.lane.b32.xlu1 %v7004_v28, %s3666_s7  ;;  %v888_v45 = vsel %vm881_vm3, %v7010_v7, %v7009_v53  ;;  %7011 = vst [vmem:[#allocation20_spill] sm:$0xff] %v5113_v23  ;;  %v1736_v50 = vsel %vm1713_vm4, %v6722_v4, %v1735_v52  ;;  %v697_v17 = vadd.f32 %v646_v8, %v500_v41  ;;  %v1232_v28 = vpop.permute.xlu1 %1231  ;;  %v3634_v52 = vld [vmem:[#allocation2 + $0x40] sm:$0xff] }
 0x1be   :  { %v2233_v9 = vsel %vm1713_vm4, %v2222_v42, %v7006_v54  ;;  %v1738_v42 = vsel %vm1713_vm4, %v6723_v22, %v1737_v38  ;;  %v698_v21 = vadd.f32 %v6999_v60, %v501_v3  ;;  %v5124_v54 = vadd.f32 %v1736_v50, %v1581_v32  ;;  %v7016_v60 = vld [vmem:[#allocation18_spill] sm:$0xff]  ;;  %v7018_v50 = vld [vmem:[#allocation72_spill] sm:$0xff] }
 0x1bf   :  { %v5122_v16 = vadd.f32 %v1738_v42, %v1582_v25  ;;  %v498_v53 = vmul.f32 %v3633_v6, %v4619_v11  ;;  %v644_v56 = vsel %vm483_vm2, %v7015_v49, %v7014_v0  ;;  %v499_v4 = vmul.f32 %v3634_v52, %v4624_v35  ;;  %2292 = vrot.lane.b32.xlu0 %v2233_v9, %s3666_s7  ;;  %v7017_v25 = vld [vmem:[#allocation76_spill] sm:$0xff]  ;;  %v3636_v6 = vld [vmem:[#allocation2 + $0x70] sm:$0xff] }
 0x1c0   :  { %7013 = vst [vmem:[#allocation80_spill] sm:$0xff] %v5124_v54  ;;  %v645_v41 = vsel %vm483_vm2, %v7014_v0, %v7000_v55  ;;  %v945_v38 = vadd.f32 %v889_v59, %v698_v21  ;;  %v944_v3 = vadd.f32 %v888_v45, %v697_v17  ;;  %v5139_v8 = vmul.f32 %v4516_v40, %v4864_v14  ;;  %v5151_v9 = vpop.permute.xlu0 %863  ;;  %v3635_v59 = vld [vmem:[#allocation2 + $0x68] sm:$0xff] }
 0x1c1   :  { %7012 = vst [vmem:[#allocation22_spill] sm:$0xff] %v5122_v16  ;;  %2294 = vrot.lane.b32.xlu1 %v7016_v60, %s3666_s7  ;;  %v5143_v32 = vmul.f32 %v4574_v43, %v4866_v18  ;;  %v886_v42 = vsel %vm881_vm3, %v7018_v50, %v7017_v25  ;;  %v887_v0 = vsel %vm881_vm3, %v7017_v25, %v7010_v7  ;;  %7019 = vst [vmem:[#allocation29_spill] sm:$0xff] %v5151_v9  ;;  %v1236_v18 = vpop.permute.xlu1 %1235  ;;  %v7021_v7 = vld [vmem:[#allocation41_spill] sm:$0xff]  ;;  %v7063_v16 = vld [vmem:[#allocation26_spill] sm:$0xff] }
 0x1c2   :  { %v1895_v55 = vrot.slane %v5096_v12, 2  ;;  %v5155_v14 = vmul.f32 %v3635_v59, %v7003_v36  ;;  %v695_v45 = vadd.f32 %v644_v56, %v498_v53  ;;  %v696_v17 = vadd.f32 %v645_v41, %v499_v4  ;;  %v7064_v54 = vld [vmem:[#allocation8_spill] sm:$0xff] }
 0x1c3   :  { %v1896_v21 = vrot.slane %v5105_v62, 2  ;;  %v5159_v52 = vmul.f32 %v3636_v6, %v4555_v15  ;;  %v7020_v60 = vrot.slane %v4965_v20, 1  ;;  %v7022_v25 = vrot.slane %v7021_v7, 1  ;;  %v2088_v50 = vld [vmem:[#allocation2 + $0x168] sm:$0x1] }
 0x1c4   :  { %v7023_v12 = vrot.slane %v4969_v37, 1  ;;  %v7024_v36 = vrot.slane %v4785_v63, 1  ;;  %v7025_v4 = vrot.slane %v5011_v27, 1  ;;  %v7026_v62 = vrot.slane %v4805_v26, 1  ;;  %1935 = vrot.lane.b32.xlu0 %v1895_v55, %s3665_s25  ;;  %v7028_v37 = vld [vmem:[#allocation19_spill] sm:$0xff]  ;;  %v5185_v26 = vpop.permute.xlu0 %633 }
 0x1c5   :  { %v1062_v22 = vsel %vm1051_vm1, %v7022_v25, %v7020_v60  ;;  %v1274_v41 = vsel %vm483_vm2, %v4903_v1, %v1236_v18  ;;  %v942_v20 = vadd.f32 %v886_v42, %v695_v45  ;;  %v943_v59 = vadd.f32 %v887_v0, %v696_v17  ;;  %1937 = vrot.lane.b32.xlu1 %v1896_v21, %s3665_s25  ;;  %v1471_v0 = vpop.permute.xlu1 %1470  ;;  %v7030_v17 = vld [vmem:[#allocation88_spill] sm:$0xff] }
 0x1c6   :  { %v1064_v56 = vsel %vm1051_vm1, %v7024_v36, %v7023_v12  ;;  %v1066_v53 = vsel %vm1051_vm1, %v7026_v62, %v7025_v4  ;;  %v7027_v63 = vrot.slane %v4936_v31, 1  ;;  %v7029_v7 = vrot.slane %v7028_v37, 1 }
 0x1c7   :  { %v1121_v6 = vadd.f32 %v1066_v53, %v945_v38  ;;  %v1120_v60 = vadd.f32 %v1064_v56, %v944_v3  ;;  %v1897_v25 = vrot.slane %v5139_v8, 2  ;;  %v1898_v12 = vrot.slane %v5143_v32, 2  ;;  %v7031_v32 = vld [vmem:[#allocation66_spill] sm:$0xff] }
 0x1c8   :  { %v1060_v27 = vsel %vm1051_vm1, %v7029_v7, %v7027_v63  ;;  %v5191_v42 = vmul.f32 %v5042_v13, %v4516_v40  ;;  %v1899_v45 = vrot.slane %v5155_v14, 2  ;;  %v1901_v31 = vrot.slane %v5159_v52, 2  ;;  %v5205_v52 = vpop.permute.xlu0 %637 }
 0x1c9   :  { %v1325_v38 = vadd.f32 %v1274_v41, %v1120_v60  ;;  %v1326_v3 = vadd.f32 %v1236_v18, %v1121_v6  ;;  %v1272_v36 = vsel %vm483_vm2, %v7030_v17, %v1232_v28  ;;  %v1273_v56 = vsel %vm483_vm2, %v1232_v28, %v4903_v1  ;;  %1939 = vrot.lane.b32.xlu0 %v1897_v25, %s3665_s25  ;;  %v3637_v41 = vld [vmem:[#allocation2 + $0x80] sm:$0xff]  ;;  %v1467_v7 = vpop.permute.xlu1 %1466 }
 0x1ca   :  { %v1520_v8 = vsel %vm881_vm3, %v4977_v51, %v1471_v0  ;;  %v1521_v13 = vsel %vm881_vm3, %v1471_v0, %v7031_v32  ;;  %v1118_v18 = vadd.f32 %v1060_v27, %v942_v20  ;;  %v1119_v4 = vadd.f32 %v1062_v22, %v943_v59  ;;  %1941 = vrot.lane.b32.xlu1 %v1898_v12, %s3665_s25 }
 0x1cb   :  { %v1576_v62 = vadd.f32 %v1520_v8, %v1325_v38  ;;  %v1577_v14 = vadd.f32 %v1521_v13, %v1326_v3  ;;  %v1900_v53 = vsel %vm1713_vm4, %v1895_v55, %v1899_v45  ;;  %v1854_v1 = vmul.f32 %v3637_v41, %v4574_v43  ;;  %v7038_v38 = vld [vmem:[#allocation34_spill] sm:$0xff]  ;;  %v7040_v13 = vld [vmem:[#allocation45_spill] sm:$0xff] }
 0x1cc   :  { %v7032_v28 = vrot.slane %v5046_v47, 2  ;;  %v7033_v6 = vrot.slane %v4893_v61, 2  ;;  %v7034_v20 = vrot.slane %v5050_v48, 2  ;;  %v7035_v22 = vrot.slane %v4897_v39, 2  ;;  %v7039_v39 = vld [vmem:[#allocation84_spill] sm:$0xff]  ;;  %v5233_v8 = vpop.permute.xlu0 %871 }
 0x1cd   :  { %v1323_v63 = vadd.f32 %v1272_v36, %v1118_v18  ;;  %v1324_v37 = vadd.f32 %v1273_v56, %v1119_v4  ;;  %v1518_v47 = vsel %vm881_vm3, %v7038_v38, %v1467_v7  ;;  %v1519_v61 = vsel %vm881_vm3, %v1467_v7, %v4977_v51  ;;  %1943 = vrot.lane.b32.xlu0 %v1900_v53, %s3665_s25  ;;  %v7042_v4 = vld [vmem:[#allocation43_spill] sm:$0xff]  ;;  %v2076_v7 = vld [vmem:[#allocation2 + $0xf8] sm:$0xfe] }
 0x1ce   :  { %v1726_v60 = vsel %vm1713_vm4, %v7033_v6, %v7032_v28  ;;  %v1728_v59 = vsel %vm1713_vm4, %v7035_v22, %v7034_v20  ;;  %v1902_v48 = vsel %vm1713_vm4, %v1896_v21, %v1901_v31  ;;  %v1856_v3 = vmul.f32 %v4555_v15, %v7039_v39  ;;  %v7045_v15 = vld [vmem:[#allocation24_spill] sm:$0xff]  ;;  %v5246_v28 = vpop.permute.xlu1 %861  ;;  %v7048_v6 = vld [vmem:[#allocation85_spill] sm:$0xff]  ;;  %v2087_v38 = vld [vmem:[#allocation2 + $0x160] sm:$0x1] }
 0x1cf   :  { %v5219_v27 = vadd.f32 %v1728_v59, %v1577_v14  ;;  %v5221_v55 = vadd.f32 %v1726_v60, %v1576_v62  ;;  %v1574_v0 = vadd.f32 %v1518_v47, %v1323_v63  ;;  %v1575_v36 = vadd.f32 %v1519_v61, %v1324_v37  ;;  %1945 = vrot.lane.b32.xlu1 %v1902_v48, %s3665_s25  ;;  %v7051_v22 = vld [vmem:[#allocation28_spill] sm:$0xff]  ;;  %v7054_v39 = vld [vmem:[#allocation13_spill] sm:$0xff] }
 0x1d0   :  { %v1903_v56 = vrot.slane %v5191_v42, 2  ;;  %v1905_v32 = vrot.slane %v1854_v1, 2  ;;  %v1907_v18 = vrot.slane %v7040_v13, 2  ;;  %v7041_v51 = vrot.slane %v5000_v30, 2  ;;  %7047 = vst [vmem:[#allocation57_spill] sm:$0xff] %v5246_v28  ;;  %v5260_v63 = vpop.permute.xlu0 %875  ;;  %v2081_v48 = vld [vmem:[#allocation2 + $0x128] sm:$0xff] }
 0x1d1   :  { %7036 = vst [vmem:[#allocation46_spill] sm:$0xff] %v5219_v27  ;;  %7037 = vst [vmem:[#allocation21_spill] sm:$0xff] %v5221_v55  ;;  %v7043_v62 = vrot.slane %v7042_v4, 2  ;;  %v7044_v14 = vrot.slane %v5004_v5, 2  ;;  %v7046_v53 = vrot.slane %v7045_v15, 2  ;;  %v1857_v1 = vmul.f32 %v4516_v40, %v7048_v6  ;;  %v7058_v6 = vld [vmem:[#allocation33_spill] sm:$0xff] }
 0x1d2   :  { %v1904_v42 = vsel %vm1713_vm4, %v1897_v25, %v1903_v56  ;;  %v1906_v20 = vsel %vm1713_vm4, %v1898_v12, %v1905_v32  ;;  %v1909_v5 = vrot.slane %v1856_v3, 2  ;;  %v1858_v59 = vmul.f32 %v4574_v43, %v7051_v22  ;;  %v5262_v25 = vpop.permute.xlu1 %865  ;;  %v2077_v12 = vld [vmem:[#allocation2 + $0x100] sm:$0xfe]  ;;  %v3638_v15 = vld [vmem:[#allocation2 + $0xc8] sm:$0x80] }
 0x1d3   :  { %v1722_v21 = vsel %vm1713_vm4, %v7043_v62, %v7041_v51  ;;  %v1724_v41 = vsel %vm1713_vm4, %v7046_v53, %v7044_v14  ;;  %1947 = vrot.lane.b32.xlu0 %v1904_v42, %s3665_s25  ;;  %1949 = vrot.lane.b32.xlu1 %v1906_v20, %s3665_s25  ;;  %7052 = vst [vmem:[#allocation63_spill] sm:$0xff] %v5262_v25  ;;  %v1911_v37 = vrot.slane %v1857_v1, 2  ;;  %v7053_v43 = vld [vmem:[#allocation15_spill] sm:$0xff]  ;;  %v2082_v62 = vld [vmem:[#allocation2 + $0x130] sm:$0xff]  ;;  %v2083_v42 = vld [vmem:[#allocation2 + $0x138] sm:$0xff] }
 0x1d4   :  { %v5251_v60 = vadd.f32 %v1722_v21, %v1574_v0  ;;  %v5253_v30 = vadd.f32 %v1724_v41, %v1575_v36  ;;  %v1908_v40 = vsel %vm1713_vm4, %v1899_v45, %v1907_v18  ;;  %v1910_v47 = vsel %vm1713_vm4, %v1901_v31, %v1909_v5  ;;  %v5273_v0 = vpop.permute.xlu0 %1245  ;;  %v2078_v18 = vld [vmem:[#allocation2 + $0x108] sm:$0xfe]  ;;  %v3639_v53 = vld [vmem:[#allocation2 + $0xd0] sm:$0x80]  ;;  %v7060_v20 = vld [vmem:[#allocation35_spill] sm:$0xff] }
 0x1d5   :  { %v1913_v61 = vrot.slane %v1858_v59, 2  ;;  %v5271_v3 = vsel %vm752_vm0, %v7054_v39, %v7053_v43  ;;  %7055 = vst [vmem:[#allocation86_spill] sm:$0xff] %v5273_v0  ;;  %v2141_v45 = vmul.f32 %v7054_v39, %v2076_v7  ;;  %v1912_v13 = vsel %vm1713_vm4, %v1903_v56, %v1911_v37  ;;  %v7057_v21 = vld [vmem:[#allocation12_spill] sm:$0xff]  ;;  %v2074_v37 = vld [vmem:[#allocation2 + $0xb0] sm:$0x1] }
 0x1d6   :  { %7049 = vst [vmem:[#allocation71_spill] sm:$0xff] %v5251_v60  ;;  %7050 = vst [vmem:[#allocation70_spill] sm:$0xff] %v5253_v30  ;;  %v5276_v36 = vpop.permute.xlu1 %627  ;;  %v5280_v31 = vmul.f32 %v5271_v3, %v2077_v12  ;;  %v5285_v4 = vmul.f32 %v7054_v39, %v2081_v48  ;;  %v5290_v14 = vsel %vm752_vm0, %v7053_v43, %v7057_v21  ;;  %v3640_v7 = vld [vmem:[#allocation2 + $0xe0] sm:$0x80]  ;;  %v2071_v43 = vld [vmem:[#allocation2 + $0x98] sm:$0x1] }
 0x1d7   :  { %1951 = vrot.lane.b32.xlu0 %v1908_v40, %s3665_s25  ;;  %1953 = vrot.lane.b32.xlu1 %v1910_v47, %s3665_s25  ;;  %7056 = vst [vmem:[#allocation65_spill] sm:$0xff] %v5276_v36  ;;  %v1914_v51 = vsel %vm1713_vm4, %v1905_v32, %v1913_v61  ;;  %v508_v56 = vmul.f32 %v3638_v15, %v4619_v11  ;;  %v7059_v32 = vld [vmem:[#allocation32_spill] sm:$0xff]  ;;  %v2211_v59 = vrot.slane %v2141_v45, 2  ;;  %v2086_v15 = vld [vmem:[#allocation2 + $0x158] sm:$0x1]  ;;  %v7079_v25 = vld [vmem:[#allocation9_spill] sm:$0xff] }
 0x1d8   :  { %v509_v41 = vmul.f32 %v3639_v53, %v4624_v35  ;;  %v650_v1 = vsel %vm483_vm2, %v7059_v32, %v7058_v6  ;;  %v651_v5 = vsel %vm483_vm2, %v7058_v6, %v7060_v20  ;;  %v5301_v22 = vpop.permute.xlu0 %1249  ;;  %v2143_v40 = vmul.f32 %v5290_v14, %v2078_v18  ;;  %v2073_v53 = vld [vmem:[#allocation2 + $0xa8] sm:$0x1]  ;;  %v2065_v45 = vld [vmem:[#allocation2 + $0x58] sm:$0xfe]  ;;  %v5418_v36 = vld [vmem:[#allocation2 + $0x110] sm:$0xff] }
 0x1d9   :  { %v511_v47 = vmul.f32 %v3640_v7, %v6900_v2  ;;  %v2212_v12 = vrot.slane %v5280_v31, 2  ;;  %v5309_v48 = vmul.f32 %v5271_v3, %v2082_v62  ;;  %v5315_v18 = vmul.f32 %v5290_v14, %v2083_v42  ;;  %v7062_v62 = vld [vmem:[#allocation36_spill] sm:$0xff]  ;;  %7085 = vst [vmem:[#allocation41_spill] sm:$0xff] %v5418_v36 }
 0x1da   :  { %v5305_v61 = vpop.permute.xlu1 %631  ;;  %v5317_v6 = vadd.f32 %v650_v1, %v508_v56  ;;  %v5319_v31 = vadd.f32 %v651_v5, %v509_v41  ;;  %v652_v7 = vsel %vm483_vm2, %v7060_v20, %v7062_v62  ;;  %v2213_v42 = vrot.slane %v2143_v40, 2  ;;  %v2075_v41 = vld [vmem:[#allocation2 + $0xb8] sm:$0x1]  ;;  %v7071_v27 = vld [vmem:[#allocation16_spill] sm:$0xff] }
 0x1db   :  { %1955 = vrot.lane.b32.xlu0 %v1912_v13, %s3665_s25  ;;  %1957 = vrot.lane.b32.xlu1 %v1914_v51, %s3665_s25  ;;  %7061 = vst [vmem:[#allocation17_spill] sm:$0xff] %v5305_v61  ;;  %v2072_v13 = vld [vmem:[#allocation2 + $0xa0] sm:$0x1]  ;;  %v3641_v51 = vld [vmem:[#allocation2 + $0xd8] sm:$0x80]  ;;  %v5330_v56 = vmul.f32 %v6987_v46, %v2074_v37  ;;  %v5333_v1 = vmul.f32 %v7054_v39, %v2071_v43  ;;  %v2218_v32 = vrot.slane %v5309_v48, 2 }
 0x1dc   :  { %v510_v21 = vmul.f32 %v3641_v51, %v4632_v44  ;;  %v1011_v51 = vmul.f32 %v7064_v54, %v7063_v16  ;;  %v5327_v17 = vpop.permute.xlu0 %1484  ;;  %v5336_v20 = vmul.f32 %v5271_v3, %v2072_v13  ;;  %v708_v16 = vadd.f32 %v7062_v62, %v511_v47  ;;  %v452_v37 = vld [vmem:[#allocation2 + $0x120] sm:$0x7f]  ;;  %v7070_v62 = vld [vmem:[#allocation14_spill] sm:$0xff] }
 0x1dd   :  { %7065 = vst [vmem:[#allocation83_spill] sm:$0xff] %v5327_v17  ;;  %7066 = vst [vmem:[#allocation87_spill] sm:$0xff] %v5333_v1  ;;  %v2151_v49 = vmul.f32 %v7054_v39, %v2086_v15  ;;  %v5344_v40 = vmul.f32 %v5290_v14, %v2073_v53  ;;  %v7069_v43 = vrot.slane %v5285_v4, 2  ;;  %v2220_v13 = vrot.slane %v5315_v18, 2  ;;  %v7084_v61 = vld [vmem:[#allocation39_spill] sm:$0xff] }
 0x1de   :  { %7067 = vst [vmem:[#allocation55_spill] sm:$0xff] %v5336_v20  ;;  %v5339_v5 = vpop.permute.xlu1 %635  ;;  %v2152_v47 = vmul.f32 %v5271_v3, %v2087_v38  ;;  %v5353_v55 = vmul.f32 %v7070_v62, %v2065_v45  ;;  %v707_v48 = vadd.f32 %v652_v7, %v510_v21  ;;  %v5357_v15 = vmul.f32 %v7064_v54, %v7071_v27  ;;  %v7073_v45 = vld [vmem:[#allocation53_spill] sm:$0xff]  ;;  %v7074_v21 = vld [vmem:[#allocation59_spill] sm:$0xff]  ;;  %v7075_v38 = vld [vmem:[#allocation60_spill] sm:$0xff] }
 0x1df   :  { %2266 = vrot.lane.b32.xlu0 %v2211_v59, %s3666_s7  ;;  %2268 = vrot.lane.b32.xlu1 %v2212_v12, %s3666_s7  ;;  %7068 = vst [vmem:[#allocation73_spill] sm:$0xff] %v5344_v40  ;;  %v2217_v24 = vsel %vm1713_vm4, %v2211_v59, %v7069_v43  ;;  %v2153_v53 = vmul.f32 %v5290_v14, %v2088_v50  ;;  %v5362_v60 = vrot.slane %v1011_v51, 1  ;;  %v2226_v50 = vrot.slane %v2151_v49, 2  ;;  %v2064_v43 = vld [vmem:[#allocation2 + $0x50] sm:$0xfe] }
 0x1e0   :  { %7072 = vst [vmem:[#allocation75_spill] sm:$0xff] %v5357_v15  ;;  %v2140_v30 = vmul.f32 %v7070_v62, %v2075_v41  ;;  %v5364_v59 = vpop.permute.xlu0 %1488  ;;  %v5370_v18 = vmul.f32 %v7071_v27, %v452_v37  ;;  %v2221_v51 = vsel %vm1713_vm4, %v2213_v42, %v2220_v13  ;;  %v2228_v41 = vrot.slane %v2152_v47, 2  ;;  %v7076_v27 = vld [vmem:[#allocation52_spill] sm:$0xff] }
 0x1e1   :  { %v897_v37 = vsel %vm881_vm3, %v7074_v21, %v7073_v45  ;;  %v894_v23 = vsel %vm881_vm3, %v7076_v27, %v7075_v38  ;;  %v2230_v49 = vrot.slane %v2153_v53, 2  ;;  %v5394_v45 = vld [vmem:[#allocation2 + $0xf8] sm:$0xff]  ;;  %v7081_v53 = vld [vmem:[#allocation11_spill] sm:$0xff]  ;;  %v5422_v40 = vmul.f32 %v5418_v36, %v6917_v29 }
 0x1e2   :  { %v5372_v54 = vpop.permute.xlu1 %639  ;;  %v2209_v7 = vrot.slane %v2140_v30, 2  ;;  %v5398_v27 = vmul.f32 %v5394_v45, %v7079_v25  ;;  %v952_v1 = vadd.f32 %v894_v23, %v5317_v6 }
 0x1e3   :  { %2270 = vrot.lane.b32.xlu0 %v2213_v42, %s3666_s7  ;;  %2276 = vrot.lane.b32.xlu1 %v2217_v24, %s3666_s7  ;;  %v2219_v24 = vsel %vm1713_vm4, %v2212_v12, %v2218_v32  ;;  %v2069_v12 = vld [vmem:[#allocation2 + $0x80] sm:$0xff] }
 0x1e4   :  { %v5392_v62 = vpop.permute.xlu0 %1959  ;;  %7080 = vst [vmem:[#allocation18_spill] sm:$0xff] %v5398_v27 }
 0x1e5   :  { %7078 = vst [vmem:[#allocation69_spill] sm:$0xff] %v5392_v62  ;;  %v5412_v62 = vld [vmem:[#allocation2 + $0x108] sm:$0xff] }
 0x1e6   :  { %v5406_v9 = vpop.permute.xlu1 %873  ;;  %7083 = vst [vmem:[#allocation76_spill] sm:$0xff] %v5412_v62  ;;  %v5416_v10 = vmul.f32 %v5412_v62, %v7084_v61  ;;  %v955_v62 = vadd.f32 %v897_v37, %v708_v16  ;;  %v2231_v16 = vsel %vm1713_vm4, %v2220_v13, %v2230_v49  ;;  %v2061_v37 = vld [vmem:[#allocation2 + $0x38] sm:$0xfe]  ;;  %v5462_v49 = vsel %vm1051_vm1, %v5362_v60, %v5362_v60 }
 0x1e7   :  { %2278 = vrot.lane.b32.xlu0 %v2219_v24, %s3666_s7  ;;  %2280 = vrot.lane.b32.xlu1 %v2221_v51, %s3666_s7  ;;  %v7077_v24 = vld [vmem:[#allocation61_spill] sm:$0xff]  ;;  %v5400_v51 = vld [vmem:[#allocation2 + $0x100] sm:$0xff]  ;;  %7093 = vst [vmem:[#allocation45_spill] sm:$0xff] %v5462_v49 }
 0x1e8   :  { %v895_v42 = vsel %vm881_vm3, %v7075_v38, %v7077_v24  ;;  %v896_v47 = vsel %vm881_vm3, %v7077_v24, %v7074_v21  ;;  %v5404_v30 = vmul.f32 %v5400_v51, %v7081_v53  ;;  %v7082_v38 = vrot.slane %v5285_v4, 2  ;;  %v7098_v49 = vld [vmem:[#allocation77_spill] sm:$0xff] }
 0x1e9   :  { %v2129_v24 = vmul.f32 %v6987_v46, %v2064_v43  ;;  %v2229_v4 = vsel %vm1713_vm4, %v2218_v32, %v2228_v41  ;;  %v7087_v43 = vrot.slane %v5353_v55, 2  ;;  %v953_v28 = vadd.f32 %v895_v42, %v5319_v31  ;;  %v1608_v41 = vld [vmem:[#allocation2 + $0xf0] sm:$0xfe]  ;;  %v7094_v42 = vld [vmem:[#allocation50_spill] sm:$0xff] }
 0x1ea   :  { %v2227_v21 = vsel %vm1713_vm4, %v7082_v38, %v2226_v50  ;;  %v2134_v50 = vmul.f32 %v6987_v46, %v2069_v12  ;;  %v7086_v38 = vld [vmem:[#allocation40_spill] sm:$0xff]  ;;  %v954_v32 = vadd.f32 %v896_v47, %v707_v48  ;;  %v5440_v46 = vpop.permute.xlu0 %1963  ;;  %v1248_v23 = vpop.permute.xlu1 %1247  ;;  %v7089_v48 = vld [vmem:[#allocation23_spill] sm:$0xff]  ;;  %v5468_v31 = vmul.f32 %v7094_v42, %v1608_v41 }
 0x1eb   :  { %2286 = vrot.lane.b32.xlu0 %v2227_v21, %s3666_s7  ;;  %v5431_v20 = vsel %vm1713_vm4, %v7087_v43, %v7086_v38  ;;  %2288 = vrot.lane.b32.xlu1 %v2229_v4, %s3666_s7  ;;  %v5438_v21 = vsel %vm1713_vm4, %v7086_v38, %v2209_v7  ;;  %7088 = vst [vmem:[#allocation19_spill] sm:$0xff] %v5440_v46  ;;  %v2189_v6 = vrot.slane %v2129_v24, 2  ;;  %v3646_v4 = vld [vmem:[#allocation2 + $0xf8] sm:$0xfe]  ;;  %v7091_v38 = vld [vmem:[#allocation44_spill] sm:$0xff]  ;;  %v7097_v46 = vrot.slane %v5398_v27, 1 }
 0x1ec   :  { %v5448_v7 = vmul.f32 %v3646_v4, %v4689_v58  ;;  %v5452_v47 = vmul.f32 %v4689_v58, %v7089_v48  ;;  %v5456_v43 = vmul.f32 %v4703_v57, %v7091_v38  ;;  %v2197_v13 = vrot.slane %v2134_v50, 2  ;;  %v3647_v24 = vld [vmem:[#allocation2 + $0x128] sm:$0x7f]  ;;  %7095 = vst [vmem:[#allocation43_spill] sm:$0xff] %v5468_v31  ;;  %v7096_v48 = vld [vmem:[#allocation74_spill] sm:$0xff] }
 0x1ed   :  { %v5465_v4 = vmul.f32 %v3647_v24, %v4619_v11  ;;  %v5473_v38 = vmul.f32 %v4703_v57, %v7096_v48  ;;  %v5476_v50 = vmul.f32 %v7054_v39, %v2061_v37  ;;  %v1128_v24 = vadd.f32 %v7097_v46, %v952_v1  ;;  %v3649_v41 = vld [vmem:[#allocation2 + $0x108] sm:$0xfe]  ;;  %v2062_v58 = vld [vmem:[#allocation2 + $0x40] sm:$0xfe] }
 0x1ee   :  { %7090 = vst [vmem:[#allocation66_spill] sm:$0xff] %v5452_v47  ;;  %7092 = vst [vmem:[#allocation84_spill] sm:$0xff] %v5456_v43  ;;  %v5483_v36 = vpop.permute.xlu0 %877  ;;  %v5486_v43 = vmul.f32 %v3649_v41, %v4722_v19  ;;  %v5490_v48 = vmul.f32 %v4379_v33, %v7098_v49  ;;  %v7099_v37 = vrot.slane %v5404_v30, 1  ;;  %v7100_v29 = vrot.slane %v5416_v10, 1  ;;  %v1252_v1 = vpop.permute.xlu1 %1251 }
 0x1ef   :  { %2290 = vrot.lane.b32.xlu0 %v2231_v16, %s3666_s7  ;;  %2242 = vrot.lane.b32.xlu1 %v2189_v6, %s3666_s7  ;;  %v3648_v16 = vld [vmem:[#allocation2 + $0x130] sm:$0x7f]  ;;  %v7101_v57 = vrot.slane %v5422_v40, 1  ;;  %v1278_v41 = vsel %vm483_vm2, %v5273_v0, %v1248_v23  ;;  %v1279_v49 = vsel %vm483_vm2, %v1248_v23, %v5301_v22  ;;  %v1280_v33 = vsel %vm483_vm2, %v5301_v22, %v1252_v1 }
 0x1f0   :  { %v5479_v12 = vmul.f32 %v3648_v16, %v4624_v35  ;;  %v1129_v47 = vadd.f32 %v7099_v37, %v953_v28  ;;  %v1130_v16 = vadd.f32 %v7100_v29, %v954_v32  ;;  %v7102_v28 = vrot.slane %v5353_v55, 2 }
 0x1f1   :  { %v1131_v27 = vadd.f32 %v7101_v57, %v955_v62  ;;  %v2198_v29 = vsel %vm1713_vm4, %v2189_v6, %v2197_v13  ;;  %v7103_v62 = vrot.slane %v5330_v56, 2  ;;  %v6747_v22 = vrot.slane %v5486_v43, 2 }
 0x1f2   :  { %v1335_v57 = vadd.f32 %v1280_v33, %v1130_v16  ;;  %v1491_v0 = vpop.permute.xlu0 %1490  ;;  %v6746_v55 = vrot.slane %v5490_v48, 2  ;;  %v2066_v33 = vld [vmem:[#allocation2 + $0x68] sm:$0xff]  ;;  %v1333_v6 = vadd.f32 %v1278_v41, %v1128_v24  ;;  %v1334_v16 = vadd.f32 %v1279_v49, %v1129_v47 }
 0x1f3   :  { %2244 = vrot.lane.b32.xlu0 %v7102_v28, %s3666_s7  ;;  %2252 = vrot.lane.b32.xlu1 %v2198_v29, %s3666_s7  ;;  %v2208_v32 = vsel %vm1713_vm4, %v2197_v13, %v7103_v62  ;;  %v1336_v46 = vadd.f32 %v1252_v1, %v1131_v27  ;;  %v5518_v28 = vmul.f32 %v5271_v3, %v2062_v58  ;;  %v7104_v13 = vld [vmem:[#allocation62_spill] sm:$0xff]  ;;  %v1487_v62 = vpop.permute.xlu1 %1486  ;;  %v2063_v58 = vld [vmem:[#allocation2 + $0x48] sm:$0xfe] }
 0x1f4   :  { %v1528_v56 = vsel %vm881_vm3, %v5364_v59, %v1491_v0  ;;  %v1529_v29 = vsel %vm881_vm3, %v1491_v0, %v7104_v13  ;;  %v1526_v1 = vsel %vm881_vm3, %v5327_v17, %v1487_v62  ;;  %v1527_v37 = vsel %vm881_vm3, %v1487_v62, %v5364_v59  ;;  %v7149_v17 = vld [vmem:[#allocation64_spill] sm:$0xff] }
 0x1f5   :  { %v1586_v23 = vadd.f32 %v1528_v56, %v1335_v57  ;;  %v1587_v27 = vadd.f32 %v1529_v29, %v1336_v46  ;;  %v714_v47 = vadd.f32 %v5185_v26, %v5370_v18  ;;  %v1584_v24 = vadd.f32 %v1526_v1, %v1333_v6  ;;  %v2067_v46 = vld [vmem:[#allocation2 + $0x70] sm:$0xff] }
 0x1f6   :  { %v1585_v41 = vadd.f32 %v1527_v37, %v1334_v16  ;;  %v5534_v0 = vmul.f32 %v7054_v39, %v2066_v33  ;;  %v656_v49 = vsel %vm483_vm2, %v5185_v26, %v5339_v5  ;;  %v1262_v59 = vpop.permute.xlu0 %1261  ;;  %v7106_v37 = vrot.slane %v5448_v7, 2  ;;  %v3650_v16 = vld [vmem:[#allocation2 + $0x138] sm:$0x7f] }
 0x1f7   :  { %2254 = vrot.lane.b32.xlu0 %v5431_v20, %s3666_s7  ;;  %2262 = vrot.lane.b32.xlu1 %v2208_v32, %s3666_s7  ;;  %v657_v20 = vsel %vm483_vm2, %v5339_v5, %v5205_v52  ;;  %v5544_v18 = vadd.f32 %v6747_v22, %v1586_v23  ;;  %v5548_v57 = vadd.f32 %v6746_v55, %v1587_v27  ;;  %v5551_v32 = vpop.permute.xlu1 %1961  ;;  %v7108_v33 = vrot.slane %v5473_v38, 2  ;;  %v2068_v23 = vld [vmem:[#allocation2 + $0x78] sm:$0xff] }
 0x1f8   :  { %v961_v39 = vadd.f32 %v5233_v8, %v714_v47  ;;  %7105 = vst [vmem:[#allocation24_spill] sm:$0xff] %v5551_v32  ;;  %v5555_v26 = vadd.f32 %v7106_v37, %v1584_v24  ;;  %v5562_v6 = vmul.f32 %v5290_v14, %v2063_v58  ;;  %v520_v56 = vmul.f32 %v3650_v16, %v4632_v44  ;;  %v3651_v47 = vld [vmem:[#allocation2 + $0x128] sm:$0xff]  ;;  %v3652_v24 = vld [vmem:[#allocation2 + $0x130] sm:$0xff] }
 0x1f9   :  { %v5559_v5 = vadd.f32 %v7108_v33, %v1585_v41  ;;  %v902_v13 = vsel %vm881_vm3, %v5233_v8, %v5406_v9  ;;  %v903_v29 = vsel %vm881_vm3, %v5406_v9, %v5260_v63  ;;  %v5574_v62 = vmul.f32 %v5271_v3, %v2067_v46  ;;  %v7111_v37 = vld [vmem:[#allocation25_spill] sm:$0xff]  ;;  %v7148_v32 = vld [vmem:[#allocation20_spill] sm:$0xff] }
 0x1fa   :  { %7107 = vst [vmem:[#allocation85_spill] sm:$0xff] %v5555_v26  ;;  %v715_v27 = vadd.f32 %v656_v49, %v5465_v4  ;;  %v716_v1 = vadd.f32 %v657_v20, %v5479_v12  ;;  %v7110_v58 = vrot.slane %v5476_v50, 2  ;;  %v5582_v8 = vmul.f32 %v3651_v47, %v7079_v25 }
 0x1fb   :  { %7109 = vst [vmem:[#allocation28_spill] sm:$0xff] %v5559_v5  ;;  %2264 = vrot.lane.b32.xlu0 %v5438_v21, %s3666_s7  ;;  %v5585_v9 = vmul.f32 %v3652_v24, %v7081_v53  ;;  %v658_v3 = vsel %vm483_vm2, %v5205_v52, %v5372_v54  ;;  %v1266_v21 = vpop.permute.xlu0 %1265  ;;  %v2187_v4 = vrot.slane %v5518_v28, 2  ;;  %v2191_v12 = vrot.slane %v5534_v0, 2  ;;  %v5594_v20 = vpop.permute.xlu1 %1965  ;;  %v3653_v28 = vld [vmem:[#allocation2 + $0x138] sm:$0xff] }
 0x1fc   :  { %2236 = vrot.lane.b32.xlu1 %v7110_v58, %s3666_s7  ;;  %v2133_v41 = vmul.f32 %v5290_v14, %v2068_v23  ;;  %v962_v46 = vadd.f32 %v902_v13, %v715_v27  ;;  %v963_v49 = vadd.f32 %v903_v29, %v716_v1  ;;  %v1137_v25 = vadd.f32 %v5362_v60, %v961_v39  ;;  %v3654_v29 = vld [vmem:[#allocation2 + $0xc8] sm:$0xff] }
 0x1fd   :  { %v2188_v53 = vrot.slane %v5562_v6, 2  ;;  %v5599_v33 = vmul.f32 %v4722_v19, %v7111_v37  ;;  %v904_v52 = vsel %vm881_vm3, %v5260_v63, %v5483_v36  ;;  %v2193_v14 = vrot.slane %v5574_v62, 2 }
 0x1fe   :  { %v5607_v0 = vmul.f32 %v3653_v28, %v7084_v61  ;;  %v717_v39 = vadd.f32 %v658_v3, %v520_v56  ;;  %v1342_v23 = vadd.f32 %v1262_v59, %v1137_v25  ;;  %v6750_v6 = vrot.slane %v5582_v8, 1 }
 0x1ff   :  { %2238 = vrot.lane.b32.xlu0 %v2187_v4, %s3666_s7  ;;  %v6749_v16 = vrot.slane %v5585_v9, 1  ;;  %v1673_v63 = vmul.f32 %v3654_v29, %v7094_v42  ;;  %v5614_v27 = vpop.permute.xlu0 %1504  ;;  %v7112_v62 = vmov %v7110_v58  ;;  %v2195_v1 = vrot.slane %v2133_v41, 2  ;;  %v1264_v3 = vpop.permute.xlu1 %1263 }
 0x200   :  { %2240 = vrot.lane.b32.xlu1 %v2188_v53, %s3666_s7  ;;  %v2192_v61 = vsel %vm1713_vm4, %v7112_v62, %v2191_v12  ;;  %v964_v56 = vadd.f32 %v904_v52, %v717_v39  ;;  %v5620_v58 = vadd.f32 %v5614_v27, %v1342_v23  ;;  %v1138_v25 = vadd.f32 %v6750_v6, %v962_v46 }
 0x201   :  { %v1139_v37 = vadd.f32 %v6749_v16, %v963_v49  ;;  %v513_v29 = vmul.f32 %v5394_v45, %v4619_v11  ;;  %v1284_v55 = vsel %vm483_vm2, %v1262_v59, %v1264_v3  ;;  %v1285_v50 = vsel %vm483_vm2, %v1264_v3, %v1266_v21  ;;  %v3655_v45 = vld [vmem:[#allocation2 + $0x140] sm:$0x7f]  ;;  %v7115_v3 = vld [vmem:[#allocation57_spill] sm:$0xff] }
 0x202   :  { %v2194_v41 = vsel %vm1713_vm4, %v2187_v4, %v2193_v14  ;;  %v709_v52 = vadd.f32 %v5040_v34, %v5357_v15  ;;  %v5634_v39 = vadd.f32 %v1284_v55, %v1138_v25  ;;  %v6748_v49 = vrot.slane %v5607_v0, 1  ;;  %v7113_v4 = vld [vmem:[#allocation27_spill] sm:$0xff]  ;;  %v7122_v16 = vld [vmem:[#allocation73_spill] sm:$0xff] }
 0x203   :  { %2246 = vrot.lane.b32.xlu0 %v2192_v61, %s3666_s7  ;;  %v5636_v46 = vadd.f32 %v1285_v50, %v1139_v37  ;;  %v514_v11 = vmul.f32 %v5400_v51, %v4624_v35  ;;  %v521_v59 = vmul.f32 %v3655_v45, %v6900_v2  ;;  %v5643_v23 = vpop.permute.xlu0 %1508  ;;  %v5646_v62 = vmul.f32 %v3651_v47, %v7113_v4  ;;  %v7114_v61 = vld [vmem:[#allocation10_spill] sm:$0xff]  ;;  %v1268_v50 = vpop.permute.xlu1 %1267  ;;  %v5657_v51 = vld [vmem:[#allocation2 + $0x140] sm:$0xff] }
 0x204   :  { %2248 = vrot.lane.b32.xlu1 %v2194_v41, %s3666_s7  ;;  %v5649_v55 = vmul.f32 %v3652_v24, %v7114_v61  ;;  %v956_v25 = vadd.f32 %v7115_v3, %v709_v52  ;;  %v5652_v37 = vrot.slane %v1673_v63, 2  ;;  %v1140_v41 = vadd.f32 %v6748_v49, %v964_v56  ;;  %v7116_v45 = vld [vmem:[#allocation31_spill] sm:$0xff]  ;;  %v7119_v56 = vld [vmem:[#allocation56_spill] sm:$0xff] }
 0x205   :  { %v2196_v35 = vsel %vm1713_vm4, %v2188_v53, %v2195_v1  ;;  %v5661_v22 = vmul.f32 %v5657_v51, %v7116_v45  ;;  %v1286_v47 = vsel %vm483_vm2, %v1266_v21, %v1268_v50  ;;  %v7117_v24 = vld [vmem:[#allocation87_spill] sm:$0xff]  ;;  %v5669_v4 = vmul.f32 %v3653_v28, %v4722_v19 }
 0x206   :  { %v7118_v52 = vrot.slane %v7117_v24, 2  ;;  %v905_v53 = vsel %vm881_vm3, %v5483_v36, %v7119_v56  ;;  %v1345_v61 = vadd.f32 %v1286_v47, %v1140_v41  ;;  %v7120_v45 = vld [vmem:[#allocation55_spill] sm:$0xff]  ;;  %v7124_v47 = vld [vmem:[#allocation66_spill] sm:$0xff]  ;;  %v7129_v41 = vld [vmem:[#allocation5_spill] sm:$0xff]  ;;  %v1760_v6 = vrot.slane %v5599_v33, 2 }
 0x207   :  { %2250 = vrot.lane.b32.xlu0 %v2196_v35, %s3666_s7  ;;  %v7121_v49 = vrot.slane %v7120_v45, 2  ;;  %v7123_v35 = vrot.slane %v7122_v16, 2  ;;  %v3447_v19 = vld [vmem:[%s6595_s4 + $0x1] ss:$8 sm:$0xf]  ;;  %v5685_v28 = vpop.permute.xlu0 %1253  ;;  %v5697_v45 = vpop.permute.xlu1 %1494  ;;  %v7133_v33 = vrot.slane %v5468_v31, 2 }
 0x208   :  { %v2202_v63 = vsel %vm1713_vm4, %v2191_v12, %v7118_v52  ;;  %v718_v12 = vadd.f32 %v5372_v54, %v521_v59  ;;  %v1756_v52 = vrot.slane %v7124_v47, 2  ;;  %v7126_v16 = vld [vmem:[#allocation37_spill] sm:$0xff]  ;;  %v7128_v54 = vld [vmem:[#allocation84_spill] sm:$0xff]  ;;  %v2386_v36 = vrot.slane %v3447_v19, %v7129_v41 }
 0x209   :  { %2256 = vrot.lane.b32.xlu1 %v2202_v63, %s3666_s7  ;;  %v2204_v21 = vsel %vm1713_vm4, %v2193_v14, %v7121_v49  ;;  %v2206_v24 = vsel %vm1713_vm4, %v2195_v1, %v7123_v35  ;;  %v7125_v63 = vld [vmem:[#allocation65_spill] sm:$0xff]  ;;  %v1758_v59 = vrot.slane %v7128_v54, 2  ;;  %v1080_v54 = vrot.slane %v5661_v22, 1 }
 0x20a   :  { %v653_v14 = vsel %vm483_vm2, %v5040_v34, %v7125_v63  ;;  %v654_v1 = vsel %vm483_vm2, %v7125_v63, %v7126_v16  ;;  %v7127_v49 = vld [vmem:[#allocation45_spill] sm:$0xff]  ;;  %v965_v35 = vadd.f32 %v905_v53, %v718_v12  ;;  %v7130_v34 = vld [vmem:[#allocation76_spill] sm:$0xff]  ;;  %v1745_v47 = vsel %vm1713_vm4, %v7133_v33, %v5652_v37 }
 0x20b   :  { %v1132_v56 = vadd.f32 %v7127_v49, %v956_v25  ;;  %2258 = vrot.lane.b32.xlu0 %v2204_v21, %s3666_s7  ;;  %v515_v13 = vmul.f32 %v7130_v34, %v4632_v44  ;;  %v7131_v63 = vld [vmem:[#allocation41_spill] sm:$0xff]  ;;  %v7132_v49 = vld [vmem:[#allocation7_spill] sm:$0xff]  ;;  %v710_v12 = vadd.f32 %v653_v14, %v513_v29  ;;  %v711_v21 = vadd.f32 %v654_v1, %v514_v11  ;;  %v1258_v41 = vpop.permute.xlu0 %1257  ;;  %v5716_v44 = vpop.permute.xlu1 %1498  ;;  %v7135_v34 = vld [vmem:[#allocation18_spill] sm:$0xff] }
 0x20c   :  { %v516_v5 = vmul.f32 %v7131_v63, %v6900_v2  ;;  %v2390_v53 = vrot.slane %v3447_v19, %v7132_v49  ;;  %v7134_v2 = vrot.slane %v5582_v8, 1  ;;  %v7137_v63 = vrot.slane %v5585_v9, 1  ;;  %v7141_v49 = vld [vmem:[#allocation17_spill] sm:$0xff]  ;;  %v7142_v9 = vld [vmem:[#allocation4_spill] sm:$0xff] }
 0x20d   :  { %v1337_v25 = vadd.f32 %v5685_v28, %v1132_v56  ;;  %2260 = vrot.lane.b32.xlu1 %v2206_v24, %s3666_s7  ;;  %v7136_v56 = vrot.slane %v7135_v34, 1  ;;  %v7138_v29 = vrot.slane %v5404_v30, 1  ;;  %v7139_v11 = vrot.slane %v5646_v62, 2 }
 0x20e   :  { %v7140_v1 = vrot.slane %v5649_v55, 2  ;;  %v655_v8 = vsel %vm483_vm2, %v7126_v16, %v7141_v49  ;;  %v1141_v34 = vadd.f32 %v1080_v54, %v965_v35  ;;  %v7143_v30 = vrot.slane %v5669_v4, 2  ;;  %v7146_v16 = vld [vmem:[#allocation6_spill] sm:$0xff] }
 0x20f   :  { %v1075_v24 = vsel %vm1051_vm1, %v7136_v56, %v7134_v2  ;;  %v1077_v22 = vsel %vm1051_vm1, %v7138_v29, %v7137_v63  ;;  %v1757_v14 = vsel %vm1713_vm4, %v7139_v11, %v1756_v52  ;;  %2399 = vrot.lane.b32.xlu0 %v2386_v36, %s3665_s25  ;;  %v2394_v2 = vrot.slane %v3447_v19, %v7142_v9  ;;  %v7144_v63 = vld [vmem:[#allocation29_spill] sm:$0xff]  ;;  %v7145_v29 = vld [vmem:[#allocation63_spill] sm:$0xff] }
 0x210   :  { %v1759_v33 = vsel %vm1713_vm4, %v7140_v1, %v1758_v59  ;;  %v1761_v56 = vsel %vm1713_vm4, %v7143_v30, %v1760_v6  ;;  %v898_v52 = vsel %vm881_vm3, %v7115_v3, %v7144_v63  ;;  %v899_v59 = vsel %vm881_vm3, %v7144_v63, %v7145_v29  ;;  %v1511_v6 = vpop.permute.xlu0 %1510  ;;  %v7147_v30 = vld [vmem:[#allocation54_spill] sm:$0xff] }
 0x211   :  { %v1588_v11 = vadd.f32 %v5697_v45, %v1337_v25  ;;  %2401 = vrot.lane.b32.xlu1 %v2390_v53, %s3665_s25  ;;  %v2398_v36 = vrot.slane %v3447_v19, %v7146_v16  ;;  %v957_v35 = vadd.f32 %v898_v52, %v710_v12  ;;  %v958_v1 = vadd.f32 %v899_v59, %v711_v21  ;;  %v1507_v53 = vpop.permute.xlu1 %1506 }
 0x212   :  { %v713_v9 = vadd.f32 %v7141_v49, %v516_v5  ;;  %v1346_v26 = vadd.f32 %v1268_v50, %v1141_v34  ;;  %v901_v3 = vsel %vm881_vm3, %v7148_v32, %v7147_v30  ;;  %v712_v31 = vadd.f32 %v655_v8, %v515_v13 }
 0x213   :  { %v1536_v63 = vsel %vm881_vm3, %v5643_v23, %v1511_v6  ;;  %v1537_v25 = vsel %vm881_vm3, %v1511_v6, %v7149_v17  ;;  %v1534_v5 = vsel %vm881_vm3, %v5614_v27, %v1507_v53  ;;  %v1535_v50 = vsel %vm881_vm3, %v1507_v53, %v5643_v23  ;;  %2403 = vrot.lane.b32.xlu0 %v2394_v2, %s3665_s25 }
 0x214   :  { %v1596_v15 = vadd.f32 %v1536_v63, %v1345_v61  ;;  %v5759_v19 = vadd.f32 %v1537_v25, %v1346_v26  ;;  %v900_v13 = vsel %vm881_vm3, %v7145_v29, %v7148_v32  ;;  %v1594_v49 = vadd.f32 %v1534_v5, %v5634_v39  ;;  %v1968_v12 = vpop.permute.xlu0 %1967 }
 0x215   :  { %v1595_v17 = vadd.f32 %v1535_v50, %v5636_v46  ;;  %2405 = vrot.lane.b32.xlu1 %v2398_v36, %s3665_s25  ;;  %v1814_v26 = vadd.f32 %v1745_v47, %v1588_v11  ;;  %v960_v61 = vadd.f32 %v901_v3, %v713_v9  ;;  %v1133_v21 = vadd.f32 %v1075_v24, %v957_v35  ;;  %v1256_v2 = vpop.permute.xlu1 %1255  ;;  %v1613_v46 = vld [vmem:[#allocation2 + $0x150] sm:$0x1]  ;;  %v7154_v3 = vld [vmem:[#allocation67_spill] sm:$0xff] }
 0x216   :  { %v1134_v27 = vadd.f32 %v1077_v22, %v958_v1  ;;  %v5772_v8 = vadd.f32 %v1761_v56, %v1596_v15  ;;  %v959_v23 = vadd.f32 %v900_v13, %v712_v31  ;;  %v1820_v52 = vadd.f32 %v1757_v14, %v1594_v49  ;;  %v7151_v15 = vld [vmem:[#allocation51_spill] sm:$0xff] }
 0x217   :  { %v5774_v34 = vadd.f32 %v1968_v12, %v1814_v26  ;;  %v1821_v59 = vadd.f32 %v1759_v33, %v1595_v17  ;;  %v1281_v32 = vsel %vm483_vm2, %v5685_v28, %v1256_v2  ;;  %v1282_v39 = vsel %vm483_vm2, %v1256_v2, %v1258_v41 }
 0x218   :  { %v1338_v29 = vadd.f32 %v1281_v32, %v1133_v21  ;;  %v1339_v47 = vadd.f32 %v1282_v39, %v1134_v27  ;;  %v7150_v9 = vrot.slane %v5422_v40, 1  ;;  %v1677_v31 = vmul.f32 %v5657_v51, %v7151_v15  ;;  %v1972_v22 = vpop.permute.xlu0 %1971 }
 0x219   :  { %v7152_v56 = vrot.slane %v5607_v0, 1  ;;  %v7153_v14 = vrot.slane %v5416_v10, 1  ;;  %v1260_v11 = vpop.permute.xlu1 %1259  ;;  %v1678_v35 = vmul.f32 %v7094_v42, %v1613_v46  ;;  %v7156_v13 = vrot.slane %v5486_v43, 2 }
 0x21a   :  { %v1081_v24 = vsel %vm1051_vm1, %v7150_v9, %v1080_v54  ;;  %v1283_v1 = vsel %vm483_vm2, %v1258_v41, %v1260_v11  ;;  %v1752_v54 = vrot.slane %v1677_v31, 2  ;;  %v7155_v41 = vrot.slane %v5669_v4, 2 }
 0x21b   :  { %v1079_v33 = vsel %vm1051_vm1, %v7153_v14, %v7152_v56  ;;  %v1136_v28 = vadd.f32 %v1081_v24, %v960_v61  ;;  %v1754_v63 = vrot.slane %v1678_v35, 2  ;;  %v7157_v17 = vrot.slane %v5490_v48, 2  ;;  %v3657_v61 = vld [vmem:[#allocation2 + $0x170] sm:$0x1] }
 0x21c   :  { %v1135_v36 = vadd.f32 %v1079_v33, %v959_v23  ;;  %v1501_v30 = vpop.permute.xlu0 %1500  ;;  %v1751_v49 = vsel %vm1713_vm4, %v7156_v13, %v7155_v41  ;;  %v1682_v21 = vmul.f32 %v3657_v61, %v7151_v15  ;;  %v7159_v32 = vrot.slane %v5448_v7, 2 }
 0x21d   :  { %v1341_v40 = vadd.f32 %v1260_v11, %v1136_v28  ;;  %v1532_v51 = vsel %vm881_vm3, %v5716_v44, %v1501_v30  ;;  %v1533_v0 = vsel %vm881_vm3, %v1501_v30, %v7154_v3  ;;  %v1970_v10 = vpop.permute.xlu1 %1969  ;;  %v1753_v26 = vsel %vm1713_vm4, %v7157_v17, %v1752_v54 }
 0x21e   :  { %v1340_v6 = vadd.f32 %v1283_v1, %v1135_v36  ;;  %v1995_v5 = vsel %vm483_vm2, %v1968_v12, %v1970_v10  ;;  %v1996_v50 = vsel %vm483_vm2, %v1970_v10, %v1972_v22  ;;  %v7158_v12 = vrot.slane %v5646_v62, 2 }
 0x21f   :  { %v1592_v53 = vadd.f32 %v1533_v0, %v1341_v40  ;;  %v1755_v46 = vsel %vm1713_vm4, %v5652_v37, %v1754_v63  ;;  %v7160_v62 = vrot.slane %v5649_v55, 2  ;;  %v7161_v7 = vrot.slane %v5473_v38, 2 }
 0x220   :  { %v1591_v25 = vadd.f32 %v1532_v51, %v1340_v6  ;;  %v1497_v27 = vpop.permute.xlu0 %1496  ;;  %v1747_v4 = vsel %vm1713_vm4, %v7159_v32, %v7158_v12 }
 0x221   :  { %v1818_v2 = vadd.f32 %v1753_v26, %v1592_v53  ;;  %v1530_v43 = vsel %vm881_vm3, %v5697_v45, %v1497_v27  ;;  %v1531_v48 = vsel %vm881_vm3, %v1497_v27, %v5716_v44  ;;  %v1974_v39 = vpop.permute.xlu1 %1973  ;;  %v1749_v56 = vsel %vm1713_vm4, %v7161_v7, %v7160_v62  ;;  %v7164_v26 = vld [vmem:[#allocation47_spill] sm:$0xff] }
 0x222   :  { %v1817_v23 = vadd.f32 %v1751_v49, %v1591_v25  ;;  %v1589_v9 = vadd.f32 %v1530_v43, %v1338_v29  ;;  %v1590_v24 = vadd.f32 %v1531_v48, %v1339_v47  ;;  %v1997_v15 = vsel %vm483_vm2, %v1972_v22, %v1974_v39  ;;  %v7167_v48 = vld [vmem:[#allocation91_spill] sm:$0xff] }
 0x223   :  { %v2055_v31 = vadd.f32 %v1974_v39, %v1818_v2  ;;  %v1819_v45 = vadd.f32 %v1755_v46, %v5620_v58  ;;  %v1762_v44 = vrot.slane %v1682_v21, 2  ;;  %v7165_v2 = vld [vmem:[#allocation89_spill] sm:$0xff] }
 0x224   :  { %v5823_v14 = vadd.f32 %v1997_v15, %v1817_v23  ;;  %v1815_v33 = vadd.f32 %v1747_v4, %v1589_v9  ;;  %v1816_v28 = vadd.f32 %v1749_v56, %v1590_v24  ;;  %v1976_v11 = vpop.permute.xlu0 %1975  ;;  %v7166_v4 = vld [vmem:[#allocation90_spill] sm:$0xff]  ;;  %v7168_v15 = vld [vmem:[#allocation71_spill] sm:$0xff] }
 0x225   :  { %v5826_v36 = vadd.f32 %v1976_v11, %v1819_v45  ;;  %v1978_v29 = vpop.permute.xlu1 %1977  ;;  %v1763_v35 = vsel %vm1713_vm4, %v1752_v54, %v1762_v44  ;;  %v7169_v45 = vld [vmem:[#allocation70_spill] sm:$0xff] }
 0x226   :  { %v1998_v47 = vsel %vm483_vm2, %v1976_v11, %v1978_v29  ;;  %v5829_v22 = vadd.f32 %v1995_v5, %v1815_v33  ;;  %v5831_v55 = vadd.f32 %v1996_v50, %v1816_v28  ;;  %v1823_v58 = vadd.f32 %v1763_v35, %v5759_v19  ;;  %v7170_v28 = vld [vmem:[#allocation46_spill] sm:$0xff] }
 0x227   :  { %v5833_v38 = vadd.f32 %v1998_v47, %v1820_v52  ;;  %v2050_v52 = vadd.f32 %v5594_v20, %v5548_v57 }
 0x228   :  { %v1980_v1 = vpop.permute.xlu0 %1979 }
 0x229   :  { %v1999_v40 = vsel %vm483_vm2, %v1978_v29, %v1980_v1  ;;  %v1982_v6 = vpop.permute.xlu1 %1981  ;;  %v7171_v29 = vld [vmem:[#allocation21_spill] sm:$0xff] }
 0x22a   :  { %v5838_v30 = vadd.f32 %v1999_v40, %v1821_v59  ;;  %v2000_v51 = vsel %vm483_vm2, %v1980_v1, %v1982_v6  ;;  %v2060_v3 = vadd.f32 %v1982_v6, %v1823_v58  ;;  %v7172_v40 = vld [vmem:[#allocation49_spill] sm:$0xff] }
 0x22b   :  { %v5842_v0 = vadd.f32 %v2000_v51, %v5772_v8 }
 0x22c   :  { %v2273_v10 = vpop.permute.xlu0 %2272 }
 0x22d   :  { %v2275_v63 = vpop.permute.xlu1 %2274 }
 0x22e   :  { %v2311_v54 = vsel %vm881_vm3, %v2273_v10, %v2275_v63  ;;  %v7173_v63 = vld [vmem:[#allocation30_spill] sm:$0xff] }
 0x22f   :  { %v5847_v25 = vadd.f32 %v2311_v54, %v2050_v52 }
 0x230   :  { %v2283_v19 = vpop.permute.xlu0 %2282 }
 0x231   :  { %v2285_v53 = vpop.permute.xlu1 %2284 }
 0x232   :  { %v2315_v59 = vsel %vm881_vm3, %v2283_v19, %v2285_v53 }
 0x233   :  { %v5850_v5 = vadd.f32 %v2315_v59, %v2055_v31  ;;  %v427_v59 = vld [vmem:[#allocation2] sm:$0x80] }
 0x234   :  { %v2293_v50 = vpop.permute.xlu0 %2292 }
 0x235   :  { %7162 = vst [vmem:[#allocation15_spill] sm:$0xff] %v5850_v5  ;;  %v2295_v41 = vpop.permute.xlu1 %2294 }
 0x236   :  { %v2319_v8 = vsel %vm881_vm3, %v2293_v50, %v2295_v41  ;;  %v7174_v41 = vld [vmem:[#allocation19_spill] sm:$0xff] }
 0x237   :  { %v5853_v13 = vadd.f32 %v2319_v8, %v2060_v3  ;;  %v1994_v8 = vsel %vm483_vm2, %v7174_v41, %v5594_v20  ;;  %v7176_v20 = vld [vmem:[#allocation38_spill] sm:$0xff] }
 0x238   :  { %v5855_v49 = vpop.permute.xlu0 %1935 }
 0x239   :  { %7163 = vst [vmem:[#allocation13_spill] sm:$0xff] %v5853_v13  ;;  %v1938_v57 = vpop.permute.xlu1 %1937 }
 0x23a   :  { %v1983_v17 = vsel %vm483_vm2, %v5855_v49, %v1938_v57 }
 0x23b   :  { %v5860_v61 = vadd.f32 %v1983_v17, %v7164_v26  ;;  %v7175_v17 = vld [vmem:[#allocation16_spill] sm:$0xff] }
 0x23c   :  { %v1940_v21 = vpop.permute.xlu0 %1939  ;;  %v492_v26 = vmul.f32 %v7175_v17, %v427_v59  ;;  %v7181_v59 = vld [vmem:[#allocation68_spill] sm:$0xff] }
 0x23d   :  { %v1984_v27 = vsel %vm483_vm2, %v1938_v57, %v1940_v21  ;;  %v1942_v23 = vpop.permute.xlu1 %1941 }
 0x23e   :  { %v5864_v12 = vadd.f32 %v1984_v27, %v7165_v2  ;;  %v1985_v32 = vsel %vm483_vm2, %v1940_v21, %v1942_v23  ;;  %v5868_v43 = vadd.f32 %v1942_v23, %v7166_v4  ;;  %v2049_v21 = vadd.f32 %v1994_v8, %v5544_v18 }
 0x23f   :  { %v5871_v39 = vadd.f32 %v1985_v32, %v7167_v48  ;;  %v689_v48 = vadd.f32 %v7176_v20, %v492_v26  ;;  %v7182_v26 = vld [vmem:[#allocation32_spill] sm:$0xff] }
 0x240   :  { %v5873_v46 = vpop.permute.xlu0 %1943 }
 0x241   :  { %v1946_v9 = vpop.permute.xlu1 %1945 }
 0x242   :  { %v1986_v24 = vsel %vm483_vm2, %v5873_v46, %v1946_v9 }
 0x243   :  { %v5878_v31 = vadd.f32 %v1986_v24, %v7168_v15 }
 0x245   :  { %v1948_v62 = vpop.permute.xlu0 %1947  ;;  %v1950_v56 = vpop.permute.xlu1 %1949 }
 0x246   :  { %v1987_v7 = vsel %vm483_vm2, %v1946_v9, %v1948_v62  ;;  %v1988_v33 = vsel %vm483_vm2, %v1948_v62, %v1950_v56  ;;  %v5886_v11 = vadd.f32 %v1950_v56, %v7170_v28  ;;  %v442_v56 = vld [vmem:[#allocation2 + $0xc0] sm:$0x80] }
 0x247   :  { %v5882_v44 = vadd.f32 %v1987_v7, %v7169_v45  ;;  %v5889_v47 = vadd.f32 %v1988_v33, %v7171_v29  ;;  %v507_v33 = vmul.f32 %v7175_v17, %v442_v56 }
 0x249   :  { %v5891_v35 = vpop.permute.xlu0 %1951  ;;  %v1954_v1 = vpop.permute.xlu1 %1953 }
 0x24a   :  { %v1989_v58 = vsel %vm483_vm2, %v5891_v35, %v1954_v1 }
 0x24b   :  { %v5896_v6 = vadd.f32 %v1989_v58, %v7172_v40  ;;  %v7178_v40 = vld [vmem:[#allocation81_spill] sm:$0xff] }
 0x24d   :  { %v5898_v51 = vpop.permute.xlu0 %1955  ;;  %v5902_v52 = vpop.permute.xlu1 %1957 }
 0x24e   :  { %v1990_v3 = vsel %vm483_vm2, %v1954_v1, %v5898_v51 }
 0x24f   :  { %v5905_v54 = vadd.f32 %v1990_v3, %v7173_v63  ;;  %v7180_v63 = vld [vmem:[#allocation75_spill] sm:$0xff] }
 0x250   :  { %v694_v8 = vadd.f32 %v7181_v59, %v7180_v63  ;;  %v1603_v59 = vld [vmem:[#allocation2 + $0x90] sm:$0x1] }
 0x251   :  { %v5907_v53 = vpop.permute.xlu0 %2266  ;;  %v5912_v57 = vpop.permute.xlu1 %2268 }
 0x255   :  { %v5916_v27 = vpop.permute.xlu0 %2270  ;;  %v5920_v2 = vpop.permute.xlu1 %2276 }
 0x256   :  { %v2310_v23 = vsel %vm881_vm3, %v5916_v27, %v2273_v10  ;;  %v5926_v4 = vadd.f32 %v5920_v2, %v5774_v34  ;;  %v7177_v10 = vld [vmem:[#allocation58_spill] sm:$0xff] }
 0x257   :  { %v5922_v32 = vadd.f32 %v2310_v23, %v2049_v21  ;;  %v936_v62 = vadd.f32 %v7177_v10, %v689_v48  ;;  %v704_v21 = vadd.f32 %v7182_v26, %v507_v33  ;;  %v7188_v26 = vld [vmem:[#allocation88_spill] sm:$0xff] }
 0x259   :  { %v5929_v9 = vpop.permute.xlu0 %2278  ;;  %v5931_v24 = vpop.permute.xlu1 %2280  ;;  %v1112_v28 = vadd.f32 %v5362_v60, %v936_v62  ;;  %v7184_v62 = vld [vmem:[#allocation78_spill] sm:$0xff] }
 0x25a   :  { %v2314_v18 = vsel %vm881_vm3, %v5931_v24, %v2283_v19  ;;  %v437_v19 = vld [vmem:[#allocation2 + $0x60] sm:$0x7f] }
 0x25b   :  { %v5936_v15 = vadd.f32 %v2314_v18, %v5823_v14  ;;  %v1598_v14 = vld [vmem:[#allocation2 + $0x30] sm:$0xfe]  ;;  %v1317_v3 = vadd.f32 %v7178_v40, %v1112_v28  ;;  %v502_v23 = vmul.f32 %v7175_v17, %v437_v19  ;;  %v7183_v18 = vld [vmem:[#allocation72_spill] sm:$0xff]  ;;  %v7185_v28 = vld [vmem:[#allocation82_spill] sm:$0xff] }
 0x25c   :  { %v1653_v20 = vmul.f32 %v7094_v42, %v1598_v14  ;;  %v941_v10 = vadd.f32 %v7183_v18, %v694_v8  ;;  %v7187_v17 = vld [vmem:[#allocation79_spill] sm:$0xff] }
 0x25d   :  { %v5939_v7 = vpop.permute.xlu0 %2286  ;;  %v5945_v45 = vpop.permute.xlu1 %2288  ;;  %v699_v56 = vadd.f32 %v7184_v62, %v502_v23  ;;  %v1568_v40 = vadd.f32 %v7185_v28, %v1317_v3  ;;  %v7189_v3 = vld [vmem:[#allocation34_spill] sm:$0xff] }
 0x25e   :  { %v5943_v34 = vadd.f32 %v5939_v7, %v5826_v36  ;;  %v1714_v16 = vrot.slane %v1653_v20, 2  ;;  %v1117_v63 = vadd.f32 %v5362_v60, %v941_v10 }
 0x25f   :  { %v946_v19 = vadd.f32 %v7187_v17, %v699_v56  ;;  %v7191_v56 = vld [vmem:[#allocation42_spill] sm:$0xff]  ;;  %v7192_v17 = vld [vmem:[#allocation83_spill] sm:$0xff] }
 0x260   :  { %v1794_v14 = vadd.f32 %v1714_v16, %v1568_v40  ;;  %v1322_v8 = vadd.f32 %v7188_v26, %v1117_v63 }
 0x261   :  { %v5949_v29 = vpop.permute.xlu0 %2290  ;;  %v5953_v58 = vpop.permute.xlu1 %2242  ;;  %v1122_v10 = vadd.f32 %v5362_v60, %v946_v19 }
 0x262   :  { %v2318_v1 = vsel %vm881_vm3, %v5949_v29, %v2293_v50  ;;  %v2031_v23 = vadd.f32 %v5855_v49, %v1794_v14  ;;  %v1573_v28 = vadd.f32 %v7189_v3, %v1322_v8  ;;  %v7193_v3 = vld [vmem:[#allocation48_spill] sm:$0xff] }
 0x263   :  { %v5957_v36 = vadd.f32 %v2318_v1, %v5842_v0  ;;  %v7186_v0 = vld [vmem:[#allocation52_spill] sm:$0xff]  ;;  %v1327_v40 = vadd.f32 %v7191_v56, %v1122_v10 }
 0x264   :  { %v951_v1 = vadd.f32 %v7186_v0, %v704_v21  ;;  %v1663_v21 = vmul.f32 %v7094_v42, %v1603_v59  ;;  %v7190_v0 = vld [vmem:[#allocation86_spill] sm:$0xff] }
 0x265   :  { %7179 = vst [vmem:[#allocation12_spill] sm:$0xff] %v5957_v36  ;;  %v2245_v48 = vpop.permute.xlu0 %2244  ;;  %v5965_v50 = vpop.permute.xlu1 %2252  ;;  %v1578_v42 = vadd.f32 %v7193_v3, %v1327_v40  ;;  %v2313_v3 = vsel %vm881_vm3, %v5929_v9, %v5931_v24 }
 0x266   :  { %v1127_v18 = vadd.f32 %v5362_v60, %v951_v1  ;;  %v1720_v1 = vsel %vm1713_vm4, %v1714_v16, %v5652_v37  ;;  %v1729_v26 = vrot.slane %v1663_v21, 2  ;;  %v7194_v60 = vld [vmem:[#allocation43_spill] sm:$0xff]  ;;  %v1991_v21 = vsel %vm483_vm2, %v5898_v51, %v5902_v52 }
 0x267   :  { %v1799_v14 = vadd.f32 %v1720_v1, %v1573_v28  ;;  %v7195_v19 = vrot.slane %v7194_v60, 2  ;;  %v7198_v1 = vld [vmem:[#allocation85_spill] sm:$0xff]  ;;  %v2312_v51 = vsel %vm881_vm3, %v5920_v2, %v5929_v9  ;;  %v2317_v9 = vsel %vm881_vm3, %v5945_v45, %v5949_v29 }
 0x268   :  { %v1332_v36 = vadd.f32 %v7190_v0, %v1127_v18  ;;  %v7197_v0 = vld [vmem:[#allocation69_spill] sm:$0xff]  ;;  %v1730_v28 = vsel %vm1713_vm4, %v5652_v37, %v1729_v26  ;;  %v7199_v37 = vld [vmem:[#allocation28_spill] sm:$0xff]  ;;  %v2371_v24 = vadd.f32 %v2312_v51, %v5829_v22  ;;  %v6043_v29 = vadd.f32 %v2317_v9, %v5838_v30 }
 0x269   :  { %v2255_v13 = vpop.permute.xlu0 %2254  ;;  %v5971_v33 = vpop.permute.xlu1 %2262  ;;  %v2036_v59 = vadd.f32 %v5873_v46, %v1799_v14 }
 0x26a   :  { %v1583_v63 = vadd.f32 %v7192_v17, %v1332_v36  ;;  %v1804_v17 = vadd.f32 %v1730_v28, %v1578_v42 }
 0x26c   :  { %v1809_v18 = vadd.f32 %v7195_v19, %v1583_v63  ;;  %v2308_v63 = vsel %vm881_vm3, %v5907_v53, %v5912_v57  ;;  %v2041_v42 = vadd.f32 %v5891_v35, %v1804_v17  ;;  %v7201_v19 = vld [vmem:[#allocation22_spill] sm:$0xff] }
 0x26d   :  { %v2265_v62 = vpop.permute.xlu0 %2264 }
 0x26e   :  { %v2237_v20 = vpop.permute.xlu1 %2236  ;;  %v2046_v40 = vadd.f32 %v7197_v0, %v1809_v18  ;;  %v2045_v18 = vadd.f32 %v5902_v52, %v7201_v19  ;;  %v2299_v52 = vsel %vm881_vm3, %v5953_v58, %v2245_v48  ;;  %v2307_v28 = vsel %vm881_vm3, %v5971_v33, %v2265_v62 }
 0x26f   :  { %v5981_v5 = vadd.f32 %v2237_v20, %v2031_v23  ;;  %v7196_v23 = vld [vmem:[#allocation24_spill] sm:$0xff] }
 0x270   :  { %v1992_v10 = vsel %vm483_vm2, %v7197_v0, %v7196_v23  ;;  %v1993_v36 = vsel %vm483_vm2, %v7196_v23, %v7174_v41  ;;  %v2309_v41 = vsel %vm881_vm3, %v5912_v57, %v5916_v27  ;;  %v2316_v57 = vsel %vm881_vm3, %v5939_v7, %v5945_v45 }
 0x271   :  { %v2239_v49 = vpop.permute.xlu0 %2238  ;;  %v2047_v14 = vadd.f32 %v1992_v10, %v7198_v1  ;;  %v2048_v26 = vadd.f32 %v1993_v36, %v7199_v37  ;;  %v2365_v23 = vadd.f32 %v5907_v53, %v2046_v40  ;;  %v6032_v10 = vadd.f32 %v2313_v3, %v5831_v55 }
 0x272   :  { %v2241_v8 = vpop.permute.xlu1 %2240  ;;  %v2376_v36 = vadd.f32 %v2316_v57, %v5833_v38  ;;  %v2303_v53 = vsel %vm881_vm3, %v5965_v50, %v2255_v13  ;;  %v2296_v45 = vsel %vm881_vm3, %v2237_v20, %v2239_v49  ;;  %v6050_v38 = vadd.f32 %v2299_v52, %v5868_v43 }
 0x273   :  { %v2366_v0 = vadd.f32 %v2308_v63, %v2047_v14  ;;  %v6025_v2 = vadd.f32 %v2309_v41, %v2048_v26  ;;  %v2297_v22 = vsel %vm881_vm3, %v2239_v49, %v2241_v8  ;;  %v2298_v55 = vsel %vm881_vm3, %v2241_v8, %v5953_v58 }
 0x274   :  { %v6057_v40 = vadd.f32 %v2303_v53, %v5886_v11  ;;  %v6059_v49 = vadd.f32 %v2307_v28, %v2045_v18  ;;  %v2351_v58 = vadd.f32 %v2296_v45, %v5860_v61  ;;  %v2352_v43 = vadd.f32 %v2297_v22, %v5864_v12 }
 0x275   :  { %v2247_v16 = vpop.permute.xlu0 %2246 }
 0x276   :  { %v2355_v46 = vadd.f32 %v2247_v16, %v2036_v59  ;;  %v2249_v56 = vpop.permute.xlu1 %2248  ;;  %v7200_v59 = vld [vmem:[#allocation80_spill] sm:$0xff] }
 0x277   :  { %v2044_v60 = vadd.f32 %v1991_v21, %v7200_v59  ;;  %v2300_v48 = vsel %vm881_vm3, %v2247_v16, %v2249_v56  ;;  %v6065_v16 = vadd.f32 %v2298_v55, %v5871_v39 }
 0x279   :  { %v2251_v27 = vpop.permute.xlu0 %2250 }
 0x27a   :  { %v2301_v13 = vsel %vm881_vm3, %v2249_v56, %v2251_v27  ;;  %v2302_v62 = vsel %vm881_vm3, %v2251_v27, %v5965_v50  ;;  %v2356_v56 = vadd.f32 %v2300_v48, %v5878_v31 }
 0x27b   :  { %v2257_v35 = vpop.permute.xlu1 %2256  ;;  %v2357_v17 = vadd.f32 %v2301_v13, %v5882_v44  ;;  %v6072_v11 = vadd.f32 %v2302_v62, %v5889_v47 }
 0x27c   :  { %v2360_v7 = vadd.f32 %v2257_v35, %v2041_v42 }
 0x27d   :  { %v2259_v21 = vpop.permute.xlu0 %2258 }
 0x27e   :  { %v2304_v20 = vsel %vm881_vm3, %v2257_v35, %v2259_v21 }
 0x27f   :  { %v2261_v30 = vpop.permute.xlu1 %2260  ;;  %v2361_v63 = vadd.f32 %v2304_v20, %v5896_v6 }
 0x280   :  { %v2305_v8 = vsel %vm881_vm3, %v2259_v21, %v2261_v30  ;;  %v2306_v50 = vsel %vm881_vm3, %v2261_v30, %v5971_v33 }
 0x281   :  { %v2362_v61 = vadd.f32 %v2305_v8, %v5905_v54  ;;  %v2400_v41 = vpop.permute.xlu0 %2399  ;;  %v6085_v14 = vadd.f32 %v2306_v50, %v2044_v60 }
 0x282   :  { %v6077_v12 = vadd.f32 %v2400_v41, %v5981_v5  ;;  %v6079_v39 = vadd.f32 %v2400_v41, %v2355_v46  ;;  %v6081_v1 = vadd.f32 %v2400_v41, %v2360_v7  ;;  %v6083_v31 = vadd.f32 %v2400_v41, %v2365_v23 }
 0x283   :  { %v2402_v33 = vpop.permute.xlu1 %2401  ;;  %v6088_v44 = vadd.f32 %v2400_v41, %v5926_v4  ;;  %v6091_v47 = vadd.f32 %v2400_v41, %v5943_v34 }
 0x284   :  { %v2407_v6 = vsel %vm483_vm2, %v2400_v41, %v2402_v33  ;;  %v6773_v5 = vmax.f32 %v6077_v12, 0.0  ;;  %v6770_v54 = vmax.f32 %v6079_v39, 0.0  ;;  %v6767_v46 = vmax.f32 %v6081_v1, 0.0 }
 0x285   :  { %v6778_v37 = vmax.f32 %v6083_v31, 0.0  ;;  %v6776_v26 = vmax.f32 %v6088_v44, 0.0  ;;  %v6775_v51 = vmax.f32 %v6091_v47, 0.0  ;;  %v6100_v4 = vadd.f32 %v2407_v6, %v2351_v58  ;;  %v2404_v19 = vpop.permute.xlu0 %2403 }
 0x286   :  { %v6102_v3 = vadd.f32 %v2407_v6, %v2356_v56  ;;  %v6106_v34 = vrot.slane %v6773_v5, 7  ;;  %v6110_v42 = vrot.slane %v6770_v54, 7  ;;  %v6114_v59 = vrot.slane %v6767_v46, 7 }
 0x287   :  { %v6118_v60 = vrot.slane %v6778_v37, 7  ;;  %v2406_v18 = vpop.permute.xlu1 %2405  ;;  %v6122_v57 = vrot.slane %v6776_v26, 7  ;;  %v6126_v27 = vrot.slane %v6775_v51, 7  ;;  %v6128_v23 = vadd.f32 %v2407_v6, %v2361_v63 }
 0x288   :  { %v6130_v9 = vadd.f32 %v2407_v6, %v2366_v0  ;;  %v6132_v35 = vadd.f32 %v2407_v6, %v2371_v24  ;;  %v6134_v52 = vadd.f32 %v2407_v6, %v2376_v36  ;;  %v6766_v7 = vmax.f32 %v6100_v4, 0.0 }
 0x289   :  { %v6765_v53 = vmax.f32 %v6102_v3, 0.0  ;;  %v6764_v28 = vmax.f32 %v6128_v23, 0.0  ;;  %v2408_v22 = vsel %vm483_vm2, %v2402_v33, %v2404_v19  ;;  %v2409_v55 = vsel %vm483_vm2, %v2404_v19, %v2406_v18 }
 0x28a   :  { %v6757_v45 = vmax.f32 %v6130_v9, 0.0  ;;  %v6756_v48 = vmax.f32 %v6132_v35, 0.0  ;;  %v6755_v0 = vmax.f32 %v6134_v52, 0.0  ;;  %v2509_v24 = vrot.slane %v6766_v7, 7 }
 0x28b   :  { %v2510_v36 = vrot.slane %v6765_v53, 7  ;;  %v2523_v21 = vrot.slane %v6764_v28, 7  ;;  %v6152_v62 = vadd.f32 %v2408_v22, %v2352_v43  ;;  %v6154_v20 = vadd.f32 %v2408_v22, %v2357_v17 }
 0x28c   :  { %v2534_v13 = vrot.slane %v6757_v45, 7  ;;  %v2535_v58 = vrot.slane %v6756_v48, 7  ;;  %v2548_v8 = vrot.slane %v6755_v0, 7  ;;  %v6163_v56 = vadd.f32 %v2408_v22, %v2362_v61 }
 0x28d   :  { %v6157_v30 = vsel %vm2505_vm5, %v2509_v24, %v2510_v36  ;;  %v6166_v50 = vsel %vm2505_vm5, %v2510_v36, %v2523_v21  ;;  %v6169_v63 = vadd.f32 %v2408_v22, %v6025_v2  ;;  %v6172_v43 = vadd.f32 %v2408_v22, %v6032_v10 }
 0x28e   :  { %v6175_v17 = vadd.f32 %v2408_v22, %v6043_v29  ;;  %v2536_v41 = vsel %vm2505_vm5, %v2534_v13, %v2535_v58  ;;  %v2549_v33 = vsel %vm2505_vm5, %v2535_v58, %v2548_v8  ;;  %v6763_v6 = vmax.f32 %v6152_v62, 0.0 }
 0x28f   :  { %v6762_v61 = vmax.f32 %v6154_v20, 0.0  ;;  %v6760_v19 = vmax.f32 %v6163_v56, 0.0  ;;  %v6758_v24 = vmax.f32 %v6169_v63, 0.0  ;;  %v6759_v2 = vmax.f32 %v6172_v43, 0.0 }
 0x290   :  { %v6761_v10 = vmax.f32 %v6175_v17, 0.0  ;;  %v2512_v29 = vrot.slane %v6763_v6, 7  ;;  %v6190_v36 = vadd.f32 %v2409_v55, %v6065_v16  ;;  %v6193_v21 = vadd.f32 %v2406_v18, %v6050_v38 }
 0x291   :  { %v2513_v22 = vrot.slane %v6762_v61, 7  ;;  %v2525_v13 = vrot.slane %v6760_v19, 7  ;;  %v2537_v58 = vrot.slane %v6758_v24, 7  ;;  %v2538_v8 = vrot.slane %v6759_v2, 7 }
 0x292   :  { %v2550_v0 = vrot.slane %v6761_v10, 7  ;;  %v6207_v16 = vadd.f32 %v2409_v55, %v6072_v11  ;;  %v6210_v38 = vadd.f32 %v2406_v18, %v6057_v40  ;;  %v6213_v45 = vadd.f32 %v2409_v55, %v6085_v14  ;;  %v7204_v14 = vld [vmem:[#allocation15_spill] sm:$0xff] }
 0x293   :  { %v6204_v48 = vsel %vm2505_vm5, %v2512_v29, %v2513_v22  ;;  %v6216_v24 = vsel %vm2505_vm5, %v2513_v22, %v2525_v13  ;;  %v2539_v2 = vsel %vm2505_vm5, %v2537_v58, %v2538_v8  ;;  %v6221_v10 = vadd.f32 %v2406_v18, %v6059_v49  ;;  %v7206_v22 = vld [vmem:[#allocation12_spill] sm:$0xff]  ;;  %v7208_v58 = vld [vmem:[#allocation13_spill] sm:$0xff] }
 0x294   :  { %v2551_v19 = vsel %vm2505_vm5, %v2538_v8, %v2550_v0  ;;  %v6224_v29 = vadd.f32 %v2409_v55, %v5922_v32  ;;  %v6227_v11 = vadd.f32 %v2406_v18, %v5847_v25  ;;  %v6230_v40 = vadd.f32 %v2409_v55, %v5936_v15 }
 0x295   :  { %v6233_v61 = vadd.f32 %v2406_v18, %v7204_v14  ;;  %v6236_v13 = vadd.f32 %v2409_v55, %v7206_v22  ;;  %v6239_v0 = vadd.f32 %v2406_v18, %v7208_v58  ;;  %v6768_v49 = vmax.f32 %v6193_v21, 0.0 }
 0x296   :  { %7202 = vst [vmem:[#allocation33_spill] sm:$0xff] %v6224_v29  ;;  %7203 = vst [vmem:[#allocation35_spill] sm:$0xff] %v6230_v40  ;;  %v6769_v32 = vmax.f32 %v6210_v38, 0.0  ;;  %v6771_v8 = vmax.f32 %v6221_v10, 0.0  ;;  %v6772_v25 = vmax.f32 %v6227_v11, 0.0  ;;  %v6779_v6 = vmax.f32 %v6224_v29, 0.0 }
 0x297   :  { %7205 = vst [vmem:[#allocation36_spill] sm:$0xff] %v6233_v61  ;;  %7207 = vst [vmem:[#allocation26_spill] sm:$0xff] %v6236_v13  ;;  %v6774_v15 = vmax.f32 %v6233_v61, 0.0  ;;  %v6777_v14 = vmax.f32 %v6239_v0, 0.0  ;;  %v2518_v55 = vrot.slane %v6768_v49, 7  ;;  %v6781_v22 = vmax.f32 %v6230_v40, 0.0 }
 0x298   :  { %7209 = vst [vmem:[#allocation8_spill] sm:$0xff] %v6239_v0  ;;  %v2519_v18 = vrot.slane %v6769_v32, 7  ;;  %v2529_v58 = vrot.slane %v6771_v8, 7  ;;  %v2543_v28 = vrot.slane %v6772_v25, 7  ;;  %v6782_v7 = vmax.f32 %v6236_v13, 0.0 }
 0x299   :  { %v2544_v53 = vrot.slane %v6774_v15, 7  ;;  %v2554_v46 = vrot.slane %v6777_v14, 7  ;;  %v2540_v49 = vrot.slane %v6779_v6, 7  ;;  %v2541_v32 = vrot.slane %v6781_v22, 7 }
 0x29a   :  { %v2625_v54 = vadd.f32 %v2549_v33, %v2536_v41  ;;  %v2552_v25 = vrot.slane %v6782_v7, 7  ;;  %v2632_v5 = vadd.f32 %v2551_v19, %v2539_v2  ;;  %v6784_v15 = vmax.f32 %v6190_v36, 0.0 }
 0x29b   :  { %v2545_v8 = vsel %vm2505_vm5, %v2543_v28, %v2544_v53  ;;  %v2542_v51 = vsel %vm2505_vm5, %v2540_v49, %v2541_v32  ;;  %v2555_v26 = vsel %vm2505_vm5, %v2544_v53, %v2554_v46  ;;  %v6783_v28 = vmax.f32 %v6207_v16, 0.0 }
 0x29c   :  { %v2626_v14 = vrot.slane %v2625_v54, 4  ;;  %v2646_v37 = vsel %vm483_vm2, %v2545_v8, 0.0  ;;  %v2553_v6 = vsel %vm2505_vm5, %v2541_v32, %v2552_v25  ;;  %v2633_v0 = vrot.slane %v2632_v5, 4 }
 0x29d   :  { %v2647_v41 = vsel %vm483_vm2, %v2555_v26, 0.0  ;;  %v2639_v22 = vadd.f32 %v2553_v6, %v2542_v51  ;;  %v6786_v19 = vmax.f32 %v6213_v45, 0.0  ;;  %v2515_v49 = vrot.slane %v6784_v15, 7 }
 0x29e   :  { %v2627_v33 = vadd.f32 %v2626_v14, %v2625_v54  ;;  %v2648_v7 = vadd.f32 %v2647_v41, %v2646_v37  ;;  %v2634_v2 = vadd.f32 %v2633_v0, %v2632_v5  ;;  %v2516_v46 = vrot.slane %v6783_v28, 7 }
 0x29f   :  { %v2520_v53 = vsel %vm2505_vm5, %v2518_v55, %v2519_v18  ;;  %v2640_v8 = vrot.slane %v2639_v22, 4  ;;  %v2527_v54 = vrot.slane %v6786_v19, 7  ;;  %v2530_v5 = vsel %vm2505_vm5, %v2519_v18, %v2529_v58 }
 0x2a0   :  { %v2628_v32 = vrot.slane %v2627_v33, 2  ;;  %v2649_v26 = vrot.slane %v2648_v7, 4  ;;  %v2635_v51 = vrot.slane %v2634_v2, 2  ;;  %v2517_v37 = vsel %vm2505_vm5, %v2515_v49, %v2516_v46 }
 0x2a1   :  { %v2586_v6 = vadd.f32 %v6166_v50, %v6157_v30  ;;  %v2641_v25 = vadd.f32 %v2640_v8, %v2639_v22  ;;  %v2528_v55 = vsel %vm2505_vm5, %v2516_v46, %v2527_v54  ;;  %v2593_v15 = vadd.f32 %v6216_v24, %v6204_v48 }
 0x2a2   :  { %v2629_v0 = vadd.f32 %v2628_v32, %v2627_v33  ;;  %v2650_v14 = vadd.f32 %v2649_v26, %v2648_v7  ;;  %v2636_v41 = vadd.f32 %v2635_v51, %v2634_v2  ;;  %v2600_v13 = vadd.f32 %v2528_v55, %v2517_v37 }
 0x2a3   :  { %v2587_v28 = vrot.slane %v2586_v6, 4  ;;  %v2642_v61 = vrot.slane %v2641_v25, 2  ;;  %v2607_v49 = vsel %vm483_vm2, %v2520_v53, 0.0  ;;  %v2594_v29 = vrot.slane %v2593_v15, 4 }
 0x2a4   :  { %v2630_v19 = vrot.slane %v2629_v0, 1  ;;  %v2651_v40 = vrot.slane %v2650_v14, 2  ;;  %v2637_v18 = vrot.slane %v2636_v41, 1  ;;  %v2601_v30 = vrot.slane %v2600_v13, 4 }
 0x2a5   :  { %v2588_v58 = vadd.f32 %v2587_v28, %v2586_v6  ;;  %v2643_v22 = vadd.f32 %v2642_v61, %v2641_v25  ;;  %v2608_v33 = vsel %vm483_vm2, %v2530_v5, 0.0  ;;  %v2595_v32 = vadd.f32 %v2594_v29, %v2593_v15 }
 0x2a6   :  { %v2631_v50 = vadd.f32 %v2630_v19, %v2629_v0  ;;  %v2652_v7 = vadd.f32 %v2651_v40, %v2650_v14  ;;  %v2638_v2 = vadd.f32 %v2637_v18, %v2636_v41  ;;  %v2602_v8 = vadd.f32 %v2601_v30, %v2600_v13 }
 0x2a7   :  { %v2589_v46 = vrot.slane %v2588_v58, 2  ;;  %v2644_v48 = vrot.slane %v2643_v22, 1  ;;  %v2609_v26 = vadd.f32 %v2608_v33, %v2607_v49  ;;  %v2533_v53 = vsel %vm2505_vm5, %v6118_v60, %v6122_v57 }
 0x2a8   :  { %v2653_v24 = vrot.slane %v2652_v7, 1  ;;  %v2596_v28 = vrot.slane %v2595_v32, 2  ;;  %v2603_v51 = vrot.slane %v2602_v8, 2  ;;  %v2547_v61 = vsel %vm2505_vm5, %v6122_v57, %v6126_v27 }
 0x2a9   :  { %v2590_v54 = vadd.f32 %v2589_v46, %v2588_v58  ;;  %v2645_v40 = vadd.f32 %v2644_v48, %v2643_v22  ;;  %v2610_v37 = vrot.slane %v2609_v26, 4  ;;  %v2616_v29 = vsel %vm2576_vm6, %v2533_v53, 0.0 }
 0x2aa   :  { %v2654_v19 = vadd.f32 %v2653_v24, %v2652_v7  ;;  %v2597_v13 = vadd.f32 %v2596_v28, %v2595_v32  ;;  %v2604_v15 = vadd.f32 %v2603_v51, %v2602_v8  ;;  %v2617_v5 = vsel %vm2576_vm6, %v2547_v61, 0.0 }
 0x2ab   :  { %v2659_v6 = vadd.f32 %v2645_v40, %v2631_v50  ;;  %v2611_v25 = vadd.f32 %v2610_v37, %v2609_v26  ;;  %v2618_v60 = vadd.f32 %v2617_v5, %v2616_v29  ;;  %v2591_v14 = vrot.slane %v2590_v54, 1 }
 0x2ac   :  { %v2660_v0 = vadd.f32 %v2654_v19, %v2638_v2  ;;  %v2598_v55 = vrot.slane %v2597_v13, 1  ;;  %v2605_v41 = vrot.slane %v2604_v15, 1  ;;  %v2508_v57 = vsel %vm2505_vm5, %v6106_v34, %v6110_v42 }
 0x2ad   :  { %v2612_v49 = vrot.slane %v2611_v25, 2  ;;  %v2619_v18 = vrot.slane %v2618_v60, 4  ;;  %v2522_v58 = vsel %vm2505_vm5, %v6110_v42, %v6114_v59  ;;  %v2577_v30 = vsel %vm2576_vm6, %v2508_v57, 0.0 }
 0x2ae   :  { %v2664_v27 = vadd.f32 %v2660_v0, %v2659_v6  ;;  %v2578_v50 = vsel %vm2576_vm6, %v2522_v58, 0.0  ;;  %v2606_v22 = vadd.f32 %v2605_v41, %v2604_v15  ;;  %v2592_v32 = vadd.f32 %v2591_v14, %v2590_v54  ;;  %v2690_v14 = vld [vmem:[%s6595_s4 + $0x4] ss:$0 sm:$0xff] }
 0x2af   :  { %v2613_v7 = vadd.f32 %v2612_v49, %v2611_v25  ;;  %v2620_v33 = vadd.f32 %v2619_v18, %v2618_v60  ;;  %v2579_v46 = vadd.f32 %v2578_v50, %v2577_v30  ;;  %v2599_v8 = vadd.f32 %v2598_v55, %v2597_v13 }
 0x2b0   :  { %2669 = vrot.lane.b32.xlu0 %v2664_v27, %s3666_s7  ;;  %v2656_v53 = vadd.f32 %v2606_v22, %v2592_v32 }
 0x2b1   :  { %v2614_v34 = vrot.slane %v2613_v7, 1  ;;  %v2621_v48 = vrot.slane %v2620_v33, 2  ;;  %v2580_v24 = vrot.slane %v2579_v46, 4 }
 0x2b3   :  { %v2615_v26 = vadd.f32 %v2614_v34, %v2613_v7  ;;  %v2622_v28 = vadd.f32 %v2621_v48, %v2620_v33  ;;  %v2581_v51 = vadd.f32 %v2580_v24, %v2579_v46 }
 0x2b5   :  { %v2657_v42 = vadd.f32 %v2615_v26, %v2599_v8  ;;  %v2623_v59 = vrot.slane %v2622_v28, 1  ;;  %v2582_v61 = vrot.slane %v2581_v51, 2 }
 0x2b7   :  { %v2662_v40 = vadd.f32 %v2657_v42, %v2656_v53  ;;  %v2624_v19 = vadd.f32 %v2623_v59, %v2622_v28  ;;  %v2583_v37 = vadd.f32 %v2582_v61, %v2581_v51  ;;  %v2709_v59 = vld [vmem:[%s6595_s4 + $0x20] ss:$0 sm:$0xff]  ;;  %v2737_v61 = vld [vmem:[%s6595_s4 + $0x21] ss:$0 sm:$0xff] }
 0x2b9   :  { %2667 = vrot.lane.b32.xlu1 %v2662_v40, %s3666_s7  ;;  %v2658_v29 = vadd.f32 %v2638_v2, %v2624_v19  ;;  %v2584_v15 = vrot.slane %v2583_v37, 1  ;;  %v2720_v2 = vld [vmem:[%s6595_s4 + $0x5] ss:$0 sm:$0xff] }
 0x2bb   :  { %v2663_v5 = vadd.f32 %v2659_v6, %v2658_v29  ;;  %v2585_v54 = vadd.f32 %v2584_v15, %v2583_v37 }
 0x2bd   :  { %v2655_v13 = vadd.f32 %v2599_v8, %v2585_v54  ;;  %v2712_v54 = vld [vmem:[%s6595_s4 + $0x6] ss:$0 sm:$0xff] }
 0x2bf   :  { %v2661_v0 = vadd.f32 %v2656_v53, %v2655_v13  ;;  %v2740_v13 = vld [vmem:[%s6595_s4 + $0x7] ss:$0 sm:$0xff] }
 0x322   :  { %v2670_v25 = vpop.permute.xlu0 %2669 }
 0x323   :  { %v2676_v60 = vadd.f32 %v2670_v25, %v2664_v27  ;;  %v2675_v6 = vadd.f32 %v2670_v25, %v2663_v5 }
 0x325   :  { %2681 = vrot.lane.b32.xlu0 %v2676_v60, %s3665_s25 }
 0x329   :  { %2692 = vrot.lane.b32.xlu0 %v2690_v14, %s3665_s25 }
 0x32b   :  { %v2668_v55 = vpop.permute.xlu1 %2667 }
 0x32c   :  { %v2674_v41 = vadd.f32 %v2668_v55, %v2662_v40  ;;  %v2673_v58 = vadd.f32 %v2668_v55, %v2661_v0  ;;  %v2689_v0 = vld [vmem:[%s6595_s4 + $0x3] ss:$0 sm:$0xff] }
 0x32e   :  { %2679 = vrot.lane.b32.xlu1 %v2674_v41, %s3665_s25 }
 0x332   :  { %2722 = vrot.lane.b32.xlu1 %v2720_v2, %s3665_s25 }
 0x397   :  { %v2682_v57 = vpop.permute.xlu0 %2681 }
 0x398   :  { %v2686_v27 = vadd.f32 %v2682_v57, %v2675_v6 }
 0x39a   :  { %v2688_v49 = vmul.f32 0.00390625, %v2686_v27 }
 0x39b   :  { %v2693_v18 = vpop.permute.xlu0 %2692 }
 0x39c   :  { %v2696_v30 = vmul.f32 %v2693_v18, %v2688_v49 }
 0x39e   :  { %v2699_v33 = vrot.slane %v2696_v30, 7  ;;  %v3667_v30 = vmov 1966171168  }
 0x3a0   :  { %v2680_v50 = vpop.permute.xlu1 %2679 }
 0x3a1   :  { %v2685_v22 = vadd.f32 %v2680_v50, %v2673_v58  ;;  %v2767_v50 = vunpack.c.l.s4 %v3667_v30  ;;  %v3607_v30 = vld [vmem:[%s6596_s3 + $0x60] sm:$0xff]  }
 0x3a3   :  { %v2687_v7 = vmul.f32 0.00390625, %v2685_v22  ;;  %v2768_v22 = vunpack.c.0.s8 %v2767_v50  ;;  %v3608_v50 = vld [vmem:[%s6596_s3 + $0xd8] sm:$0xff]  }
 0x3a4   :  { %v2723_v46 = vpop.permute.xlu1 %2722 }
 0x3a5   :  { %v2695_v32 = vmul.f32 %v2693_v18, %v2687_v7  ;;  %v2726_v8 = vmul.f32 %v2723_v46, %v2688_v49  ;;  %v2725_v34 = vmul.f32 %v2723_v46, %v2687_v7  ;;  %v7210_v7 = vld [vmem:[#allocation3_spill] sm:$0xff] }
 0x3a7   :  { %v2729_v48 = vrot.slane %v2726_v8, 7  ;;  %v2701_v24 = vsel %vm2700_vm7, %v2699_v33, %v2695_v32  ;;  %v2771_v33 = vsub.s32 %v2768_v22, %v7210_v7  ;;  %v3609_v22 = vld [vmem:[%s6596_s3 + $0x20] sm:$0xff]   ;;  %v3610_v7 = vld [vmem:[%s6596_s3 + $0x98] sm:$0xff]  }
 0x3a8   :  { %2702 = vrot.lane.b32.xlu0 %v2701_v24, %s3664_s13 }
 0x3a9   :  { %v2730_v26 = vsel %vm2700_vm7, %v2729_v48, %v2725_v34 }
 0x3aa   :  { %2731 = vrot.lane.b32.xlu1 %v2730_v26, %s3664_s13 }
 0x41a   :  { %v2703_v53 = vpop.permute.xlu0 %2702 }
 0x41b   :  { %v2706_v28 = vsel %vm2705_vm8, %v2703_v53, 0.0 }
 0x41c   :  { %v2732_v51 = vpop.permute.xlu1 %2731  ;;  %2707 = vadd.xlane.f32.xlu0 %v2706_v28  ;;  %v7211_v28 = vld [vmem:[#allocation5_spill] sm:$0xff] }
 0x41d   :  { %v2734_v42 = vsel %vm2705_vm8, %v2732_v51, 0.0 }
 0x41e   :  { %2735 = vadd.xlane.f32.xlu1 %v2734_v42 }
 0x4a9   :  { %v2708_v40 = vpop.xlane.xlu0 %2707 }
 0x4aa   :  { %v2710_v19 = vadd.f32 %v2709_v59, %v2708_v40  ;;  %v7212_v59 = vld [vmem:[#allocation4_spill] sm:$0xff]  ;;  %v7213_v40 = vld [vmem:[#allocation7_spill] sm:$0xff] }
 0x4ab   :  { %v2736_v37 = vpop.xlane.xlu1 %2735 }
 0x4ac   :  { %v2738_v29 = vadd.f32 %v2737_v61, %v2736_v37  ;;  %v2711_v15 = vmax.f32 %v2710_v19, 0.0 }
 0x4ae   :  { %v2739_v5 = vmax.f32 %v2738_v29, 0.0  ;;  %2715 = vperm.xlu0 %3543, %v2711_v15   ;;  %v7214_v29 = vld [vmem:[#allocation6_spill] sm:$0xff] }
 0x4b0   :  { %2743 = vperm.xlu1 %3544, %v2739_v5  }
 0x52d   :  { %v2716_v25 = vpop.permute.xlu0 %2715 }
 0x52e   :  { %v2718_v60 = vmul.f32 %v2716_v25, %v2712_v54  ;;  %v3595_v25 = vld [vmem:[%s6596_s3 + $0x48] sm:$0xff]  }
 0x52f   :  { %v2744_v14 = vpop.permute.xlu1 %2743 }
 0x530   :  { %v2746_v55 = vmul.f32 %v2744_v14, %v2740_v13  ;;  %v2719_v41 = vadd.f32 %v2718_v60, %v2689_v0  ;;  %v3593_v13 = vld [vmem:[%s6596_s3 + $0x40] sm:$0xff]   ;;  %v3597_v14 = vld [vmem:[%s6596_s3 + $0x8] sm:$0xff]  }
 0x531   :  { %v3594_v0 = vld [vmem:[%s6596_s3] sm:$0xff]   ;;  %3481 = vmatprep.subr.bf16.mxu0 %v3593_v13 }
 0x532   :  { %v2747_v2 = vadd.f32 %v2746_v55, %v2719_v41  ;;  %3482 = vmatpush3.bf16.msra.mxu0 %v3594_v0  ;;  %v3596_v60 = vld [vmem:[%s6596_s3 + $0xc0] sm:$0xff]   ;;  %v3599_v41 = vld [vmem:[%s6596_s3 + $0x50] sm:$0xff]  }
 0x533   :  { %3483 = vmatprep.subr.bf16.mxu0 %v3595_v25  ;;  %3509 = vmatprep.subr.bf16.mxu1 %v3596_v60  ;;  %v3598_v55 = vld [vmem:[%s6596_s3 + $0x80] sm:$0xff]  }
 0x534   :  { %v3448_v6 = vmul.f32 -1.442695, %v2747_v2  ;;  %3510 = vmatpush3.bf16.msra.mxu1 %v3598_v55  ;;  %v3600_v2 = vld [vmem:[%s6596_s3 + $0xc8] sm:$0xff]  }
 0x535   :  { %3511 = vmatprep.subr.bf16.mxu1 %v3600_v2 }
 0x536   :  { %3625 = vpow2.f32 %v3448_v6  ;;  %3484 = vmatpush3.bf16.msra.mxu0 %v3597_v14  ;;  %v3601_v6 = vld [vmem:[%s6596_s3 + $0x10] sm:$0xff]  }
 0x537   :  { %3485 = vmatprep.subr.bf16.mxu0 %v3599_v41 }
 0x53a   :  { %3486 = vmatpush3.bf16.msra.mxu0 %v3601_v6 }
 0x540   :  { %v3626_v57 = vpop.eup %3625 }
 0x541   :  { %v2751_v27 = vadd.f32 1.0, %v3626_v57  ;;  %v3602_v57 = vld [vmem:[%s6596_s3 + $0x88] sm:$0xff]  }
 0x542   :  { %3512 = vmatpush3.bf16.msra.mxu1 %v3602_v57  ;;  %v7221_v57 = vmax.f32 %v6100_v4, 0.0  ;;  %v3624_v4 = vld [vmem:[%s6596_s3 + $0xb8] sm:$0xff]  }
 0x543   :  { %3627 = vrcp.f32 %v2751_v27  ;;  %v3603_v27 = vld [vmem:[%s6596_s3 + $0x58] sm:$0xff]  }
 0x544   :  { %3487 = vmatprep.subr.bf16.mxu0 %v3603_v27 }
 0x54d   :  { %v3628_v49 = vpop.eup %3627 }
 0x54e   :  { %2755 = vrot.lane.b32.xlu1 %v3628_v49, %s3664_s13 }
 0x5c0   :  { %v2756_v18 = vpop.permute.xlu1 %2755 }
 0x5c1   :  { %v2758_v58 = vsel %vm752_vm0, %v3628_v49, %v2756_v18  ;;  %v3604_v49 = vld [vmem:[%s6596_s3 + $0xd0] sm:$0xff]   ;;  %v3605_v18 = vld [vmem:[%s6596_s3 + $0x18] sm:$0xff]  }
 0x5c2   :  { %2760 = vrot.lane.b32.xlu1 %v2758_v58, %s3666_s7  ;;  %3513 = vmatprep.subr.bf16.mxu1 %v3604_v49  ;;  %v7222_v49 = vmax.f32 %v6102_v3, 0.0 }
 0x5c3   :  { %3488 = vmatpush3.bf16.msra.mxu0 %v3605_v18 }
 0x5c4   :  { %3489 = vmatprep.subr.bf16.mxu0 %v3607_v30 }
 0x5c7   :  { %3490 = vmatpush3.bf16.msra.mxu0 %v3609_v22  ;;  %v3623_v22 = vld [vmem:[%s6596_s3 + $0xf8] sm:$0xff]  }
 0x634   :  { %v2761_v46 = vpop.permute.xlu1 %2760 }
 0x635   :  { %v2763_v32 = vsel %vm881_vm3, %v2758_v58, %v2761_v46  ;;  %v3606_v58 = vld [vmem:[%s6596_s3 + $0x90] sm:$0xff]   ;;  %v3612_v46 = vld [vmem:[%s6596_s3 + $0xe0] sm:$0xff]  }
 0x636   :  { %v2765_v8 = vcombine.low %v2763_v32, %v2763_v32  ;;  %3514 = vmatpush3.bf16.msra.mxu1 %v3606_v58  ;;  %v3613_v32 = vld [vmem:[%s6596_s3 + $0x28] sm:$0xff]   ;;  %v7223_v58 = vmax.f32 %v6128_v23, 0.0 }
 0x637   :  { %3515 = vmatprep.subr.bf16.mxu1 %v3608_v50 }
 0x638   :  { %v2772_v34 = vrot.slane %v2765_v8, %v2771_v33  ;;  %v3614_v8 = vld [vmem:[%s6596_s3 + $0xa0] sm:$0xff]  }
 0x63a   :  { %v2773_v48 = vcombine.low %v2772_v34, %v2772_v34  ;;  %v2774_v24 = vcombine.high %v2772_v34, %v2772_v34  ;;  %3516 = vmatpush3.bf16.msra.mxu1 %v3610_v7  ;;  %v3615_v34 = vld [vmem:[%s6596_s3 + $0x70] sm:$0xff]  }
 0x63b   :  { %3517 = vmatprep.subr.bf16.mxu1 %v3612_v46 }
 0x63c   :  { %v2781_v26 = vrot.slane %v2773_v48, %v2771_v33  ;;  %v2788_v53 = vrot.slane %v2774_v24, %v2771_v33  ;;  %v3611_v33 = vld [vmem:[%s6596_s3 + $0x68] sm:$0xff]   ;;  %v3617_v24 = vld [vmem:[%s6596_s3 + $0x30] sm:$0xff]  }
 0x63d   :  { %3491 = vmatprep.subr.bf16.mxu0 %v3611_v33  ;;  %v3616_v48 = vld [vmem:[%s6596_s3 + $0xe8] sm:$0xff]  }
 0x63e   :  { %v2808_v51 = vrot.slane %v2788_v53, %v7211_v28  ;;  %v2792_v42 = vrot.slane %v2781_v26, %v7211_v28  ;;  %v2816_v61 = vrot.slane %v2788_v53, %v7212_v59  ;;  %v2796_v19 = vrot.slane %v2781_v26, %v7213_v40  ;;  %3492 = vmatpush3.bf16.msra.mxu0 %v3613_v32 }
 0x63f   :  { %v2800_v37 = vrot.slane %v2781_v26, %v7212_v59  ;;  %v2804_v15 = vrot.slane %v2781_v26, %v7214_v29  ;;  %v2812_v5 = vrot.slane %v2788_v53, %v7213_v40  ;;  %v2820_v54 = vrot.slane %v2788_v53, %v7214_v29  ;;  %3518 = vmatpush3.bf16.msra.mxu1 %v3614_v8  ;;  %v3618_v26 = vld [vmem:[%s6596_s3 + $0xa8] sm:$0xff]  }
 0x640   :  { %2829 = vrot.lane.b32.xlu0 %v2808_v51, %s3665_s25  ;;  %2821 = vrot.lane.b32.xlu1 %v2792_v42, %s3665_s25  ;;  %v7215_v51 = vmax.f32 %v6083_v31, 0.0  ;;  %v7216_v59 = vmax.f32 %v6088_v44, 0.0  ;;  %v7217_v40 = vmax.f32 %v6091_v47, 0.0  ;;  %v3620_v31 = vld [vmem:[%s6596_s3 + $0xf0] sm:$0xff]  }
 0x641   :  { %3493 = vmatprep.subr.bf16.mxu0 %v3615_v34  ;;  %3519 = vmatprep.subr.bf16.mxu1 %v3616_v48  ;;  %v7224_v48 = vmax.f32 %v6152_v62, 0.0  ;;  %v7227_v62 = vmax.f32 %v6193_v21, 0.0 }
 0x642   :  { %3494 = vmatpush3.bf16.msra.mxu0 %v3617_v24 }
 0x643   :  { %3520 = vmatpush3.bf16.msra.mxu1 %v3618_v26  ;;  %v7225_v26 = vmax.f32 %v6154_v20, 0.0  ;;  %v7228_v20 = vmax.f32 %v6210_v38, 0.0 }
 0x644   :  { %2833 = vrot.lane.b32.xlu0 %v2816_v61, %s3665_s25  ;;  %2823 = vrot.lane.b32.xlu1 %v2796_v19, %s3665_s25 }
 0x645   :  { %3521 = vmatprep.subr.bf16.mxu1 %v3620_v31 }
 0x648   :  { %2825 = vrot.lane.b32.xlu1 %v2800_v37, %s3665_s25  ;;  %v7218_v37 = vmax.f32 %v6077_v12, 0.0  ;;  %v3621_v12 = vld [vmem:[%s6596_s3 + $0x38] sm:$0xff]  }
 0x64c   :  { %2827 = vrot.lane.b32.xlu1 %v2804_v15, %s3665_s25  ;;  %v3619_v15 = vld [vmem:[%s6596_s3 + $0x78] sm:$0xff]  }
 0x64d   :  { %3495 = vmatprep.subr.bf16.mxu0 %v3619_v15 }
 0x64e   :  { %3496 = vmatpush3.bf16.msra.mxu0 %v3621_v12 }
 0x650   :  { %2831 = vrot.lane.b32.xlu1 %v2812_v5, %s3665_s25  ;;  %v7219_v5 = vmax.f32 %v6079_v39, 0.0  ;;  %v3622_v39 = vld [vmem:[%s6596_s3 + $0xb0] sm:$0xff]  }
 0x651   :  { %3522 = vmatpush3.bf16.msra.mxu1 %v3622_v39 }
 0x652   :  { %3523 = vmatprep.subr.bf16.mxu1 %v3623_v22 }
 0x654   :  { %2835 = vrot.lane.b32.xlu1 %v2820_v54, %s3665_s25  ;;  %v7220_v54 = vmax.f32 %v6081_v1, 0.0 }
 0x655   :  { %3524 = vmatpush3.bf16.msra.mxu1 %v3624_v4 }
 0x6b2   :  { %v6437_v53 = vpop.permute.xlu0 %2829  ;;  %v2822_v28 = vpop.permute.xlu1 %2821 }
 0x6b3   :  { %v2868_v42 = vmul.f32 %v6437_v53, %v7215_v51  ;;  %v2873_v61 = vmul.f32 %v6437_v53, %v7216_v59  ;;  %v2878_v19 = vmul.f32 %v6437_v53, %v7217_v40  ;;  %v2853_v29 = vmul.f32 %v2822_v28, %v7218_v37 }
 0x6b4   :  { %v2858_v44 = vmul.f32 %v2822_v28, %v7219_v5  ;;  %v2863_v13 = vmul.f32 %v2822_v28, %v7220_v54  ;;  %v7226_v51 = vmax.f32 %v6163_v56, 0.0  ;;  %v7229_v56 = vmax.f32 %v6221_v10, 0.0 }
 0x6b5   :  { %v2938_v47 = vrot.slane %v2868_v42, 7  ;;  %v2939_v0 = vrot.slane %v2873_v61, 7  ;;  %v2953_v25 = vrot.slane %v2878_v19, 7  ;;  %v2913_v60 = vrot.slane %v2853_v29, 7 }
 0x6b6   :  { %v2914_v14 = vrot.slane %v2858_v44, 7  ;;  %v2928_v55 = vrot.slane %v2863_v13, 7  ;;  %v2824_v1 = vpop.permute.xlu1 %2823  ;;  %v7230_v13 = vmax.f32 %v6190_v36, 0.0  ;;  %v2834_v10 = vpop.permute.xlu0 %2833 }
 0x6b7   :  { %v2837_v41 = vsel %vm483_vm2, %v2822_v28, %v2824_v1  ;;  %v2940_v2 = vsel %vm2505_vm5, %v2938_v47, %v2939_v0  ;;  %v2954_v6 = vsel %vm2505_vm5, %v2939_v0, %v2953_v25  ;;  %v7231_v47 = vmax.f32 %v6207_v16, 0.0 }
 0x6b8   :  { %v2854_v27 = vmul.f32 %v2837_v41, %v7221_v57  ;;  %v2859_v18 = vmul.f32 %v2837_v41, %v7222_v49  ;;  %v2864_v30 = vmul.f32 %v2837_v41, %v7223_v58  ;;  %v2988_v50 = vpack.c.bf16 %v2954_v6, %v2940_v2 }
 0x6b9   :  { %v2915_v7 = vsel %vm2505_vm5, %v2913_v60, %v2914_v14  ;;  %v2929_v33 = vsel %vm2505_vm5, %v2914_v14, %v2928_v55  ;;  %v7232_v25 = vmax.f32 %v6213_v45, 0.0  ;;  %v7233_v49 = vmax.f32 %v6130_v9, 0.0 }
 0x6ba   :  { %v2916_v3 = vrot.slane %v2854_v27, 7  ;;  %v2917_v46 = vrot.slane %v2859_v18, 7  ;;  %v2930_v32 = vrot.slane %v2864_v30, 7  ;;  %3078 = vrot.lane.b32.xlu1 %v2988_v50, %s3664_s13  ;;  %v2983_v23 = vpack.c.bf16 %v2929_v33, %v2915_v7  ;;  %v2826_v8 = vpop.permute.xlu1 %2825 }
 0x6bb   :  { %v2838_v34 = vsel %vm483_vm2, %v2824_v1, %v2826_v8  ;;  %v7234_v58 = vmax.f32 %v6169_v63, 0.0  ;;  %v7235_v50 = vmax.f32 %v6132_v35, 0.0  ;;  %v7236_v7 = vmax.f32 %v6172_v43, 0.0 }
 0x6bc   :  { %3068 = vrot.lane.b32.xlu0 %v2983_v23, %s3664_s13  ;;  %v2855_v24 = vmul.f32 %v2838_v34, %v7224_v48  ;;  %v2860_v28 = vmul.f32 %v2838_v34, %v7225_v26  ;;  %v2865_v42 = vmul.f32 %v2838_v34, %v7226_v51  ;;  %v2918_v59 = vsel %vm2505_vm5, %v2916_v3, %v2917_v46 }
 0x6bd   :  { %v2931_v61 = vsel %vm2505_vm5, %v2917_v46, %v2930_v32  ;;  %v7238_v3 = vmax.f32 %v6175_v17, 0.0 }
 0x6be   :  { %v2919_v40 = vrot.slane %v2855_v24, 7  ;;  %v2920_v19 = vrot.slane %v2860_v28, 7  ;;  %v2932_v37 = vrot.slane %v2865_v42, 7  ;;  %v2828_v29 = vpop.permute.xlu1 %2827  ;;  %v2984_v15 = vpack.c.bf16 %v2931_v61, %v2918_v59  ;;  %v7240_v28 = vld [vmem:[#allocation33_spill] sm:$0xff]  ;;  %v7242_v42 = vld [vmem:[#allocation35_spill] sm:$0xff] }
 0x6bf   :  { %v2839_v31 = vsel %vm483_vm2, %v2826_v8, %v2828_v29  ;;  %v2857_v5 = vmul.f32 %v2828_v29, %v7227_v62  ;;  %v2862_v44 = vmul.f32 %v2828_v29, %v7228_v20  ;;  %v2867_v54 = vmul.f32 %v2828_v29, %v7229_v56  ;;  %v7246_v29 = vld [vmem:[#allocation26_spill] sm:$0xff]  ;;  %v7248_v62 = vld [vmem:[#allocation8_spill] sm:$0xff] }
 0x6c0   :  { %v2856_v12 = vmul.f32 %v2839_v31, %v7230_v13  ;;  %v2861_v0 = vmul.f32 %v2839_v31, %v7231_v47  ;;  %v2866_v60 = vmul.f32 %v2839_v31, %v7232_v25  ;;  %3070 = vrot.lane.b32.xlu0 %v2984_v15, %s3664_s13  ;;  %v2921_v21 = vsel %vm2505_vm5, %v2919_v40, %v2920_v19  ;;  %v7244_v40 = vld [vmem:[#allocation36_spill] sm:$0xff] }
 0x6c1   :  { %v2925_v39 = vrot.slane %v2857_v5, 7  ;;  %v2926_v14 = vrot.slane %v2862_v44, 7  ;;  %v2936_v38 = vrot.slane %v2867_v54, 7  ;;  %v2933_v55 = vsel %vm2505_vm5, %v2920_v19, %v2932_v37 }
 0x6c2   :  { %v2922_v1 = vrot.slane %v2856_v12, 7  ;;  %v2923_v41 = vrot.slane %v2861_v0, 7  ;;  %v2934_v36 = vrot.slane %v2866_v60, 7  ;;  %v2832_v2 = vpop.permute.xlu1 %2831  ;;  %v2985_v6 = vpack.c.bf16 %v2933_v55, %v2921_v21 }
 0x6c3   :  { %v2840_v16 = vsel %vm483_vm2, %v6437_v53, %v2832_v2  ;;  %v2841_v45 = vsel %vm483_vm2, %v2832_v2, %v2834_v10  ;;  %v2927_v57 = vsel %vm2505_vm5, %v2925_v39, %v2926_v14  ;;  %v2937_v27 = vsel %vm2505_vm5, %v2926_v14, %v2936_v38 }
 0x6c4   :  { %v2869_v18 = vmul.f32 %v2840_v16, %v7233_v49  ;;  %v2870_v30 = vmul.f32 %v2841_v45, %v7234_v58  ;;  %v2874_v22 = vmul.f32 %v2840_v16, %v7235_v50  ;;  %v2875_v33 = vmul.f32 %v2841_v45, %v7236_v7  ;;  %3072 = vrot.lane.b32.xlu1 %v2985_v6, %s3664_s13 }
 0x6c5   :  { %v7237_v53 = vmax.f32 %v6134_v52, 0.0  ;;  %v2880_v46 = vmul.f32 %v2841_v45, %v7238_v3  ;;  %v2987_v32 = vpack.c.bf16 %v2937_v27, %v2927_v57  ;;  %v2924_v9 = vsel %vm2505_vm5, %v2922_v1, %v2923_v41 }
 0x6c6   :  { %v2941_v23 = vrot.slane %v2869_v18, 7  ;;  %v2942_v63 = vrot.slane %v2874_v22, 7  ;;  %v2944_v8 = vrot.slane %v2870_v30, 7  ;;  %v2945_v34 = vrot.slane %v2875_v33, 7  ;;  %v2836_v35 = vpop.permute.xlu1 %2835 }
 0x6c7   :  { %v2879_v4 = vmul.f32 %v2840_v16, %v7237_v53  ;;  %v2957_v24 = vrot.slane %v2880_v46, 7  ;;  %3076 = vrot.lane.b32.xlu0 %v2987_v32, %s3664_s13  ;;  %v2842_v43 = vsel %vm483_vm2, %v2834_v10, %v2836_v35  ;;  %v7239_v52 = vmax.f32 %v6227_v11, 0.0 }
 0x6c8   :  { %v7241_v17 = vmax.f32 %v7240_v28, 0.0  ;;  %v7243_v59 = vmax.f32 %v7242_v42, 0.0  ;;  %v7245_v19 = vmax.f32 %v7244_v40, 0.0  ;;  %v7247_v15 = vmax.f32 %v7246_v29, 0.0 }
 0x6c9   :  { %v2955_v48 = vrot.slane %v2879_v4, 7  ;;  %v2872_v26 = vmul.f32 %v2836_v35, %v7239_v52  ;;  %v7249_v5 = vmax.f32 %v7248_v62, 0.0  ;;  %v2935_v56 = vsel %vm2505_vm5, %v2923_v41, %v2934_v36 }
 0x6ca   :  { %v2871_v51 = vmul.f32 %v2842_v43, %v7241_v17  ;;  %v2876_v61 = vmul.f32 %v2842_v43, %v7243_v59  ;;  %v2877_v37 = vmul.f32 %v2836_v35, %v7245_v19  ;;  %v2881_v31 = vmul.f32 %v2842_v43, %v7247_v15  ;;  %v3658_v19 = vld [vmem:[%s6594_s0] sm:$0xff] }
 0x6cb   :  { %v2882_v20 = vmul.f32 %v2836_v35, %v7249_v5  ;;  %v2950_v44 = vrot.slane %v2872_v26, 7  ;;  %v2946_v11 = vsel %vm2505_vm5, %v2944_v8, %v2945_v34  ;;  %v2986_v25 = vpack.c.bf16 %v2935_v56, %v2924_v9  ;;  %v3659_v5 = vld [vmem:[%s6594_s0 + $0x8] sm:$0xff] }
 0x6cc   :  { %v2947_v54 = vrot.slane %v2871_v51, 7  ;;  %v2948_v13 = vrot.slane %v2876_v61, 7  ;;  %v2951_v12 = vrot.slane %v2877_v37, 7  ;;  %v2959_v47 = vrot.slane %v2881_v31, 7 }
 0x6cd   :  { %v2961_v0 = vrot.slane %v2882_v20, 7  ;;  %v2958_v60 = vsel %vm2505_vm5, %v2945_v34, %v2957_v24  ;;  %v2943_v21 = vsel %vm2505_vm5, %v2941_v23, %v2942_v63  ;;  %v2956_v14 = vsel %vm2505_vm5, %v2942_v63, %v2955_v48  ;;  %3074 = vrot.lane.b32.xlu1 %v2986_v25, %s3664_s13  ;;  %v3057_v48 = vld [vmem:[%s6595_s4 + $0x2] ss:$0 sm:$0xff] }
 0x6ce   :  { %v2990_v39 = vpack.c.bf16 %v2958_v60, %v2946_v11  ;;  %v2949_v38 = vsel %vm2505_vm5, %v2947_v54, %v2948_v13  ;;  %v2989_v55 = vpack.c.bf16 %v2956_v14, %v2943_v21  ;;  %v2960_v10 = vsel %vm2505_vm5, %v2948_v13, %v2959_v47  ;;  %v3660_v21 = vld [vmem:[%s6594_s0 + $0x10] sm:$0xff] }
 0x6cf   :  { %v2952_v1 = vsel %vm2505_vm5, %v2950_v44, %v2951_v12  ;;  %v2962_v41 = vsel %vm2505_vm5, %v2951_v12, %v2961_v0  ;;  %v2991_v36 = vpack.c.bf16 %v2960_v10, %v2949_v38  ;;  %v3661_v38 = vld [vmem:[%s6594_s0 + $0x18] sm:$0xff] }
 0x6d0   :  { %3082 = vrot.lane.b32.xlu0 %v2990_v39, %s3664_s13  ;;  %v2992_v2 = vpack.c.bf16 %v2962_v41, %v2952_v1 }
 0x6d1   :  { %3080 = vrot.lane.b32.xlu1 %v2989_v55, %s3664_s13 }
 0x6d4   :  { %3084 = vrot.lane.b32.xlu0 %v2991_v36, %s3664_s13 }
 0x6d5   :  { %3086 = vrot.lane.b32.xlu1 %v2992_v2, %s3664_s13 }
 0x72c   :  { %v3079_v16 = vpop.permute.xlu1 %3078 }
 0x72e   :  { %v3069_v6 = vpop.permute.xlu0 %3068 }
 0x732   :  { %v3071_v45 = vpop.permute.xlu0 %3070 }
 0x733   :  { %v3089_v49 = vsel %vm752_vm0, %v3069_v6, %v3071_v45 }
 0x736   :  { %v3073_v57 = vpop.permute.xlu1 %3072 }
 0x737   :  { %v3090_v27 = vsel %vm752_vm0, %v3071_v45, %v3073_v57 }
 0x738   :  { %3329 = vmatprep.mubr.bf16.mxu0 %v3090_v27 }
 0x739   :  { %3330 = vmatmul.mubr.bf16.vlgmr.msra.gmra.mrb[8].mxu0 %v3089_v49  ;;  %v3077_v18 = vpop.permute.xlu0 %3076 }
 0x73f   :  { %v3075_v58 = vpop.permute.xlu1 %3074 }
 0x740   :  { %v3091_v30 = vsel %vm752_vm0, %v3073_v57, %v3075_v58  ;;  %v3092_v50 = vsel %vm752_vm0, %v3075_v58, %v3077_v18 }
 0x741   :  { %3378 = vmatprep.mubr.bf16.mxu1 %v3092_v50 }
 0x742   :  { %v3083_v22 = vpop.permute.xlu0 %3082  ;;  %3379 = vmatmul.mubr.bf16.vlgmr.msra.gmra.mrb[8].mxu1 %v3091_v30 }
 0x743   :  { %v3081_v7 = vpop.permute.xlu1 %3080 }
 0x744   :  { %v3094_v33 = vsel %vm752_vm0, %v3081_v7, %v3083_v22  ;;  %v3093_v53 = vsel %vm752_vm0, %v3079_v16, %v3081_v7 }
 0x745   :  { %3337 = vmatprep.mubr.bf16.mxu0 %v3094_v33 }
 0x746   :  { %v3085_v4 = vpop.permute.xlu0 %3084  ;;  %3338 = vmatmul.mubr.bf16.gmra.mrb[12].mxu0 %v3093_v53 }
 0x747   :  { %v3087_v3 = vpop.permute.xlu1 %3086  ;;  %v3095_v46 = vsel %vm752_vm0, %v3083_v22, %v3085_v4 }
 0x748   :  { %v3096_v32 = vsel %vm752_vm0, %v3085_v4, %v3087_v3 }
 0x749   :  { %3386 = vmatprep.mubr.bf16.mxu1 %v3096_v32 }
 0x74a   :  { %3387 = vmatmul.mubr.bf16.gmra.mrb[12].mxu1 %v3095_v46 }
 0x80c   :  { %v3497_v9 = vpop.f32.mrb[8].mxu0 }
 0x80d   :  { %v3498_v23 = vpop.f32.mrb[9].mxu0 }
 0x80e   :  { %v3499_v63 = vadd.f32 %v3498_v23, %v3497_v9  ;;  %v3500_v8 = vpop.f32.mrb[10].mxu0 }
 0x80f   :  { %v3501_v34 = vpop.f32.mrb[11].mxu0 }
 0x810   :  { %v3502_v35 = vadd.f32 %v3501_v34, %v3500_v8  ;;  %v3332_v52 = vadd.f32 %v3499_v63, %v3057_v48 }
 0x812   :  { %v3335_v51 = vadd.f32 %v3502_v35, %v3057_v48 }
 0x815   :  { %v3525_v24 = vpop.f32.mrb[8].mxu1 }
 0x816   :  { %v3526_v43 = vpop.f32.mrb[9].mxu1 }
 0x817   :  { %v3527_v26 = vadd.f32 %v3526_v43, %v3525_v24  ;;  %v3528_v28 = vpop.f32.mrb[10].mxu1 }
 0x818   :  { %v3529_v17 = vpop.f32.mrb[11].mxu1 }
 0x819   :  { %v3381_v42 = vadd.f32 %v3527_v26, %v3332_v52  ;;  %v3530_v59 = vadd.f32 %v3529_v17, %v3528_v28  ;;  %v3503_v61 = vpop.f32.mrb[12].mxu0 }
 0x81a   :  { %v3504_v40 = vpop.f32.mrb[13].mxu0 }
 0x81b   :  { %v3395_v37 = vadd.f32 %v3658_v19, %v3381_v42  ;;  %v3384_v29 = vadd.f32 %v3530_v59, %v3335_v51  ;;  %v3505_v15 = vadd.f32 %v3504_v40, %v3503_v61  ;;  %v3506_v31 = vpop.f32.mrb[14].mxu0 }
 0x81c   :  { %v3507_v62 = vpop.f32.mrb[15].mxu0 }
 0x81d   :  { %3399 = vst [vmem:[%s6597_s5] sm:$0xff] %v3395_v37  ;;  %v3396_v20 = vadd.f32 %v3659_v5, %v3384_v29  ;;  %v3508_v44 = vadd.f32 %v3507_v62, %v3506_v31  ;;  %v3531_v56 = vpop.f32.mrb[12].mxu1  ;;  %v3340_v54 = vadd.f32 %v3505_v15, %v3057_v48 }
 0x81e   :  { %v3532_v11 = vpop.f32.mrb[13].mxu1 }
 0x81f   :  { %3400 = vst [vmem:[%s6597_s5 + $0x8] sm:$0xff] %v3396_v20  ;;  %v3533_v13 = vadd.f32 %v3532_v11, %v3531_v56  ;;  %v3534_v12 = vpop.f32.mrb[14].mxu1  ;;  %v3343_v0 = vadd.f32 %v3508_v44, %v3057_v48 }
 0x820   :  { %v3535_v47 = vpop.f32.mrb[15].mxu1 }
 0x821   :  { %v3389_v25 = vadd.f32 %v3533_v13, %v3340_v54  ;;  %v3536_v60 = vadd.f32 %v3535_v47, %v3534_v12 }
 0x823   :  { %v3397_v39 = vadd.f32 %v3660_v21, %v3389_v25  ;;  %v3392_v14 = vadd.f32 %v3536_v60, %v3343_v0 }
 0x825   :  { %3401 = vst [vmem:[%s6597_s5 + $0x10] sm:$0xff] %v3397_v39  ;;  %v3398_v55 = vadd.f32 %v3661_v38, %v3392_v14 }
 0x827   :  { %3402 = vst [vmem:[%s6597_s5 + $0x18] sm:$0xff] %v3398_v55 }

</bundles_post_ra>
